<compile_context>
chip_gen: v7x
topology: tpu7x:2x2x1
jax: 0.10.0
libtpu: 0.0.40
codegen_flags: <defaults>
</compile_context>

<pallas_src>
import functools

import jax
import jax.numpy as jnp
import numpy as np
from jax import lax
from jax.experimental import pallas as pl
from jax.experimental.pallas import tpu as pltpu

C_MID = 256     # hidden channels of the 3x3 conv in the segmentation head
LANE = 128      # TPU lane width
SUBLANE = 8     # TPU sublane width


def _seg_head_kernel(x_ref, w1_ref, b1_ref, w2_ref, b2_ref, o_ref, xpad_ref,
                     *, H, W, C_OUT8):
    """One batch element: conv3x3(pad=1) -> ReLU -> conv1x1 -> softmax(classes).

    x_ref   : (1, H, W, Cin)      bf16  NHWC input tile, VMEM
    w1_ref  : (9*Cin, C_MID)      bf16  3x3 conv weights, tap-major / chan-minor
    w2_ref  : (C_MID, Cp)         bf16  1x1 conv weights, classes zero-padded
    b1_ref  : (1, C_MID)          f32
    b2_ref  : (1, Cp)             f32   pad classes get -1e9 (softmax -> 0)
    o_ref   : (1, C_OUT8, H*W)    f32   class-major, lane-dense output slab
    xpad_ref: (1, H+2, W+2, Cin)  bf16  VMEM scratch with the zero halo
    """
    cin = x_ref.shape[-1]

    # Zero only the halo border each step; the interior is fully overwritten.
    zrow = jnp.zeros((1, 1, W + 2, cin), dtype=xpad_ref.dtype)
    zcol = jnp.zeros((1, H, 1, cin), dtype=xpad_ref.dtype)
    xpad_ref[:, 0:1, :, :] = zrow
    xpad_ref[:, H + 1:H + 2, :, :] = zrow
    xpad_ref[:, 1:H + 1, 0:1, :] = zcol
    xpad_ref[:, 1:H + 1, W + 1:W + 2, :] = zcol
    xpad_ref[:, 1:H + 1, 1:W + 1, :] = x_ref[...]

    # im2col: one (H*W, 9*Cin) bf16 patch matrix, one fused MXU matmul.
    taps = []
    for kh in range(3):
        for kw in range(3):
            taps.append(
                xpad_ref[0, kh:kh + H, kw:kw + W, :].reshape(H * W, cin))
    patches = jnp.concatenate(taps, axis=-1)                  # bf16

    hidden = jnp.dot(patches, w1_ref[...], preferred_element_type=jnp.float32)
    hidden = jnp.maximum(hidden + b1_ref[...], 0.0)           # ReLU (f32)

    # 1x1 conv == matmul over channels; class dim padded to the lane width.
    logits = jnp.dot(hidden.astype(jnp.bfloat16), w2_ref[...],
                     preferred_element_type=jnp.float32) + b2_ref[...]

    # Softmax over the (padded) class axis; padded lanes exp() to exactly 0.
    m = jnp.max(logits, axis=-1, keepdims=True)
    e = jnp.exp(logits - m)
    denom = jnp.sum(e, axis=-1, keepdims=True)
    probs = e * pl.reciprocal(denom, approx=True)             # (H*W, Cp) f32

    # Class-major writeback: XLU transpose, keep only the real (8-aligned)
    # classes -> (C_OUT8, H*W), lane-dense unmasked stores, and the wrapper
    # needs no NHWC->NCHW transpose.
    probs_t = jnp.transpose(probs, (1, 0))                    # (Cp, H*W)
    o_ref[...] = probs_t[:C_OUT8, :].reshape(1, C_OUT8, H * W).astype(
        o_ref.dtype)


def _vmem_limit_bytes():
    """Scoped-VMEM budget: 3/4 of the local chip's capacity."""
    try:
        cap = pltpu.get_tpu_info().vmem_capacity_bytes
        return int(cap * 3 // 4)      # ~96 MiB on 128-MiB chips, 48 MiB on v7x
    except Exception:   # fall back to the compiler default if the query fails
        return None


def segmentation_head(x_nchw, w1, b1, w2, b2):
    """Pallas forward of the segmentation head.

    x_nchw: (N, Cin, H, W) float32
    w1    : (C_MID, Cin, 3, 3)  (PyTorch Conv2d weight layout)
    b1    : (C_MID,)
    w2    : (Ccls, C_MID, 1, 1)
    b2    : (Ccls,)
    returns (N, Ccls, H, W) float32
    """
    N, Cin, H, W = x_nchw.shape
    Ccls = w2.shape[0]
    Cp = ((Ccls + LANE - 1) // LANE) * LANE          # lane-padded class dim
    C_OUT8 = ((Ccls + SUBLANE - 1) // SUBLANE) * SUBLANE   # stored class rows

    # NCHW -> NHWC and bf16 at the boundary (halves the input DMA).
    x_nhwc = jnp.transpose(x_nchw, (0, 2, 3, 1)).astype(jnp.bfloat16)

    # (C_MID, Cin, 3, 3) -> (3, 3, Cin, C_MID) -> (9*Cin, C_MID), tap-major.
    w1_k = jnp.transpose(w1, (2, 3, 1, 0)).reshape(9 * Cin, C_MID)
    w1_k = w1_k.astype(jnp.bfloat16)
    b1_k = b1.reshape(1, C_MID).astype(jnp.float32)

    # (Ccls, C_MID, 1, 1) -> (C_MID, Ccls), zero-pad classes up to Cp.
    w2_k = jnp.transpose(w2.reshape(Ccls, C_MID), (1, 0))
    w2_k = jnp.pad(w2_k, ((0, 0), (0, Cp - Ccls))).astype(jnp.bfloat16)
    # Padded classes get a very negative bias -> softmax weight exactly 0.
    b2_k = jnp.pad(b2.astype(jnp.float32), (0, Cp - Ccls),
                   constant_values=-1e9).reshape(1, Cp)

    kernel = functools.partial(_seg_head_kernel, H=H, W=W, C_OUT8=C_OUT8)

    out = pl.pallas_call(
        kernel,
        out_shape=jax.ShapeDtypeStruct((N, C_OUT8, H * W), jnp.float32),
        grid_spec=pltpu.PrefetchScalarGridSpec(
            num_scalar_prefetch=0,
            grid=(N,),
            in_specs=[
                pl.BlockSpec((1, H, W, Cin), lambda n: (n, 0, 0, 0)),
                pl.BlockSpec((9 * Cin, C_MID), lambda n: (0, 0)),
                pl.BlockSpec((1, C_MID), lambda n: (0, 0)),
                pl.BlockSpec((C_MID, Cp), lambda n: (0, 0)),
                pl.BlockSpec((1, Cp), lambda n: (0, 0)),
            ],
            out_specs=pl.BlockSpec((1, C_OUT8, H * W), lambda n: (n, 0, 0)),
            scratch_shapes=[
                pltpu.VMEM((1, H + 2, W + 2, Cin), jnp.bfloat16),
            ],
        ),
        compiler_params=pltpu.CompilerParams(
            dimension_semantics=("parallel",),
            vmem_limit_bytes=_vmem_limit_bytes()),
    )(x_nhwc, w1_k, b1_k, w2_k, b2_k)

    # Output is already class-major: reshape + class slice gives NCHW.
    return out.reshape(N, C_OUT8, H, W)[:, :Ccls]


def resnet_forward(x_nchw, params):
    # backbone: identity stand-in (see TODO(synk) above).
    features = x_nchw
    return segmentation_head(features, params["w1"], params["b1"],
                             params["w2"], params["b2"])


def _reference_forward(x_nchw, params):
    """Pure-JAX f32 reference (lax.conv) for correctness checking."""
    y = lax.conv_general_dilated(
        x_nchw, params["w1"], window_strides=(1, 1), padding=((1, 1), (1, 1)),
        dimension_numbers=("NCHW", "OIHW", "NCHW"))
    y = y + params["b1"][None, :, None, None]
    y = jnp.maximum(y, 0.0)
    y = lax.conv_general_dilated(
        y, params["w2"], window_strides=(1, 1), padding=((0, 0), (0, 0)),
        dimension_numbers=("NCHW", "OIHW", "NCHW"))
    y = y + params["b2"][None, :, None, None]
    return jax.nn.softmax(y, axis=1)


def init_params(key, num_features, num_classes):
    k1, k2, k3, k4 = jax.random.split(key, 4)
    fan1 = num_features * 3 * 3
    fan2 = C_MID * 1 * 1
    return {
        "w1": jax.random.normal(k1, (C_MID, num_features, 3, 3),
                                jnp.float32) * (2.0 / fan1) ** 0.5,
        "b1": jax.random.normal(k2, (C_MID,), jnp.float32) * 0.01,
        "w2": jax.random.normal(k3, (num_classes, C_MID, 1, 1),
                                jnp.float32) * (2.0 / fan2) ** 0.5,
        "b2": jax.random.normal(k4, (num_classes,), jnp.float32) * 0.01,
    }


if __name__ == "__main__":
    key = jax.random.PRNGKey(0)
    k_x, k_p = jax.random.split(key)

    N, num_features, H, W = 2, 4, 16, 16
    num_classes = 8

    x = jax.random.normal(k_x, (N, num_features, H, W), jnp.float32)
    params = init_params(k_p, num_features, num_classes)

    fwd = jax.jit(resnet_forward)
    out = jax.block_until_ready(fwd(x, params))
    ref = jax.block_until_ready(_reference_forward(x, params))

    assert out.shape == (N, num_classes, H, W)
    # bf16 matmuls + approx reciprocal -> looser tolerance vs. the f32 ref.
    np.testing.assert_allclose(np.asarray(out), np.asarray(ref),
                               rtol=5e-2, atol=3e-2)
    print("KERNEL_OK")
</pallas_src>

<mosaic_0001>
module attributes {stable_mosaic.version = 11 : i64} {
  func.func @_seg_head_kernel(%arg0: i32, %arg1: memref<1x16x16x4xbf16, #tpu.memory_space<vmem>>, %arg2: memref<36x256xbf16, #tpu.memory_space<vmem>>, %arg3: memref<1x256xf32, #tpu.memory_space<vmem>>, %arg4: memref<256x128xbf16, #tpu.memory_space<vmem>>, %arg5: memref<1x128xf32, #tpu.memory_space<vmem>>, %arg6: memref<1x8x256xf32, #tpu.memory_space<vmem>>, %arg7: memref<1x18x18x4xbf16, #tpu.memory_space<vmem>>) attributes {dimension_semantics = [#tpu.dimension_semantics<parallel>], iteration_bounds = array<i64: 2>, scalar_prefetch = 0 : i64, scratch_operands = 1 : i64, tpu.core_type = #tpu.core_type<tc>, window_params = [{transform_indices = @transform_0, window_bounds = array<i64: 1, 16, 16, 4>}, {pipeline_mode = #tpu.pipeline_mode<synchronous>, transform_indices = @transform_1, window_bounds = array<i64: 36, 256>}, {pipeline_mode = #tpu.pipeline_mode<synchronous>, transform_indices = @transform_2, window_bounds = array<i64: 1, 256>}, {pipeline_mode = #tpu.pipeline_mode<synchronous>, transform_indices = @transform_3, window_bounds = array<i64: 256, 128>}, {pipeline_mode = #tpu.pipeline_mode<synchronous>, transform_indices = @transform_4, window_bounds = array<i64: 1, 128>}, {transform_indices = @transform_5, window_bounds = array<i64: 1, 8, 256>}]} {
    %cst = arith.constant 0.000000e+00 : bf16
    %0 = vector.broadcast %cst : bf16 to vector<1x1x18x4xbf16>
    %cst_0 = arith.constant 0.000000e+00 : bf16
    %1 = vector.broadcast %cst_0 : bf16 to vector<1x16x1x4xbf16>
    %c0 = arith.constant 0 : index
    %c0_1 = arith.constant 0 : index
    %c0_2 = arith.constant 0 : index
    %c0_3 = arith.constant 0 : index
    %2 = vector.load %arg7[%c0, %c0_1, %c0_2, %c0_3] : memref<1x18x18x4xbf16, #tpu.memory_space<vmem>>, vector<1x1x18x4xbf16>
    tpu.vector_store %arg7[%c0, %c0_1, %c0_2, %c0_3], %0 {strides = array<i32>} : memref<1x18x18x4xbf16, #tpu.memory_space<vmem>>, vector<1x1x18x4xbf16>,
    %c0_4 = arith.constant 0 : index
    %c17 = arith.constant 17 : index
    %c0_5 = arith.constant 0 : index
    %c0_6 = arith.constant 0 : index
    %3 = vector.load %arg7[%c0_4, %c17, %c0_5, %c0_6] : memref<1x18x18x4xbf16, #tpu.memory_space<vmem>>, vector<1x1x18x4xbf16>
    tpu.vector_store %arg7[%c0_4, %c17, %c0_5, %c0_6], %0 {strides = array<i32>} : memref<1x18x18x4xbf16, #tpu.memory_space<vmem>>, vector<1x1x18x4xbf16>,
    %c0_7 = arith.constant 0 : index
    %c1 = arith.constant 1 : index
    %c0_8 = arith.constant 0 : index
    %c0_9 = arith.constant 0 : index
    %4 = vector.load %arg7[%c0_7, %c1, %c0_8, %c0_9] : memref<1x18x18x4xbf16, #tpu.memory_space<vmem>>, vector<1x16x1x4xbf16>
    tpu.vector_store %arg7[%c0_7, %c1, %c0_8, %c0_9], %1 {strides = array<i32>} : memref<1x18x18x4xbf16, #tpu.memory_space<vmem>>, vector<1x16x1x4xbf16>,
    %c0_10 = arith.constant 0 : index
    %c1_11 = arith.constant 1 : index
    %c17_12 = arith.constant 17 : index
    %c0_13 = arith.constant 0 : index
    %5 = vector.load %arg7[%c0_10, %c1_11, %c17_12, %c0_13] : memref<1x18x18x4xbf16, #tpu.memory_space<vmem>>, vector<1x16x1x4xbf16>
    tpu.vector_store %arg7[%c0_10, %c1_11, %c17_12, %c0_13], %1 {strides = array<i32>} : memref<1x18x18x4xbf16, #tpu.memory_space<vmem>>, vector<1x16x1x4xbf16>,
    %c0_14 = arith.constant 0 : index
    %c0_15 = arith.constant 0 : index
    %c0_16 = arith.constant 0 : index
    %c0_17 = arith.constant 0 : index
    %6 = vector.load %arg1[%c0_14, %c0_15, %c0_16, %c0_17] : memref<1x16x16x4xbf16, #tpu.memory_space<vmem>>, vector<1x16x16x4xbf16>
    %c0_18 = arith.constant 0 : index
    %c1_19 = arith.constant 1 : index
    %c1_20 = arith.constant 1 : index
    %c0_21 = arith.constant 0 : index
    %7 = vector.load %arg7[%c0_18, %c1_19, %c1_20, %c0_21] : memref<1x18x18x4xbf16, #tpu.memory_space<vmem>>, vector<1x16x16x4xbf16>
    tpu.vector_store %arg7[%c0_18, %c1_19, %c1_20, %c0_21], %6 {strides = array<i32>} : memref<1x18x18x4xbf16, #tpu.memory_space<vmem>>, vector<1x16x16x4xbf16>,
    %c0_22 = arith.constant 0 : index
    %c0_23 = arith.constant 0 : index
    %c0_24 = arith.constant 0 : index
    %c0_25 = arith.constant 0 : index
    %8 = vector.load %arg7[%c0_22, %c0_23, %c0_24, %c0_25] : memref<1x18x18x4xbf16, #tpu.memory_space<vmem>>, vector<1x16x16x4xbf16>
    %9 = vector.shape_cast %8 : vector<1x16x16x4xbf16> to vector<16x16x4xbf16>
    %10 = vector.shape_cast %9 : vector<16x16x4xbf16> to vector<256x4xbf16>
    %c0_26 = arith.constant 0 : index
    %c0_27 = arith.constant 0 : index
    %c1_28 = arith.constant 1 : index
    %c0_29 = arith.constant 0 : index
    %11 = vector.load %arg7[%c0_26, %c0_27, %c1_28, %c0_29] : memref<1x18x18x4xbf16, #tpu.memory_space<vmem>>, vector<1x16x16x4xbf16>
    %12 = vector.shape_cast %11 : vector<1x16x16x4xbf16> to vector<16x16x4xbf16>
    %13 = vector.shape_cast %12 : vector<16x16x4xbf16> to vector<256x4xbf16>
    %c0_30 = arith.constant 0 : index
    %c0_31 = arith.constant 0 : index
    %c2 = arith.constant 2 : index
    %c0_32 = arith.constant 0 : index
    %14 = vector.load %arg7[%c0_30, %c0_31, %c2, %c0_32] : memref<1x18x18x4xbf16, #tpu.memory_space<vmem>>, vector<1x16x16x4xbf16>
    %15 = vector.shape_cast %14 : vector<1x16x16x4xbf16> to vector<16x16x4xbf16>
    %16 = vector.shape_cast %15 : vector<16x16x4xbf16> to vector<256x4xbf16>
    %c0_33 = arith.constant 0 : index
    %c1_34 = arith.constant 1 : index
    %c0_35 = arith.constant 0 : index
    %c0_36 = arith.constant 0 : index
    %17 = vector.load %arg7[%c0_33, %c1_34, %c0_35, %c0_36] : memref<1x18x18x4xbf16, #tpu.memory_space<vmem>>, vector<1x16x16x4xbf16>
    %18 = vector.shape_cast %17 : vector<1x16x16x4xbf16> to vector<16x16x4xbf16>
    %19 = vector.shape_cast %18 : vector<16x16x4xbf16> to vector<256x4xbf16>
    %c0_37 = arith.constant 0 : index
    %c1_38 = arith.constant 1 : index
    %c1_39 = arith.constant 1 : index
    %c0_40 = arith.constant 0 : index
    %20 = vector.load %arg7[%c0_37, %c1_38, %c1_39, %c0_40] : memref<1x18x18x4xbf16, #tpu.memory_space<vmem>>, vector<1x16x16x4xbf16>
    %21 = vector.shape_cast %20 : vector<1x16x16x4xbf16> to vector<16x16x4xbf16>
    %22 = vector.shape_cast %21 : vector<16x16x4xbf16> to vector<256x4xbf16>
    %c0_41 = arith.constant 0 : index
    %c1_42 = arith.constant 1 : index
    %c2_43 = arith.constant 2 : index
    %c0_44 = arith.constant 0 : index
    %23 = vector.load %arg7[%c0_41, %c1_42, %c2_43, %c0_44] : memref<1x18x18x4xbf16, #tpu.memory_space<vmem>>, vector<1x16x16x4xbf16>
    %24 = vector.shape_cast %23 : vector<1x16x16x4xbf16> to vector<16x16x4xbf16>
    %25 = vector.shape_cast %24 : vector<16x16x4xbf16> to vector<256x4xbf16>
    %c0_45 = arith.constant 0 : index
    %c2_46 = arith.constant 2 : index
    %c0_47 = arith.constant 0 : index
    %c0_48 = arith.constant 0 : index
    %26 = vector.load %arg7[%c0_45, %c2_46, %c0_47, %c0_48] : memref<1x18x18x4xbf16, #tpu.memory_space<vmem>>, vector<1x16x16x4xbf16>
    %27 = vector.shape_cast %26 : vector<1x16x16x4xbf16> to vector<16x16x4xbf16>
    %28 = vector.shape_cast %27 : vector<16x16x4xbf16> to vector<256x4xbf16>
    %c0_49 = arith.constant 0 : index
    %c2_50 = arith.constant 2 : index
    %c1_51 = arith.constant 1 : index
    %c0_52 = arith.constant 0 : index
    %29 = vector.load %arg7[%c0_49, %c2_50, %c1_51, %c0_52] : memref<1x18x18x4xbf16, #tpu.memory_space<vmem>>, vector<1x16x16x4xbf16>
    %30 = vector.shape_cast %29 : vector<1x16x16x4xbf16> to vector<16x16x4xbf16>
    %31 = vector.shape_cast %30 : vector<16x16x4xbf16> to vector<256x4xbf16>
    %c0_53 = arith.constant 0 : index
    %c2_54 = arith.constant 2 : index
    %c2_55 = arith.constant 2 : index
    %c0_56 = arith.constant 0 : index
    %32 = vector.load %arg7[%c0_53, %c2_54, %c2_55, %c0_56] : memref<1x18x18x4xbf16, #tpu.memory_space<vmem>>, vector<1x16x16x4xbf16>
    %33 = vector.shape_cast %32 : vector<1x16x16x4xbf16> to vector<16x16x4xbf16>
    %34 = vector.shape_cast %33 : vector<16x16x4xbf16> to vector<256x4xbf16>
    %35 = tpu.concatenate %10, %13, %16, %19, %22, %25, %28, %31, %34 in 1 : vector<256x4xbf16>, vector<256x4xbf16>, vector<256x4xbf16>, vector<256x4xbf16>, vector<256x4xbf16>, vector<256x4xbf16>, vector<256x4xbf16>, vector<256x4xbf16>, vector<256x4xbf16> -> vector<256x36xbf16>
    %c0_57 = arith.constant 0 : index
    %c0_58 = arith.constant 0 : index
    %36 = vector.load %arg2[%c0_57, %c0_58] : memref<36x256xbf16, #tpu.memory_space<vmem>>, vector<36x256xbf16>
    %cst_59 = arith.constant dense<0.000000e+00> : vector<256x256xf32>
    %37 = tpu.matmul %35, %36, %cst_59 {dimension_numbers = #tpu.dot_dimension_numbers<[1], [0], [0], [1], [0, 0, 1, 1], [], []>} : vector<256x36xbf16>, vector<36x256xbf16>, vector<256x256xf32> -> vector<256x256xf32>
    %c0_60 = arith.constant 0 : index
    %c0_61 = arith.constant 0 : index
    %38 = vector.load %arg3[%c0_60, %c0_61] : memref<1x256xf32, #tpu.memory_space<vmem>>, vector<1x256xf32>
    %39 = vector.broadcast %38 : vector<1x256xf32> to vector<256x256xf32>
    %40 = arith.addf %37, %39 : vector<256x256xf32>
    %cst_62 = arith.constant 0.000000e+00 : f32
    %41 = vector.broadcast %cst_62 : f32 to vector<256x256xf32>
    %42 = arith.maximumf %40, %41 : vector<256x256xf32>
    %43 = arith.truncf %42 : vector<256x256xf32> to vector<256x256xbf16>
    %c0_63 = arith.constant 0 : index
    %c0_64 = arith.constant 0 : index
    %44 = vector.load %arg4[%c0_63, %c0_64] : memref<256x128xbf16, #tpu.memory_space<vmem>>, vector<256x128xbf16>
    %cst_65 = arith.constant dense<0.000000e+00> : vector<256x128xf32>
    %45 = tpu.matmul %43, %44, %cst_65 {dimension_numbers = #tpu.dot_dimension_numbers<[1], [0], [0], [1], [0, 0, 1, 1], [], []>} : vector<256x256xbf16>, vector<256x128xbf16>, vector<256x128xf32> -> vector<256x128xf32>
    %c0_66 = arith.constant 0 : index
    %c0_67 = arith.constant 0 : index
    %46 = vector.load %arg5[%c0_66, %c0_67] : memref<1x128xf32, #tpu.memory_space<vmem>>, vector<1x128xf32>
    %47 = vector.broadcast %46 : vector<1x128xf32> to vector<256x128xf32>
    %48 = arith.addf %45, %47 : vector<256x128xf32>
    %cst_68 = arith.constant dense<0xFF800000> : vector<256xf32>
    %49 = vector.multi_reduction <maximumf>, %48, %cst_68 [1] : vector<256x128xf32> to vector<256xf32>
    %50 = vector.shape_cast %49 : vector<256xf32> to vector<256x1xf32>
    %51 = vector.broadcast %50 : vector<256x1xf32> to vector<256x128xf32>
    %52 = arith.subf %48, %51 : vector<256x128xf32>
    %53 = math.exp %52 : vector<256x128xf32>
    %cst_69 = arith.constant dense<0.000000e+00> : vector<256xf32>
    %54 = vector.multi_reduction <add>, %53, %cst_69 [1] : vector<256x128xf32> to vector<256xf32>
    %55 = vector.shape_cast %54 : vector<256xf32> to vector<256x1xf32>
    %56 = tpu.reciprocal %55 {approx = true} : vector<256x1xf32> -> vector<256x1xf32>
    %57 = vector.broadcast %56 : vector<256x1xf32> to vector<256x128xf32>
    %58 = arith.mulf %53, %57 : vector<256x128xf32>
    %59 = tpu.transpose %58, [1, 0] : vector<256x128xf32> -> vector<128x256xf32>
    %60 = vector.extract_strided_slice %59 {offsets = [0, 0], sizes = [8, 256], strides = [1, 1]} : vector<128x256xf32> to vector<8x256xf32>
    %61 = vector.shape_cast %60 : vector<8x256xf32> to vector<1x8x256xf32>
    %c0_70 = arith.constant 0 : index
    %c0_71 = arith.constant 0 : index
    %c0_72 = arith.constant 0 : index
    %62 = vector.load %arg6[%c0_70, %c0_71, %c0_72] : memref<1x8x256xf32, #tpu.memory_space<vmem>>, vector<1x8x256xf32>
    tpu.vector_store %arg6[%c0_70, %c0_71, %c0_72], %61 {strides = array<i32>} : memref<1x8x256xf32, #tpu.memory_space<vmem>>, vector<1x8x256xf32>,
    return
  }
  func.func @transform_0(%arg0: i32) -> (i32, i32, i32, i32) {
    %c0_i32 = arith.constant 0 : i32
    %c0_i32_0 = arith.constant 0 : i32
    %c0_i32_1 = arith.constant 0 : i32
    %c0_i32_2 = arith.constant 0 : i32
    return %arg0, %c0_i32, %c0_i32_0, %c0_i32_1 : i32, i32, i32, i32
  }
  func.func @transform_1(%arg0: i32) -> (i32, i32) {
    %c0_i32 = arith.constant 0 : i32
    %c0_i32_0 = arith.constant 0 : i32
    %c0_i32_1 = arith.constant 0 : i32
    return %c0_i32, %c0_i32_0 : i32, i32
  }
  func.func @transform_2(%arg0: i32) -> (i32, i32) {
    %c0_i32 = arith.constant 0 : i32
    %c0_i32_0 = arith.constant 0 : i32
    %c0_i32_1 = arith.constant 0 : i32
    return %c0_i32, %c0_i32_0 : i32, i32
  }
  func.func @transform_3(%arg0: i32) -> (i32, i32) {
    %c0_i32 = arith.constant 0 : i32
    %c0_i32_0 = arith.constant 0 : i32
    %c0_i32_1 = arith.constant 0 : i32
    return %c0_i32, %c0_i32_0 : i32, i32
  }
  func.func @transform_4(%arg0: i32) -> (i32, i32) {
    %c0_i32 = arith.constant 0 : i32
    %c0_i32_0 = arith.constant 0 : i32
    %c0_i32_1 = arith.constant 0 : i32
    return %c0_i32, %c0_i32_0 : i32, i32
  }
  func.func @transform_5(%arg0: i32) -> (i32, i32, i32) {
    %c0_i32 = arith.constant 0 : i32
    %c0_i32_0 = arith.constant 0 : i32
    %c0_i32_1 = arith.constant 0 : i32
    return %arg0, %c0_i32, %c0_i32_0 : i32, i32, i32
  }
}

</mosaic_0001>

<bundles_post_ra>
// kernel: resnet_forward.1
= control target key start
LH: loop header
LB: loop body
LE: loop exit
PB: predicated region body
PF: predicated region fallthrough
CT: control target
= control target key end

     0   :  { %s5377_s18 = smov 0   ;;  %s7745_s0 = inlined_call_operand.vmem [shape: bf16[2,16,16,4], index: 0, kind: input, shape index: {}]   ;;  %s7746_s1 = inlined_call_operand.vmem [shape: bf16[36,256], index: 1, kind: input, shape index: {}]   ;;  %s7747_s2 = inlined_call_operand.vmem [shape: f32[1,256], index: 2, kind: input, shape index: {}]   ;;  %s7748_s3 = inlined_call_operand.vmem [shape: bf16[256,128], index: 3, kind: input, shape index: {}]   ;;  %s7749_s4 = inlined_call_operand.vmem [shape: f32[1,128], index: 4, kind: input, shape index: {}]   ;;  %s7750_s5 = inlined_call_operand.vmem [shape: f32[2,8,256], index: 5, kind: output, shape index: {}]  }
   0x1 LB: > { %s4728_s19 = sadd.s32 4294967295, %s5336_s18   ;;  %p4732_p0 = scmp.ge.s32.totalorder %s5336_s18, 1  ;;  %s5336_s18 = sphi %s5377_s18, %s15_s18  }
   0x2   : > { %p187_p1 = scmp.lt.s32.totalorder %s5336_s18, 3 }
   0x4   : > { %p188_p2 = pnand %p4732_p0, %p187_p1 }
   0x5   : > { %vm226_vm0 = vcmask (!%p188_p2), 27648   ;;  %vm229_vm1 = vcmask (!%p188_p2), 24576   ;;  %vm237_vm2 = vsmask.f32 (!%p188_p2), 256  ;;  %v7751_v0 = vmov (!%p188_p2), 0   ;;  %p215_p3 = scmp.lt.s32.totalorder (!%p188_p2), %s4728_s19, 1 }
   0x6   : > { %191 = sbr.rel (%p188_p2) target bundleno = 1353 (0x549), region = 40  ;;  %227 = vst.msk [vmem:[#allocation2] sm:$0xf] (!%p188_p2), %vm226_vm0, %v7751_v0  ;;  %228 = vst.msk [vmem:[#allocation2 + $0x4] sm:$0xf] (!%p188_p2), %vm226_vm0, %v7751_v0  ;;  %3766 = vmatprep.mubr.bf16.mxu0 (!%p188_p2), %v7751_v0  ;;  %vm1304_vm6 = vcmask (!%p188_p2), 1042432  }
   0x7   : > { %230 = vst.msk [vmem:[#allocation2 + $0x8] sm:$0x1] (!%p188_p2), %vm229_vm1, %v7751_v0  ;;  %vm5391_vm3 = vmand (!%p188_p2), %vm229_vm1, %vm237_vm2  ;;  %vm287_vm4 = vsmask.f32 (!%p188_p2), 7938  ;;  %v239_v3 = vld [vmem:[#allocation2 + $0xc] sm:$0x1] (!%p188_p2) }
   0x8   : > { %232 = vst.msk [vmem:[#allocation2 + $0xcc] sm:$0xf] (!%p188_p2), %vm226_vm0, %v7751_v0  ;;  %233 = vst.msk [vmem:[#allocation2 + $0xd0] sm:$0xf] (!%p188_p2), %vm226_vm0, %v7751_v0  ;;  %vm1305_vm7 = vcmask (!%p188_p2), 1046532   ;;  %v240_v4 = vsel (!%p188_p2), %vm5391_vm3, 0, %v239_v3 }
   0x9   : > { %234 = vst.msk [vmem:[#allocation2 + $0xd4] sm:$0x1] (!%p188_p2), %vm229_vm1, %v7751_v0  ;;  %vm5402_vm5 = vmand (!%p188_p2), %vm229_vm1, %vm287_vm4  ;;  %v242_v5 = vld [vmem:[#allocation2 + $0x18] sm:$0x1] (!%p188_p2)  ;;  %v289_v7 = vld [vmem:[#allocation2 + $0x14] sm:$0x1] (!%p188_p2) }
   0xa   : > { %241 = vst [vmem:[#allocation2 + $0xc] sm:$0x1] (!%p188_p2), %v240_v4  ;;  %v243_v6 = vsel (!%p188_p2), %vm5391_vm3, 0, %v242_v5  ;;  %v245_v8 = vld [vmem:[#allocation2 + $0x24] sm:$0x1] (!%p188_p2)  ;;  %v290_v9 = vsel (!%p188_p2), %vm5402_vm5, 0, %v289_v7  ;;  %vm5421_vm9 = vmor (!%p188_p2), %vm1304_vm6, %vm1305_vm7 }
   0xb   : > { %vm853_vm8 = vsmask.f32 (!%p188_p2), 3328  ;;  %244 = vst [vmem:[#allocation2 + $0x18] sm:$0x1] (!%p188_p2), %v243_v6  ;;  %v246_v10 = vsel (!%p188_p2), %vm5391_vm3, 0, %v245_v8  ;;  %vm5441_vm12 = vmand (!%p188_p2), %vm226_vm0, %vm287_vm4  ;;  %s5339_s24 = smov (!%p188_p2), 8  }
   0xc   : > { %v292_v11 = vld [vmem:[#allocation2 + $0x20] sm:$0x1] (!%p188_p2)  ;;  %291 = vst [vmem:[#allocation2 + $0x14] sm:$0x1] (!%p188_p2), %v290_v9  ;;  %247 = vst [vmem:[#allocation2 + $0x24] sm:$0x1] (!%p188_p2), %v246_v10 }
   0xd   : > { %s7768_s19 = smov (!%p215_p3, %s4728_s19), 1  ;;  %v293_v12 = vsel %vm5402_vm5, 0, %v292_v11  ;;  %v295_v13 = vld [vmem:[#allocation2 + $0x2c] sm:$0x1]  ;;  %vm854_vm10 = vsmask.f32 7440 }
   0xe   : > { %s4971_s20 = sshll.u32 %s7768_s19, 7  ;;  %vm369_vm11 = vsmask.f32 4368  ;;  %294 = vst [vmem:[#allocation2 + $0x20] sm:$0x1] %v293_v12  ;;  %v296_v15 = vsel %vm5402_vm5, 0, %v295_v13  ;;  %vm5448_vm13 = vmor %vm853_vm8, %vm854_vm10 }
   0xf   : > { %s5428_s23 = scalar_lea.vmem %s7745_s0, %s4971_s20  ;;  %v806_v16 = vld [vmem:[#allocation2 + $0x4] sm:$0xf]  ;;  %v837_v17 = vld [vmem:[#allocation2 + $0x8] sm:$0x1]  ;;  %v1240_v18 = vld [vmem:[#allocation2] sm:$0xe] }
  0x10   : > { %297 = vst [vmem:[#allocation2 + $0x2c] sm:$0x1] %v296_v15  ;;  %v876_v19 = vshll.u32 %v837_v17, 16  ;;  %v4737_v20 = vrot.slane %v1240_v18, 9  ;;  %v1309_v21 = vrot.slane %v806_v16, 5  ;;  %v1312_v22 = vrot.slane %v837_v17, 5  ;;  %vm5455_vm14 = vmor %vm237_vm2, %vm369_vm11 }
  0x11   : > { %v805_v23 = vld [vmem:[#allocation2] sm:$0xf]  ;;  %v866_v26 = vshll.u32 %v806_v16, 16  ;;  %v870_v27 = vshrl.u32 %v806_v16, 16  ;;  %v338_v32 = vld [vmem:[%s5428_s23 + $0x4] sm:$0xf] }
  0x12   : > { %v857_v24 = vshrl.u32 %v805_v23, 16  ;;  %v860_v25 = vshll.u32 %v805_v23, 16  ;;  %v337_v28 = vld [vmem:[%s5428_s23] sm:$0xf]  ;;  %v1310_v29 = vsel %vm5421_vm9, %v4737_v20, %v1309_v21  ;;  %v1311_v30 = vrot.slane %v1309_v21, 4  ;;  %s5340_s25 = smov 4  }
  0x13   : > { %v878_v31 = vrot.slane %v876_v19, 5  ;;  %v372_v33 = vshrl.u32 %v337_v28, 16  ;;  %v868_v36 = vrot.slane %v866_v26, 5  ;;  %v872_v37 = vrot.slane %v870_v27, 4  ;;  %v339_v42 = vld [vmem:[%s5428_s23 + $0x8] sm:$0xf] }
  0x14   : > { %v859_v34 = vrot.slane %v857_v24, 4  ;;  %v862_v35 = vrot.slane %v860_v25, 5  ;;  %v1313_v38 = vsel %vm5421_vm9, %v1311_v30, %v1312_v22  ;;  %v375_v40 = vshll.u32 %v337_v28, 16  ;;  %v693_v48 = vld [vmem:[#allocation2 + $0xc] sm:$0xf]  ;;  %s5341_s26 = smov 12  }
  0x15   : > { %v374_v39 = vrot.slane %v372_v33, 7  ;;  %v380_v41 = vshrl.u32 %v338_v32, 16  ;;  %v4817_v44 = vcombine.low %v1310_v29, %v1313_v38  ;;  %v873_v46 = vor.u32 %v872_v37, %v868_v36  ;;  %v340_v49 = vld [vmem:[%s5428_s23 + $0xc] sm:$0xf]  ;;  %v697_v3 = vld [vmem:[#allocation2 + $0x14] sm:$0x1] }
  0x16   : > { %v863_v45 = vor.u32 %v862_v35, %v859_v34  ;;  %v383_v47 = vshll.u32 %v338_v32, 16  ;;  %v389_v54 = vshrl.u32 %v339_v42, 16  ;;  %v392_v58 = vshll.u32 %v339_v42, 16  ;;  %v341_v4 = vld [vmem:[%s5428_s23 + $0x10] sm:$0xf]  ;;  %s5342_s27 = smov 24  }
  0x17   : > { %v377_v51 = vor.u32 %v375_v40, %v374_v39  ;;  %v378_v52 = vrot.slane %v374_v39, 4  ;;  %v382_v53 = vrot.slane %v380_v41, 7  ;;  %2828 = vrot.lane.b32.xlu0 %v4817_v44, %s5339_s24  ;;  %v874_v56 = vrot.slane %v873_v46, 4  ;;  %v700_v9 = vld [vmem:[#allocation2 + $0x18] sm:$0xf]  ;;  %s5343_s28 = smov 20  }
  0x18   : > { %v864_v55 = vrot.slane %v863_v45, 4  ;;  %v397_v59 = vshrl.u32 %v340_v49, 16  ;;  %v391_v63 = vrot.slane %v389_v54, 7  ;;  %v400_v8 = vshll.u32 %v340_v49, 16  ;;  %v342_v10 = vld [vmem:[%s5428_s23 + $0x14] sm:$0xf] }
  0x19   : > { %v385_v60 = vor.u32 %v383_v47, %v382_v53  ;;  %v387_v61 = vrot.slane %v382_v53, 4  ;;  %v694_v62 = vsel %vm5441_vm12, %v377_v51, %v693_v48  ;;  %v879_v6 = vsel %vm5448_vm13, %v874_v56, %v878_v31  ;;  %v704_v16 = vld [vmem:[#allocation2 + $0x20] sm:$0x1]  ;;  %v248_v17 = vld [vmem:[#allocation2 + $0x30] sm:$0x1]  ;;  %s5344_s29 = smov 32  }
  0x1a   : > { %v869_v5 = vsel %vm5448_vm13, %v864_v55, %v868_v36  ;;  %695 = vst [vmem:[#allocation2 + $0xc] sm:$0xf] %v694_v62  ;;  %v399_v7 = vrot.slane %v397_v59, 7  ;;  %v394_v13 = vor.u32 %v392_v58, %v391_v63  ;;  %v395_v15 = vrot.slane %v391_v63, 4  ;;  %v343_v22 = vld [vmem:[%s5428_s23 + $0x18] sm:$0xf] }
  0x1b   : > { %v4801_v11 = vcombine.low %v869_v5, %v879_v6  ;;  %v386_v12 = vsel %vm5455_vm14, %v378_v52, %v385_v60  ;;  %v698_v20 = vsel %vm5391_vm3, %v387_v61, %v697_v3  ;;  %v406_v21 = vshrl.u32 %v341_v4, 16  ;;  %v298_v23 = vld [vmem:[#allocation2 + $0x38] sm:$0x1]  ;;  %v5477_v28 = vld [vmem:[%s5428_s23 + $0x1c] sm:$0xf]  ;;  %s5345_s30 = smov 28  }
  0x1c   : > { %696 = vst.msk [vmem:[#allocation2 + $0x10] sm:$0xf] %vm226_vm0, %v386_v12  ;;  %v402_v18 = vor.u32 %v400_v8, %v399_v7  ;;  %v404_v19 = vrot.slane %v399_v7, 4  ;;  %v701_v24 = vsel %vm5441_vm12, %v394_v13, %v700_v9  ;;  %699 = vst [vmem:[#allocation2 + $0x14] sm:$0x1] %v698_v20  ;;  %v409_v25 = vshll.u32 %v341_v4, 16 }
  0x1d   : > { %2748 = vrot.lane.b32.xlu0 %v4801_v11, %s5340_s25  ;;  %v414_v26 = vshrl.u32 %v342_v10, 16  ;;  %v417_v27 = vshll.u32 %v342_v10, 16  ;;  %702 = vst [vmem:[#allocation2 + $0x18] sm:$0xf] %v701_v24  ;;  %v408_v30 = vrot.slane %v406_v21, 7  ;;  %v249_v32 = vsel %vm5391_vm3, 0, %v248_v17 }
  0x1e   : > { %v403_v29 = vsel %vm5455_vm14, %v395_v15, %v402_v18  ;;  %v705_v31 = vsel %vm5391_vm3, %v404_v19, %v704_v16  ;;  %v707_v34 = vld [vmem:[#allocation2 + $0x24] sm:$0xf]  ;;  %250 = vst [vmem:[#allocation2 + $0x30] sm:$0x1] %v249_v32  ;;  %v423_v35 = vshrl.u32 %v343_v22, 16  ;;  %v426_v36 = vshll.u32 %v343_v22, 16 }
  0x1f   : > { %703 = vst.msk [vmem:[#allocation2 + $0x1c] sm:$0xf] %vm226_vm0, %v403_v29  ;;  %v416_v33 = vrot.slane %v414_v26, 7  ;;  %706 = vst [vmem:[#allocation2 + $0x20] sm:$0x1] %v705_v31  ;;  %v411_v37 = vor.u32 %v409_v25, %v408_v30  ;;  %v412_v38 = vrot.slane %v408_v30, 4 }
  0x20   : > { %v711_v39 = vld [vmem:[#allocation2 + $0x2c] sm:$0x1]  ;;  %v431_v40 = vshrl.u32 %v5477_v28, 16  ;;  %v299_v41 = vsel %vm5402_vm5, 0, %v298_v23  ;;  %v5489_v47 = vrot.slane %v423_v35, 7  ;;  %v434_v53 = vshll.u32 %v5477_v28, 16 }
  0x21   : > { %v1419_v42 = vld [vmem:[#allocation2 + $0xc] sm:$0xf]  ;;  %v419_v45 = vor.u32 %v417_v27, %v416_v33  ;;  %v421_v46 = vrot.slane %v416_v33, 4  ;;  %300 = vst [vmem:[#allocation2 + $0x38] sm:$0x1] %v299_v41  ;;  %v708_v51 = vsel %vm5441_vm12, %v411_v37, %v707_v34  ;;  %s5346_s6 = smov 16  }
  0x22   : > { %v1851_v44 = vld [vmem:[#allocation2 + $0xc] sm:$0xe]  ;;  %v1468_v48 = vshrl.u32 %v1419_v42, 16  ;;  %v1471_v49 = vshll.u32 %v1419_v42, 16  ;;  %709 = vst [vmem:[#allocation2 + $0x24] sm:$0xf] %v708_v51  ;;  %v5511_v8 = vor.u32 %v426_v36, %v5489_v47 }
  0x23   : > { %v5493_v52 = vld [vmem:[#allocation2 + $0xc] sm:$0xe]  ;;  %v5496_v54 = vld [vmem:[#allocation2 + $0x10] sm:$0xf]  ;;  %v4753_v55 = vrot.slane %v1851_v44, 9  ;;  %v420_v56 = vsel %vm5455_vm14, %v412_v38, %v419_v45  ;;  %v712_v59 = vsel %vm5391_vm3, %v421_v46, %v711_v39  ;;  %vm3372_vm15 = vcmask 31744  }
  0x24   : > { %v4738_v58 = vrot.slane %v5493_v52, 9  ;;  %v1477_v60 = vshll.u32 %v5496_v54, 16  ;;  %v1481_v61 = vshrl.u32 %v5496_v54, 16  ;;  %v4833_v62 = vcombine.low %v1419_v42, %v5496_v54  ;;  %710 = vst.msk [vmem:[#allocation2 + $0x28] sm:$0xf] %vm226_vm0, %v420_v56  ;;  %v5159_v1 = vld [vmem:[%s7748_s3 + $0x48] sm:$0xff]  }
  0x25   : > { %v1470_v63 = vrot.slane %v1468_v48, 4  ;;  %713 = vst [vmem:[#allocation2 + $0x2c] sm:$0x1] %v712_v59  ;;  %v1473_v3 = vrot.slane %v1471_v49, 5  ;;  %v1421_v4 = vld [vmem:[#allocation2 + $0x18] sm:$0xf] }
  0x26   : > { %v2028_v5 = vld [vmem:[#allocation2 + $0x18] sm:$0xf]  ;;  %v5507_v6 = vld [vmem:[#allocation2 + $0x14] sm:$0x1]  ;;  %v1917_v7 = vrot.slane %v5496_v54, 5  ;;  %v5513_v9 = vrot.slane %v1481_v61, 4  ;;  %2924 = vrot.lane.b32.xlu1 %v4833_v62, %s5341_s26 }
  0x27   : > { %v5516_v10 = vld [vmem:[#allocation2 + $0x1c] sm:$0xf]  ;;  %v1492_v11 = vshrl.u32 %v1421_v4, 16  ;;  %v1495_v12 = vshll.u32 %v1421_v4, 16  ;;  %v2077_v13 = vshrl.u32 %v2028_v5, 16  ;;  %v1474_v15 = vor.u32 %v1473_v3, %v1470_v63  ;;  %s4972_s17 = sshll.u32 %s7768_s19, 4 }
  0x28   : > { %v1505_v16 = vshrl.u32 %v5516_v10, 16  ;;  %v4834_v17 = vcombine.low %v1421_v4, %v5516_v10  ;;  %v2029_v18 = vld [vmem:[#allocation2 + $0x1c] sm:$0xf]  ;;  %v2080_v19 = vshll.u32 %v2028_v5, 16  ;;  %v5520_v20 = vld [vmem:[#allocation2 + $0x20] sm:$0x1]  ;;  %v1918_v30 = vsel %vm5421_vm9, %v4753_v55, %v1917_v7  ;;  %s224_s22 = scalar_lea.vmem %s7750_s5, %s4972_s17 }
  0x29   : > { %v5522_v21 = vrot.slane %v1492_v11, 4  ;;  %v5524_v22 = vrot.slane %v1495_v12, 5  ;;  %v2079_v23 = vrot.slane %v2077_v13, 4  ;;  %v2090_v24 = vshrl.u32 %v2029_v18, 16  ;;  %v1852_v25 = vld [vmem:[#allocation2 + $0x18] sm:$0xe] }
  0x2a   : > { %v5526_v26 = vrot.slane %v1474_v15, 4  ;;  %2926 = vrot.lane.b32.xlu0 %v4834_v17, %s5341_s26  ;;  %v2082_v27 = vrot.slane %v2080_v19, 5  ;;  %v4881_v29 = vcombine.low %v2028_v5, %v2029_v18  ;;  %v2060_v31 = vld [vmem:[#allocation2 + $0x20] sm:$0x1]  ;;  %v2460_v32 = vld [vmem:[#allocation2 + $0x18] sm:$0xe] }
  0x2b   : > { %v1919_v33 = vrot.slane %v1917_v7, 4  ;;  %v1920_v34 = vrot.slane %v5507_v6, 5  ;;  %v2030_v35 = vld [vmem:[#allocation2 + $0x24] sm:$0xf]  ;;  %v4754_v36 = vrot.slane %v1852_v25, 9  ;;  %v1924_v37 = vrot.slane %v5516_v10, 5 }
  0x2c   : > { %3180 = vrot.lane.b32.xlu1 %v4881_v29, %s5342_s27  ;;  %v5534_v38 = vld [vmem:[#allocation2 + $0x28] sm:$0xf]  ;;  %v2101_v39 = vshrl.u32 %v2030_v35, 16  ;;  %v2104_v41 = vshll.u32 %v2030_v35, 16  ;;  %v1927_v42 = vrot.slane %v5520_v20, 5  ;;  %v4769_v44 = vrot.slane %v2460_v32, 9 }
  0x2d   : > { %v1921_v45 = vsel %vm5421_vm9, %v1919_v33, %v1920_v34  ;;  %v2114_v46 = vshrl.u32 %v5534_v38, 16  ;;  %v4882_v48 = vcombine.low %v2030_v35, %v5534_v38  ;;  %v1925_v49 = vsel %vm5421_vm9, %v4754_v36, %v1924_v37  ;;  %v808_v61 = vld [vmem:[#allocation2 + $0x10] sm:$0xf]  ;;  %v838_v5 = vld [vmem:[#allocation2 + $0x14] sm:$0x1] }
  0x2e   : > { %v4865_v51 = vcombine.low %v1918_v30, %v1921_v45  ;;  %v2103_v55 = vrot.slane %v2101_v39, 4  ;;  %v2106_v56 = vrot.slane %v2104_v41, 5  ;;  %v1926_v59 = vrot.slane %v1924_v37, 4  ;;  %v807_v15 = vld [vmem:[#allocation2 + $0xc] sm:$0xf] }
  0x2f   : > { %v2526_v62 = vrot.slane %v2029_v18, 5  ;;  %v2529_v63 = vrot.slane %v2060_v31, 5  ;;  %v2083_v3 = vor.u32 %v2082_v27, %v2079_v23  ;;  %v2086_v4 = vshll.u32 %v2029_v18, 16  ;;  %v2461_v39 = vld [vmem:[#allocation2 + $0x24] sm:$0xe] }
  0x30   : > { %3084 = vrot.lane.b32.xlu0 %v4865_v51, %s5343_s28  ;;  %3182 = vrot.lane.b32.xlu1 %v4882_v48, %s5342_s27  ;;  %v1928_v7 = vsel %vm5421_vm9, %v1926_v59, %v1927_v42  ;;  %v2092_v11 = vrot.slane %v2090_v24, 4  ;;  %v2096_v12 = vshll.u32 %v2060_v31, 16  ;;  %v1316_v13 = vrot.slane %v808_v61, 5 }
  0x31   : > { %v4866_v17 = vcombine.low %v1925_v49, %v1928_v7  ;;  %v2527_v19 = vsel %vm5421_vm9, %v4769_v44, %v2526_v62  ;;  %v2528_v25 = vrot.slane %v2526_v62, 4  ;;  %v2084_v23 = vrot.slane %v2083_v3, 4  ;;  %v2061_v44 = vld [vmem:[#allocation2 + $0x2c] sm:$0x1] }
  0x32   : > { %v2088_v18 = vrot.slane %v2086_v4, 5  ;;  %v2098_v27 = vrot.slane %v2096_v12, 5  ;;  %v1317_v29 = vsel %vm5421_vm9, %v4738_v58, %v1316_v13  ;;  %v1318_v30 = vrot.slane %v1316_v13, 4 }
  0x33   : > { %v2530_v24 = vsel %vm5421_vm9, %v2528_v25, %v2529_v63  ;;  %v1319_v31 = vrot.slane %v838_v5, 5  ;;  %v881_v32 = vshrl.u32 %v807_v15, 16  ;;  %v884_v33 = vshll.u32 %v807_v15, 16  ;;  %v839_v25 = vld [vmem:[#allocation2 + $0x20] sm:$0x1] }
  0x34   : > { %3086 = vrot.lane.b32.xlu0 %v4866_v17, %s5343_s28  ;;  %v4913_v34 = vcombine.low %v2527_v19, %v2530_v24  ;;  %v2089_v35 = vsel %vm5448_vm13, %v2084_v23, %v2088_v18  ;;  %v2093_v36 = vor.u32 %v2092_v11, %v2088_v18  ;;  %v890_v37 = vshll.u32 %v808_v61, 16  ;;  %v810_v24 = vld [vmem:[#allocation2 + $0x1c] sm:$0xf] }
  0x35   : > { %v1320_v52 = vsel %vm5421_vm9, %v1318_v30, %v1319_v31  ;;  %v883_v58 = vrot.slane %v881_v32, 4  ;;  %v886_v41 = vrot.slane %v884_v33, 5  ;;  %v894_v42 = vshrl.u32 %v808_v61, 16  ;;  %v1242_v61 = vld [vmem:[#allocation2 + $0x18] sm:$0xe] }
  0x36   : > { %3340 = vrot.lane.b32.xlu1 %v4913_v34, %s5344_s29  ;;  %v2094_v45 = vrot.slane %v2093_v36, 4  ;;  %v4818_v48 = vcombine.low %v1317_v29, %v1320_v52  ;;  %v892_v49 = vrot.slane %v890_v37, 5  ;;  %v900_v51 = vshll.u32 %v838_v5, 16  ;;  %v809_v29 = vld [vmem:[#allocation2 + $0x18] sm:$0xf] }
  0x37   : > { %v887_v59 = vor.u32 %v886_v41, %v883_v58  ;;  %v896_v62 = vrot.slane %v894_v42, 4  ;;  %v4770_v63 = vrot.slane %v2461_v39, 9  ;;  %v2533_v3 = vrot.slane %v5534_v38, 5 }
  0x38   : > { %v2099_v4 = vsel %vm5448_vm13, %v2094_v45, %v2098_v27  ;;  %v902_v7 = vrot.slane %v900_v51, 5  ;;  %v2536_v11 = vrot.slane %v2061_v44, 5  ;;  %v2107_v12 = vor.u32 %v2106_v56, %v2103_v55 }
  0x39   : > { %v4897_v13 = vcombine.low %v2089_v35, %v2099_v4  ;;  %v888_v15 = vrot.slane %v887_v59, 4  ;;  %v897_v17 = vor.u32 %v896_v62, %v892_v49  ;;  %v2534_v19 = vsel %vm5421_vm9, %v4770_v63, %v2533_v3  ;;  %v5585_v63 = vld [vmem:[#allocation2 + $0x24] sm:$0xf] }
  0x3a   : > { %2830 = vrot.lane.b32.xlu1 %v4818_v48, %s5339_s24  ;;  %v2535_v5 = vrot.slane %v2533_v3, 4  ;;  %v2108_v23 = vrot.slane %v2107_v12, 4  ;;  %v2110_v18 = vshll.u32 %v5534_v38, 16  ;;  %v2116_v27 = vrot.slane %v2114_v46, 4 }
  0x3b   : > { %3260 = vrot.lane.b32.xlu0 %v4897_v13, %s5345_s30  ;;  %v893_v55 = vsel %vm5448_vm13, %v888_v15, %v892_v49  ;;  %v898_v56 = vrot.slane %v897_v17, 4  ;;  %v2120_v30 = vshll.u32 %v2061_v44, 16  ;;  %v4739_v31 = vrot.slane %v1242_v61, 9  ;;  %v1424_v17 = vld [vmem:[#allocation2 + $0x28] sm:$0xf] }
  0x3c   : > { %v2537_v32 = vsel %vm5421_vm9, %v2535_v5, %v2536_v11  ;;  %v2112_v33 = vrot.slane %v2110_v18, 5  ;;  %v1323_v34 = vrot.slane %v810_v24, 5  ;;  %v1326_v35 = vrot.slane %v839_v25, 5 }
  0x3d   : > { %v903_v38 = vsel %vm5448_vm13, %v898_v56, %v902_v7  ;;  %v4914_v46 = vcombine.low %v2534_v19, %v2537_v32  ;;  %v2122_v36 = vrot.slane %v2120_v30, 5  ;;  %v905_v37 = vshrl.u32 %v809_v29, 16  ;;  %v1453_v30 = vld [vmem:[#allocation2 + $0x2c] sm:$0x1] }
  0x3e   : > { %v4802_v39 = vcombine.low %v893_v55, %v903_v38  ;;  %v2113_v52 = vsel %vm5448_vm13, %v2108_v23, %v2112_v33  ;;  %v2117_v58 = vor.u32 %v2116_v27, %v2112_v33  ;;  %v1324_v41 = vsel %vm5421_vm9, %v4739_v31, %v1323_v34 }
  0x3f   : > { %3342 = vrot.lane.b32.xlu1 %v4914_v46, %s5344_s29  ;;  %v1325_v42 = vrot.slane %v1323_v34, 4  ;;  %v907_v44 = vrot.slane %v905_v37, 4  ;;  %v908_v45 = vshll.u32 %v809_v29, 16  ;;  %v914_v48 = vshll.u32 %v810_v24, 16 }
  0x40   : > { %2750 = vrot.lane.b32.xlu0 %v4802_v39, %s5340_s25  ;;  %v2118_v49 = vrot.slane %v2117_v58, 4  ;;  %v918_v51 = vshrl.u32 %v810_v24, 16  ;;  %v924_v59 = vshll.u32 %v839_v25, 16  ;;  %v1479_v62 = vrot.slane %v1477_v60, 5  ;;  %v1853_v24 = vld [vmem:[#allocation2 + $0x24] sm:$0xe] }
  0x41   : > { %v1327_v3 = vsel %vm5421_vm9, %v1325_v42, %v1326_v35  ;;  %v910_v4 = vrot.slane %v908_v45, 5  ;;  %v916_v7 = vrot.slane %v914_v48, 5  ;;  %v1487_v11 = vshll.u32 %v5507_v6, 16  ;;  %v811_v42 = vld [vmem:[#allocation2 + $0x24] sm:$0xf] }
  0x42   : > { %v2123_v12 = vsel %vm5448_vm13, %v2118_v49, %v2122_v36  ;;  %v4819_v61 = vcombine.low %v1324_v41, %v1327_v3  ;;  %v920_v13 = vrot.slane %v918_v51, 4  ;;  %v926_v15 = vrot.slane %v924_v59, 5  ;;  %v714_v41 = vld [vmem:[#allocation2 + $0x30] sm:$0xf] }
  0x43   : > { %v4898_v19 = vcombine.low %v2113_v52, %v2123_v12  ;;  %v911_v25 = vor.u32 %v910_v4, %v907_v44  ;;  %v1480_v54 = vsel %vm5448_vm13, %v5526_v26, %v1479_v62  ;;  %v1484_v60 = vor.u32 %v5513_v9, %v1479_v62  ;;  %v718_v4 = vld [vmem:[#allocation2 + $0x38] sm:$0x1] }
  0x44   : > { %2832 = vrot.lane.b32.xlu1 %v4819_v61, %s5339_s24  ;;  %v921_v5 = vor.u32 %v920_v13, %v916_v7  ;;  %v1489_v23 = vrot.slane %v1487_v11, 5  ;;  %v1516_v6 = vshrl.u32 %v5585_v63, 16  ;;  %v1519_v18 = vshll.u32 %v5585_v63, 16  ;;  %v812_v13 = vld [vmem:[#allocation2 + $0x28] sm:$0xf] }
  0x45   : > { %3262 = vrot.lane.b32.xlu0 %v4898_v19, %s5345_s30  ;;  %v912_v27 = vrot.slane %v911_v25, 4  ;;  %v1485_v29 = vrot.slane %v1484_v60, 4  ;;  %v1529_v55 = vshrl.u32 %v1424_v17, 16  ;;  %v4835_v56 = vcombine.low %v5585_v63, %v1424_v17  ;;  %v840_v25 = vld [vmem:[#allocation2 + $0x2c] sm:$0x1] }
  0x46   : > { %v922_v26 = vrot.slane %v921_v5, 4  ;;  %v1518_v31 = vrot.slane %v1516_v6, 4  ;;  %v1521_v9 = vrot.slane %v1519_v18, 5  ;;  %v1498_v32 = vor.u32 %v5524_v22, %v5522_v21  ;;  %v251_v6 = vld [vmem:[#allocation2 + $0x3c] sm:$0x1] }
  0x47   : > { %v917_v33 = vsel %vm5448_vm13, %v912_v27, %v916_v7  ;;  %v1490_v34 = vsel %vm5448_vm13, %v1485_v29, %v1489_v23  ;;  %v1501_v35 = vshll.u32 %v5516_v10, 16  ;;  %v1507_v38 = vrot.slane %v1505_v16, 4  ;;  %v1243_v23 = vld [vmem:[#allocation2 + $0x24] sm:$0xe] }
  0x48   : > { %v927_v46 = vsel %vm5448_vm13, %v922_v26, %v926_v15  ;;  %v4849_v36 = vcombine.low %v1480_v54, %v1490_v34  ;;  %v1499_v37 = vrot.slane %v1498_v32, 4  ;;  %v1511_v39 = vshll.u32 %v5520_v20, 16 }
  0x49   : > { %v4803_v52 = vcombine.low %v917_v33, %v927_v46  ;;  %v1503_v21 = vrot.slane %v1501_v35, 5  ;;  %v1522_v22 = vor.u32 %v1521_v9, %v1518_v31  ;;  %v1525_v58 = vshll.u32 %v1424_v17, 16 }
  0x4a   : > { %3004 = vrot.lane.b32.xlu1 %v4849_v36, %s5346_s6  ;;  %v1513_v44 = vrot.slane %v1511_v39, 5  ;;  %v1531_v45 = vrot.slane %v1529_v55, 4  ;;  %v1535_v10 = vshll.u32 %v1453_v30, 16  ;;  %v4755_v16 = vrot.slane %v1853_v24, 9  ;;  %v5646_v36 = vld [vmem:[%s5428_s23 + $0x20] sm:$0xf] }
  0x4b   : > { %2752 = vrot.lane.b32.xlu0 %v4803_v52, %s5340_s25  ;;  %v1504_v48 = vsel %vm5448_vm13, %v1499_v37, %v1503_v21  ;;  %v1508_v49 = vor.u32 %v1507_v38, %v1503_v21  ;;  %v1523_v20 = vrot.slane %v1522_v22, 4  ;;  %v1527_v51 = vrot.slane %v1525_v58, 5 }
  0x4c   : > { %v1537_v59 = vrot.slane %v1535_v10, 5  ;;  %v1931_v62 = vrot.slane %v1424_v17, 5  ;;  %v1934_v63 = vrot.slane %v1453_v30, 5  ;;  %v429_v3 = vrot.slane %v5489_v47, 4 }
  0x4d   : > { %v1509_v7 = vrot.slane %v1508_v49, 4  ;;  %v1528_v11 = vsel %vm5448_vm13, %v1523_v20, %v1527_v51  ;;  %v1532_v12 = vor.u32 %v1531_v45, %v1527_v51  ;;  %v433_v61 = vrot.slane %v431_v40, 7 }
  0x4e   : > { %v1932_v15 = vsel %vm5421_vm9, %v4755_v16, %v1931_v62  ;;  %v1933_v19 = vrot.slane %v1931_v62, 4  ;;  %v715_v17 = vsel %vm5441_vm12, %v5511_v8, %v714_v41  ;;  %v929_v47 = vshrl.u32 %v811_v42, 16 }
  0x4f   : > { %2928 = vrot.lane.b32.xlu0 %v4835_v56, %s5341_s26  ;;  %v1514_v54 = vsel %vm5448_vm13, %v1509_v7, %v1513_v44  ;;  %v1533_v60 = vrot.slane %v1532_v12, 4  ;;  %v436_v40 = vor.u32 %v434_v53, %v433_v61  ;;  %v438_v5 = vrot.slane %v433_v61, 4  ;;  %716 = vst [vmem:[#allocation2 + $0x30] sm:$0xf] %v715_v17 }
  0x50   : > { %v4850_v18 = vcombine.low %v1504_v48, %v1514_v54  ;;  %v1935_v27 = vsel %vm5421_vm9, %v1933_v19, %v1934_v63  ;;  %v931_v8 = vrot.slane %v929_v47, 4  ;;  %v932_v29 = vshll.u32 %v811_v42, 16 }
  0x51   : > { %v1538_v55 = vsel %vm5448_vm13, %v1533_v60, %v1537_v59  ;;  %v4867_v56 = vcombine.low %v1932_v15, %v1935_v27  ;;  %v437_v30 = vsel %vm5455_vm14, %v429_v3, %v436_v40  ;;  %v719_v28 = vsel %vm5391_vm3, %v438_v5, %v718_v4 }
  0x52   : > { %3006 = vrot.lane.b32.xlu1 %v4850_v18, %s5346_s6  ;;  %v4851_v53 = vcombine.low %v1528_v11, %v1538_v55  ;;  %717 = vst.msk [vmem:[#allocation2 + $0x34] sm:$0xf] %vm226_vm0, %v437_v30  ;;  %720 = vst [vmem:[#allocation2 + $0x38] sm:$0x1] %v719_v28  ;;  %v934_v24 = vrot.slane %v932_v29, 5  ;;  %v938_v26 = vshll.u32 %v812_v13, 16 }
  0x53   : > { %v942_v31 = vshrl.u32 %v812_v13, 16  ;;  %3088 = vrot.lane.b32.xlu0 %v4867_v56, %s5343_s28  ;;  %v948_v9 = vshll.u32 %v840_v25, 16  ;;  %v4740_v32 = vrot.slane %v1243_v23, 9  ;;  %v1330_v33 = vrot.slane %v812_v13, 5 }
  0x54   : > { %v935_v34 = vor.u32 %v934_v24, %v931_v8  ;;  %v940_v35 = vrot.slane %v938_v26, 5  ;;  %v252_v46 = vsel %vm5391_vm3, 0, %v251_v6  ;;  %v1333_v39 = vrot.slane %v840_v25, 5 }
  0x55   : > { %v944_v38 = vrot.slane %v942_v31, 4  ;;  %v1332_v37 = vrot.slane %v1330_v33, 4  ;;  %253 = vst [vmem:[#allocation2 + $0x3c] sm:$0x1] %v252_v46  ;;  %v950_v41 = vrot.slane %v948_v9, 5  ;;  %v5651_v45 = vsel %vm5421_vm9, %v4740_v32, %v1330_v33 }
  0x56   : > { %3008 = vrot.lane.b32.xlu1 %v4851_v53, %s5346_s6  ;;  %v2032_v52 = vld [vmem:[#allocation2 + $0x30] sm:$0xf]  ;;  %v936_v22 = vrot.slane %v935_v34, 4  ;;  %v440_v16 = vshrl.u32 %v5646_v36, 16  ;;  %v443_v51 = vshll.u32 %v5646_v36, 16  ;;  %vm3421_vm1 = vcmask 64512  }
  0x57   : > { %v2462_v21 = vld [vmem:[#allocation2 + $0x30] sm:$0xe]  ;;  %v945_v58 = vor.u32 %v944_v38, %v940_v35  ;;  %v2125_v42 = vshrl.u32 %v2032_v52, 16  ;;  %v2128_v44 = vshll.u32 %v2032_v52, 16  ;;  %v1334_v7 = vsel %vm5421_vm9, %v1332_v37, %v1333_v39  ;;  %v346_v37 = vld [vmem:[%s5428_s23 + $0x24] sm:$0xf] }
  0x58   : > { %v5653_v10 = vld [vmem:[#allocation2 + $0x30] sm:$0xf]  ;;  %v4771_v48 = vrot.slane %v2462_v21, 9  ;;  %v941_v4 = vsel %vm5448_vm13, %v936_v22, %v940_v35  ;;  %v4820_v5 = vcombine.low %v5651_v45, %v1334_v7  ;;  %v442_v22 = vrot.slane %v440_v16, 7 }
  0x59   : > { %v946_v49 = vrot.slane %v945_v58, 4  ;;  %v1540_v20 = vshrl.u32 %v5653_v10, 16  ;;  %v2033_v59 = vld [vmem:[#allocation2 + $0x34] sm:$0xf]  ;;  %v2127_v62 = vrot.slane %v2125_v42, 4  ;;  %v2130_v63 = vrot.slane %v2128_v44, 5 }
  0x5a   : > { %v2062_v3 = vld [vmem:[#allocation2 + $0x38] sm:$0x1]  ;;  %v2138_v11 = vshrl.u32 %v2033_v59, 16  ;;  %v4883_v12 = vcombine.low %v2032_v52, %v2033_v59  ;;  %v2134_v61 = vshll.u32 %v2033_v59, 16  ;;  %v2540_v19 = vrot.slane %v2033_v59, 5 }
  0x5b   : > { %v2144_v13 = vshll.u32 %v2062_v3, 16  ;;  %v2131_v15 = vor.u32 %v2130_v63, %v2127_v62  ;;  %v2543_v17 = vrot.slane %v2062_v3, 5  ;;  %v951_v25 = vsel %vm5448_vm13, %v946_v49, %v950_v41  ;;  %v5664_v47 = vld [vmem:[#allocation2 + $0x34] sm:$0xf]  ;;  %v1454_v23 = vld [vmem:[#allocation2 + $0x38] sm:$0x1] }
  0x5c   : > { %3184 = vrot.lane.b32.xlu1 %v4883_v12, %s5342_s27  ;;  %v2136_v54 = vrot.slane %v2134_v61, 5  ;;  %v2140_v60 = vrot.slane %v2138_v11, 4  ;;  %v2541_v18 = vsel %vm5421_vm9, %v4771_v48, %v2540_v19  ;;  %v2542_v27 = vrot.slane %v2540_v19, 4  ;;  %v1854_v29 = vld [vmem:[#allocation2 + $0x30] sm:$0xe] }
  0x5d   : > { %v2146_v40 = vrot.slane %v2144_v13, 5  ;;  %v2132_v6 = vrot.slane %v2131_v15, 4  ;;  %v4804_v8 = vcombine.low %v941_v4, %v951_v25  ;;  %v1542_v56 = vrot.slane %v1540_v20, 4  ;;  %v301_v58 = vld [vmem:[#allocation2 + $0x44] sm:$0x1] }
  0x5e   : > { %v2141_v55 = vor.u32 %v2140_v60, %v2136_v54  ;;  %v1543_v30 = vshll.u32 %v5653_v10, 16  ;;  %v1553_v28 = vshrl.u32 %v5664_v47, 16  ;;  %v2544_v24 = vsel %vm5421_vm9, %v2542_v27, %v2543_v17  ;;  %v721_v48 = vld [vmem:[#allocation2 + $0x3c] sm:$0xf]  ;;  %v813_v63 = vld [vmem:[#allocation2 + $0x30] sm:$0xf] }
  0x5f   : > { %v2137_v53 = vsel %vm5448_vm13, %v2132_v6, %v2136_v54  ;;  %v1549_v26 = vshll.u32 %v5664_v47, 16  ;;  %v1559_v31 = vshll.u32 %v1454_v23, 16  ;;  %v4915_v32 = vcombine.low %v2541_v18, %v2544_v24  ;;  %v814_v3 = vld [vmem:[#allocation2 + $0x34] sm:$0xf]  ;;  %v841_v15 = vld [vmem:[#allocation2 + $0x38] sm:$0x1] }
  0x60   : > { %v2142_v9 = vrot.slane %v2141_v55, 4  ;;  %v1545_v33 = vrot.slane %v1543_v30, 5  ;;  %v1555_v34 = vrot.slane %v1553_v28, 4  ;;  %v4836_v35 = vcombine.low %v5653_v10, %v5664_v47  ;;  %v1244_v60 = vld [vmem:[#allocation2 + $0x30] sm:$0xe] }
  0x61   : > { %v1551_v38 = vrot.slane %v1549_v26, 5  ;;  %v4756_v46 = vrot.slane %v1854_v29, 9  ;;  %v1938_v36 = vrot.slane %v5664_v47, 5  ;;  %3344 = vrot.lane.b32.xlu1 %v4915_v32, %s5344_s29  ;;  %v1941_v21 = vrot.slane %v1454_v23, 5  ;;  %v254_v18 = vld [vmem:[#allocation2 + $0x48] sm:$0x1] }
  0x62   : > { %v2147_v39 = vsel %vm5448_vm13, %v2142_v9, %v2146_v40  ;;  %v1546_v52 = vor.u32 %v1545_v33, %v1542_v56  ;;  %v1561_v44 = vrot.slane %v1559_v31, 5  ;;  %v445_v59 = vor.u32 %v443_v51, %v442_v22  ;;  %v347_v30 = vld [vmem:[%s5428_s23 + $0x28] sm:$0xf]  ;;  %v5135_v31 = vld [vmem:[%s7746_s1 + $0x4] ss:$8 sps:$4 sm:$0xff]  }
  0x63   : > { %v4899_v41 = vcombine.low %v2137_v53, %v2147_v39  ;;  %v1556_v42 = vor.u32 %v1555_v34, %v1551_v38  ;;  %v1940_v45 = vrot.slane %v1938_v36, 4  ;;  %v5686_v20 = vsel %vm5421_vm9, %v4756_v46, %v1938_v36  ;;  %v5719_v36 = vld [vmem:[#allocation2 + $0x4] sm:$0xf]  ;;  %3734 = vmatprep.subr.bf16.mxu0 %v5135_v31 }
  0x64   : > { %v1547_v49 = vrot.slane %v1546_v52, 4  ;;  %v448_v62 = vshrl.u32 %v346_v37, 16  ;;  %v446_v7 = vrot.slane %v442_v22, 4  ;;  %v451_v16 = vshll.u32 %v346_v37, 16  ;;  %v5721_v37 = vld [vmem:[#allocation2] sm:$0xf] }
  0x65   : > { %3264 = vrot.lane.b32.xlu0 %v4899_v41, %s5345_s30  ;;  %v1557_v4 = vrot.slane %v1556_v42, 4  ;;  %v302_v11 = vsel %vm5402_vm5, 0, %v301_v58  ;;  %2834 = vrot.lane.b32.xlu1 %v4820_v5, %s5339_s24  ;;  %v5696_v61 = vsel %vm5421_vm9, %v1940_v45, %v1941_v21  ;;  %v722_v13 = vsel %vm5441_vm12, %v445_v59, %v721_v48 }
  0x66   : > { %v1552_v12 = vsel %vm5448_vm13, %v1547_v49, %v1551_v38  ;;  %v450_v51 = vrot.slane %v448_v62, 7  ;;  %303 = vst [vmem:[#allocation2 + $0x44] sm:$0x1] %v302_v11  ;;  %723 = vst [vmem:[#allocation2 + $0x3c] sm:$0xf] %v722_v13  ;;  %v953_v17 = vshrl.u32 %v813_v63, 16  ;;  %v4785_v39 = vcombine.low %v5721_v37, %v5719_v36 }
  0x67   : > { %v1562_v19 = vsel %vm5448_vm13, %v1557_v4, %v1561_v44  ;;  %v956_v25 = vshll.u32 %v813_v63, 16  ;;  %v962_v54 = vshll.u32 %v814_v3, 16  ;;  %v966_v6 = vshrl.u32 %v814_v3, 16  ;;  %v5717_v38 = vld [vmem:[%s5428_s23 + $0x2c] sm:$0xf] }
  0x68   : > { %v4852_v40 = vcombine.low %v1552_v12, %v1562_v19  ;;  %v453_v5 = vor.u32 %v451_v16, %v450_v51  ;;  %v455_v23 = vrot.slane %v450_v51, 4  ;;  %v955_v27 = vrot.slane %v953_v17, 4 }
  0x69   : > { %2754 = vrot.lane.b32.xlu0 %v4804_v8, %s5340_s25  ;;  %v958_v29 = vrot.slane %v956_v25, 5  ;;  %v5703_v55 = vrot.slane %v962_v54, 5  ;;  %v972_v56 = vshll.u32 %v841_v15, 16  ;;  %v968_v53 = vrot.slane %v966_v6, 4 }
  0x6a   : > { %3010 = vrot.lane.b32.xlu1 %v4852_v40, %s5346_s6  ;;  %v454_v28 = vsel %vm5455_vm14, %v446_v7, %v453_v5  ;;  %v4741_v24 = vrot.slane %v1244_v60, 9  ;;  %v1337_v26 = vrot.slane %v814_v3, 5  ;;  %v1340_v9 = vrot.slane %v841_v15, 5 }
  0x6b   : > { %724 = vst.msk [vmem:[#allocation2 + $0x40] sm:$0xf] %vm226_vm0, %v454_v28  ;;  %v959_v8 = vor.u32 %v958_v29, %v955_v27  ;;  %v255_v32 = vsel %vm5391_vm3, 0, %v254_v18  ;;  %v969_v33 = vor.u32 %v968_v53, %v5703_v55  ;;  %v457_v46 = vshrl.u32 %v347_v30, 16 }
  0x6c   : > { %v1339_v34 = vrot.slane %v1337_v26, 4  ;;  %256 = vst [vmem:[#allocation2 + $0x48] sm:$0x1] %v255_v32  ;;  %v4868_v52 = vcombine.low %v5686_v20, %v5696_v61  ;;  %v974_v58 = vrot.slane %v972_v56, 5  ;;  %v460_v41 = vshll.u32 %v347_v30, 16 }
  0x6d   : > { %2930 = vrot.lane.b32.xlu0 %v4836_v35, %s5341_s26  ;;  %v725_v21 = vld [vmem:[#allocation2 + $0x44] sm:$0x1]  ;;  %v960_v22 = vrot.slane %v959_v8, 4  ;;  %v2034_v42 = vld [vmem:[#allocation2 + $0x3c] sm:$0xf]  ;;  %v970_v48 = vrot.slane %v969_v33, 4  ;;  %v5735_v49 = vsel %vm5421_vm9, %v4741_v24, %v1337_v26 }
  0x6e   : > { %v726_v44 = vsel %vm5391_vm3, %v455_v23, %v725_v21  ;;  %v2463_v45 = vld [vmem:[#allocation2 + $0x3c] sm:$0xe]  ;;  %v5737_v59 = vrot.slane %v457_v46, 7  ;;  %v2149_v10 = vshrl.u32 %v2034_v42, 16  ;;  %v2152_v47 = vshll.u32 %v2034_v42, 16 }
  0x6f   : > { %727 = vst [vmem:[#allocation2 + $0x44] sm:$0x1] %v726_v44  ;;  %v5741_v35 = vsel %vm5421_vm9, %v1339_v34, %v1340_v9  ;;  %v5743_v20 = vld [vmem:[#allocation2 + $0x3c] sm:$0xf]  ;;  %v465_v62 = vshrl.u32 %v5717_v38, 16  ;;  %v4772_v63 = vrot.slane %v2463_v45, 9  ;;  %v965_v12 = vsel %vm5448_vm13, %v960_v22, %v5703_v55 }
  0x70   : > { %v1564_v3 = vshrl.u32 %v5743_v20, 16  ;;  %v1567_v4 = vshll.u32 %v5743_v20, 16  ;;  %v468_v7 = vshll.u32 %v5717_v38, 16  ;;  %v2151_v16 = vrot.slane %v2149_v10, 4  ;;  %v1855_v23 = vld [vmem:[#allocation2 + $0x3c] sm:$0xe] }
  0x71   : > { %3090 = vrot.lane.b32.xlu0 %v4868_v52, %s5343_s28  ;;  %v2154_v11 = vrot.slane %v2152_v47, 5  ;;  %v975_v61 = vsel %vm5448_vm13, %v970_v48, %v974_v58  ;;  %v4821_v13 = vcombine.low %v5735_v49, %v5741_v35  ;;  %v462_v25 = vor.u32 %v460_v41, %v5737_v59  ;;  %v304_v10 = vld [vmem:[#allocation2 + $0x50] sm:$0x1] }
  0x72   : > { %v2035_v51 = vld [vmem:[#allocation2 + $0x40] sm:$0xf]  ;;  %v1566_v19 = vrot.slane %v1564_v3, 4  ;;  %v1569_v17 = vrot.slane %v1567_v4, 5  ;;  %v5760_v27 = vcombine.low %v965_v12, %v975_v61  ;;  %v4757_v9 = vrot.slane %v1855_v23, 9 }
  0x73   : > { %v5757_v15 = vld [vmem:[#allocation2 + $0x40] sm:$0xf]  ;;  %v2162_v54 = vshrl.u32 %v2035_v51, 16  ;;  %v4884_v60 = vcombine.low %v2034_v42, %v2035_v51  ;;  %v2155_v40 = vor.u32 %v2154_v11, %v2151_v16  ;;  %v2158_v5 = vshll.u32 %v2035_v51, 16  ;;  %v728_v6 = vld [vmem:[#allocation2 + $0x48] sm:$0xf] }
  0x74   : > { %v2547_v18 = vrot.slane %v2035_v51, 5  ;;  %v1577_v29 = vshrl.u32 %v5757_v15, 16  ;;  %v1570_v55 = vor.u32 %v1569_v17, %v1566_v19  ;;  %v1573_v53 = vshll.u32 %v5757_v15, 16  ;;  %v815_v16 = vld [vmem:[#allocation2 + $0x3c] sm:$0xf] }
  0x75   : > { %3186 = vrot.lane.b32.xlu1 %v4884_v60, %s5342_s27  ;;  %v2156_v56 = vrot.slane %v2155_v40, 4  ;;  %v2160_v30 = vrot.slane %v2158_v5, 5  ;;  %v2164_v28 = vrot.slane %v2162_v54, 4  ;;  %v729_v32 = vsel %vm5441_vm12, %v462_v25, %v728_v6  ;;  %v816_v11 = vld [vmem:[#allocation2 + $0x40] sm:$0xf] }
  0x76   : > { %v2063_v24 = vld [vmem:[#allocation2 + $0x44] sm:$0x1]  ;;  %v2548_v26 = vsel %vm5421_vm9, %v4772_v63, %v2547_v18  ;;  %v2549_v31 = vrot.slane %v2547_v18, 4  ;;  %v1571_v52 = vrot.slane %v1570_v55, 4  ;;  %730 = vst [vmem:[#allocation2 + $0x48] sm:$0xf] %v729_v32  ;;  %v4837_v40 = vcombine.low %v5743_v20, %v5757_v15 }
  0x77   : > { %v1455_v8 = vld [vmem:[#allocation2 + $0x44] sm:$0x1]  ;;  %v2165_v33 = vor.u32 %v2164_v28, %v2160_v30  ;;  %v2168_v34 = vshll.u32 %v2063_v24, 16  ;;  %v2550_v46 = vrot.slane %v2063_v24, 5  ;;  %v1575_v21 = vrot.slane %v1573_v53, 5 }
  0x78   : > { %v1579_v22 = vrot.slane %v1577_v29, 4  ;;  %v1583_v58 = vshll.u32 %v1455_v8, 16  ;;  %v1945_v41 = vrot.slane %v5757_v15, 5  ;;  %v2161_v42 = vsel %vm5448_vm13, %v2156_v56, %v2160_v30  ;;  %v842_v29 = vld [vmem:[#allocation2 + $0x44] sm:$0x1] }
  0x79   : > { %v2166_v44 = vrot.slane %v2165_v33, 4  ;;  %v2170_v45 = vrot.slane %v2168_v34, 5  ;;  %v2551_v48 = vsel %vm5421_vm9, %v2549_v31, %v2550_v46  ;;  %v1948_v4 = vrot.slane %v1455_v8, 5  ;;  %v1245_v53 = vld [vmem:[#allocation2 + $0x3c] sm:$0xe] }
  0x7a   : > { %v4916_v47 = vcombine.low %v2548_v26, %v2551_v48  ;;  %v1580_v63 = vor.u32 %v1579_v22, %v1575_v21  ;;  %v1585_v3 = vrot.slane %v1583_v58, 5  ;;  %v1576_v61 = vsel %vm5448_vm13, %v1571_v52, %v1575_v21 }
  0x7b   : > { %v2171_v12 = vsel %vm5448_vm13, %v2166_v44, %v2170_v45  ;;  %v1947_v51 = vrot.slane %v1945_v41, 4  ;;  %v463_v19 = vrot.slane %v5737_v59, 4  ;;  %v467_v54 = vrot.slane %v465_v62, 7 }
  0x7c   : > { %v4900_v17 = vcombine.low %v2161_v42, %v2171_v12  ;;  %3346 = vrot.lane.b32.xlu1 %v4916_v47, %s5344_s29  ;;  %v1581_v25 = vrot.slane %v1580_v63, 4  ;;  %v305_v60 = vsel %vm5402_vm5, 0, %v304_v10  ;;  %v977_v5 = vshrl.u32 %v815_v16, 16  ;;  %v257_v42 = vld [vmem:[#allocation2 + $0x54] sm:$0x1]  ;;  %v3653_v12 = vld [vmem:[%s7746_s1 + $0x8] sm:$0xff] }
  0x7d   : > { %306 = vst [vmem:[#allocation2 + $0x50] sm:$0x1] %v305_v60  ;;  %v980_v23 = vshll.u32 %v815_v16, 16  ;;  %v986_v6 = vshll.u32 %v816_v11, 16  ;;  %v5791_v18 = vsel %vm5421_vm9, %v4757_v9, %v1945_v41  ;;  %v5795_v62 = vsel %vm5421_vm9, %v1947_v51, %v1948_v4  ;;  %v5799_v15 = vld [vmem:[#allocation2 + $0x48] sm:$0xf] }
  0x7e   : > { %3266 = vrot.lane.b32.xlu0 %v4900_v17, %s5345_s30  ;;  %v1586_v59 = vsel %vm5448_vm13, %v1581_v25, %v1585_v3  ;;  %v470_v20 = vor.u32 %v468_v7, %v467_v54  ;;  %v472_v56 = vrot.slane %v467_v54, 4  ;;  %v2173_v30 = vshrl.u32 %v5799_v15, 16  ;;  %v5811_v31 = vld [vmem:[#allocation2 + $0x48] sm:$0xf]  ;;  %v5834_v16 = vld [vmem:[%s5428_s23 + $0x30] sm:$0xf] }
  0x7f   : > { %v4853_v55 = vcombine.low %v1576_v61, %v1586_v59  ;;  %v2176_v28 = vshll.u32 %v5799_v15, 16  ;;  %v979_v38 = vrot.slane %v977_v5, 4  ;;  %v982_v7 = vrot.slane %v980_v23, 5  ;;  %v5814_v32 = vld [vmem:[#allocation2 + $0x48] sm:$0xe] }
  0x80   : > { %2836 = vrot.lane.b32.xlu1 %v4821_v13, %s5339_s24  ;;  %v471_v24 = vsel %vm5455_vm14, %v463_v19, %v470_v20  ;;  %v5809_v26 = vrot.slane %v986_v6, 5  ;;  %v2175_v8 = vrot.slane %v2173_v30, 4  ;;  %v990_v33 = vshrl.u32 %v816_v11, 16  ;;  %v5821_v41 = vld [vmem:[#allocation2 + $0x48] sm:$0xe] }
  0x81   : > { %731 = vst.msk [vmem:[#allocation2 + $0x4c] sm:$0xf] %vm226_vm0, %v471_v24  ;;  %v2178_v9 = vrot.slane %v2176_v28, 5  ;;  %v996_v34 = vshll.u32 %v842_v29, 16  ;;  %v983_v49 = vor.u32 %v982_v7, %v979_v38  ;;  %v4742_v35 = vrot.slane %v1245_v53, 9 }
  0x82   : > { %2756 = vrot.lane.b32.xlu0 %v5760_v27, %s5340_s25  ;;  %v1344_v13 = vrot.slane %v816_v11, 5  ;;  %v1347_v46 = vrot.slane %v842_v29, 5  ;;  %v4869_v52 = vcombine.low %v5791_v18, %v5795_v62  ;;  %v992_v22 = vrot.slane %v990_v33, 4  ;;  %v3652_v11 = vld [vmem:[%s7746_s1] sm:$0xff]  ;;  %v5850_v25 = vld [vmem:[%s5428_s23 + $0x34] sm:$0xf] }
  0x83   : > { %v2179_v21 = vor.u32 %v2178_v9, %v2175_v8  ;;  %v1588_v58 = vshrl.u32 %v5811_v31, 16  ;;  %v4773_v27 = vrot.slane %v5814_v32, 9  ;;  %v984_v45 = vrot.slane %v983_v49, 4  ;;  %v5138_v23 = vld [vmem:[%s7746_s1 + $0x14] ss:$8 sps:$4 sm:$0xff]  }
  0x84   : > { %3012 = vrot.lane.b32.xlu1 %v4853_v55, %s5346_s6  ;;  %v732_v44 = vld [vmem:[#allocation2 + $0x50] sm:$0x1]  ;;  %v1346_v48 = vrot.slane %v1344_v13, 4  ;;  %v1591_v10 = vshll.u32 %v5811_v31, 16  ;;  %v993_v63 = vor.u32 %v992_v22, %v5809_v26  ;;  %v5831_v3 = vsel %vm5421_vm9, %v4742_v35, %v1344_v13 }
  0x85   : > { %v733_v47 = vsel %vm5391_vm3, %v472_v56, %v732_v44  ;;  %v1590_v4 = vrot.slane %v1588_v58, 4  ;;  %v5843_v61 = vrot.slane %v2179_v21, 4  ;;  %v998_v51 = vrot.slane %v996_v34, 5 }
  0x86   : > { %2932 = vrot.lane.b32.xlu0 %v4837_v40, %s5341_s26  ;;  %734 = vst [vmem:[#allocation2 + $0x50] sm:$0x1] %v733_v47  ;;  %v5847_v19 = vsel %vm5421_vm9, %v1346_v48, %v1347_v46  ;;  %v1593_v17 = vrot.slane %v1591_v10, 5  ;;  %v989_v54 = vsel %vm5448_vm13, %v984_v45, %v5809_v26  ;;  %v994_v60 = vrot.slane %v993_v63, 4  ;;  %v5140_v26 = vld [vmem:[%s7746_s1 + $0x10] ss:$8 sps:$4 sm:$0xff]  }
  0x87   : > { %v4758_v5 = vrot.slane %v5821_v41, 9  ;;  %v258_v40 = vsel %vm5391_vm3, 0, %v257_v42  ;;  %v4822_v59 = vcombine.low %v5831_v3, %v5847_v19  ;;  %v474_v20 = vshrl.u32 %v5834_v16, 16 }
  0x88   : > { %v2037_v6 = vld [vmem:[#allocation2 + $0x4c] sm:$0xf]  ;;  %v1594_v62 = vor.u32 %v1593_v17, %v1590_v4  ;;  %259 = vst [vmem:[#allocation2 + $0x54] sm:$0x1] %v258_v40  ;;  %v4929_v29 = vcombine.low %v3652_v11, %v3653_v12  ;;  %v999_v53 = vsel %vm5448_vm13, %v994_v60, %v998_v51  ;;  %v477_v38 = vshll.u32 %v5834_v16, 16 }
  0x89   : > { %v5863_v18 = vld [vmem:[#allocation2 + $0x4c] sm:$0xf]  ;;  %v2186_v55 = vshrl.u32 %v2037_v6, 16  ;;  %v4885_v56 = vcombine.low %v5799_v15, %v2037_v6  ;;  %v2182_v30 = vshll.u32 %v2037_v6, 16  ;;  %v2554_v28 = vrot.slane %v2037_v6, 5 }
  0x8a   : > { %3092 = vrot.lane.b32.xlu0 %v4869_v52, %s5343_s28  ;;  %v1601_v24 = vshrl.u32 %v5863_v18, 16  ;;  %v482_v7 = vshrl.u32 %v5850_v25, 16  ;;  %3735 = vmatpush1.bf16.msra.mxu0 %v4929_v29  ;;  %v4838_v9 = vcombine.low %v5811_v31, %v5863_v18  ;;  %v1595_v32 = vrot.slane %v1594_v62, 4  ;;  %v307_v40 = vld [vmem:[#allocation2 + $0x5c] sm:$0x1] }
  0x8b   : > { %3188 = vrot.lane.b32.xlu1 %v4885_v56, %s5342_s27  ;;  %v2184_v15 = vrot.slane %v2182_v30, 5  ;;  %v2188_v8 = vrot.slane %v2186_v55, 4  ;;  %3736 = vmatprep.subr.bf16.mxu0 %v5138_v23  ;;  %v2556_v33 = vrot.slane %v2554_v28, 4  ;;  %v1597_v34 = vshll.u32 %v5863_v18, 16  ;;  %v818_v29 = vld [vmem:[#allocation2 + $0x4c] sm:$0xf] }
  0x8c   : > { %v1603_v49 = vrot.slane %v1601_v24, 4  ;;  %v1952_v35 = vrot.slane %v5863_v18, 5  ;;  %v2555_v52 = vsel %vm5421_vm9, %v4773_v27, %v2554_v28  ;;  %v5883_v21 = vcombine.low %v989_v54, %v999_v53  ;;  %v1246_v53 = vld [vmem:[#allocation2 + $0x48] sm:$0xe] }
  0x8d   : > { %v2064_v13 = vld [vmem:[#allocation2 + $0x50] sm:$0x1]  ;;  %v2189_v46 = vor.u32 %v2188_v8, %v2184_v15  ;;  %v476_v58 = vrot.slane %v474_v20, 7  ;;  %v1599_v44 = vrot.slane %v1597_v34, 5  ;;  %v2185_v48 = vsel %vm5448_vm13, %v5843_v61, %v2184_v15  ;;  %v817_v61 = vld [vmem:[#allocation2 + $0x48] sm:$0xf] }
  0x8e   : > { %v1456_v22 = vld [vmem:[#allocation2 + $0x50] sm:$0x1]  ;;  %v2192_v41 = vshll.u32 %v2064_v13, 16  ;;  %v2557_v42 = vrot.slane %v2064_v13, 5  ;;  %3737 = vmatpush1.bf16.msra.mxu0 %v5140_v26  ;;  %v1954_v47 = vrot.slane %v1952_v35, 4  ;;  %v5890_v11 = vrot.slane %v482_v7, 7 }
  0x8f   : > { %v1607_v45 = vshll.u32 %v1456_v22, 16  ;;  %v2190_v10 = vrot.slane %v2189_v46, 4  ;;  %v1955_v63 = vrot.slane %v1456_v22, 5  ;;  %v1604_v16 = vor.u32 %v1603_v49, %v1599_v44  ;;  %v735_v12 = vld [vmem:[#allocation2 + $0x54] sm:$0xf] }
  0x90   : > { %v2194_v4 = vrot.slane %v2192_v41, 5  ;;  %v2558_v27 = vsel %vm5421_vm9, %v2556_v33, %v2557_v42  ;;  %v5894_v54 = vsel %vm5421_vm9, %v4758_v5, %v1952_v35  ;;  %v479_v60 = vor.u32 %v477_v38, %v476_v58  ;;  %v843_v28 = vld [vmem:[#allocation2 + $0x50] sm:$0x1]  ;;  %v260_v33 = vld [vmem:[#allocation2 + $0x60] sm:$0x1] }
  0x91   : > { %v4917_v51 = vcombine.low %v2555_v52, %v2558_v27  ;;  %v1609_v17 = vrot.slane %v1607_v45, 5  ;;  %v1600_v6 = vsel %vm5448_vm13, %v1595_v32, %v1599_v44  ;;  %v1605_v62 = vrot.slane %v1604_v16, 4  ;;  %v351_v46 = vld [vmem:[%s5428_s23 + $0x38] sm:$0xf]  ;;  %v5922_v42 = vld [vmem:[%s5428_s23 + $0x3c] sm:$0xf] }
  0x92   : > { %v2195_v23 = vsel %vm5448_vm13, %v2190_v10, %v2194_v4  ;;  %v5902_v20 = vsel %vm5421_vm9, %v1954_v47, %v1955_v63  ;;  %v480_v5 = vrot.slane %v476_v58, 4  ;;  %v485_v56 = vshll.u32 %v5850_v25, 16  ;;  %v5928_v47 = vpop.permute.xlu0 %2828 }
  0x93   : > { %v4901_v55 = vcombine.low %v2185_v48, %v2195_v23  ;;  %3348 = vrot.lane.b32.xlu1 %v4917_v51, %s5344_s29  ;;  %v736_v30 = vsel %vm5441_vm12, %v479_v60, %v735_v12  ;;  %v1610_v24 = vsel %vm5448_vm13, %v1605_v62, %v1609_v17  ;;  %v308_v38 = vsel %vm5402_vm5, 0, %v307_v40  ;;  %v5935_v12 = vld [vmem:[#allocation2 + $0x10] sm:$0xf]  ;;  %v5937_v51 = vld [vmem:[#allocation2 + $0xc] sm:$0xf] }
  0x94   : > { %737 = vst [vmem:[#allocation2 + $0x54] sm:$0xf] %v736_v30  ;;  %v1001_v7 = vshrl.u32 %v817_v61, 16  ;;  %v1004_v26 = vshll.u32 %v817_v61, 16  ;;  %v4854_v15 = vcombine.low %v1600_v6, %v1610_v24  ;;  %v487_v25 = vor.u32 %v485_v56, %v5890_v11  ;;  %309 = vst [vmem:[#allocation2 + $0x5c] sm:$0x1] %v308_v38 }
  0x95   : > { %3268 = vrot.lane.b32.xlu0 %v4901_v55, %s5345_s30  ;;  %v1010_v8 = vshll.u32 %v818_v29, 16  ;;  %v1014_v32 = vshrl.u32 %v818_v29, 16  ;;  %v1020_v35 = vshll.u32 %v843_v28, 16  ;;  %v4743_v13 = vrot.slane %v1246_v53, 9  ;;  %v5967_v53 = vld [vmem:[#allocation2 + $0x18] sm:$0xf] }
  0x96   : > { %v1003_v34 = vrot.slane %v1001_v7, 4  ;;  %v1006_v49 = vrot.slane %v1004_v26, 5  ;;  %v488_v52 = vsel %vm5455_vm14, %v480_v5, %v487_v25  ;;  %v1351_v41 = vrot.slane %v818_v29, 5  ;;  %v5969_v24 = vld [vmem:[#allocation2 + $0x1c] sm:$0xf] }
  0x97   : > { %2838 = vrot.lane.b32.xlu1 %v4822_v59, %s5339_s24  ;;  %v1012_v22 = vrot.slane %v1010_v8, 5  ;;  %v1016_v58 = vrot.slane %v1014_v32, 4  ;;  %v489_v44 = vrot.slane %v5890_v11, 4  ;;  %738 = vst.msk [vmem:[#allocation2 + $0x58] sm:$0xf] %vm226_vm0, %v488_v52  ;;  %v1354_v48 = vrot.slane %v843_v28, 5 }
  0x98   : > { %v1007_v45 = vor.u32 %v1006_v49, %v1003_v34  ;;  %v261_v10 = vsel %vm5391_vm3, 0, %v260_v33  ;;  %v1022_v19 = vrot.slane %v1020_v35, 5  ;;  %v1353_v59 = vrot.slane %v1351_v41, 4  ;;  %v5932_v4 = vpop.permute.xlu1 %2924 }
  0x99   : > { %2758 = vrot.lane.b32.xlu0 %v5883_v21, %s5340_s25  ;;  %v1017_v3 = vor.u32 %v1016_v58, %v1012_v22  ;;  %262 = vst [vmem:[#allocation2 + $0x60] sm:$0x1] %v261_v10  ;;  %v491_v63 = vshrl.u32 %v351_v46, 16  ;;  %v494_v16 = vshll.u32 %v351_v46, 16  ;;  %v499_v11 = vshrl.u32 %v5922_v42, 16 }
  0x9a   : > { %v1008_v27 = vrot.slane %v1007_v45, 4  ;;  %v4786_v17 = vcombine.low %v5937_v51, %v5935_v12  ;;  %v4870_v21 = vcombine.low %v5894_v54, %v5902_v20  ;;  %v5946_v23 = vsel %vm5421_vm9, %v4743_v13, %v1351_v41  ;;  %v5989_v58 = vld [vmem:[%s7746_s1 + $0x20] sm:$0x33] }
  0x9b   : > { %3014 = vrot.lane.b32.xlu1 %v4854_v15, %s5346_s6  ;;  %v2038_v60 = vld [vmem:[#allocation2 + $0x54] sm:$0xf]  ;;  %v1018_v61 = vrot.slane %v1017_v3, 4  ;;  %v5948_v6 = vrot.slane %v491_v63, 7  ;;  %v739_v55 = vld [vmem:[#allocation2 + $0x5c] sm:$0x1]  ;;  %v5954_v56 = vsel %vm5421_vm9, %v1353_v59, %v1354_v48  ;;  %v4787_v38 = vcombine.low %v5967_v53, %v5969_v24  ;;  %v5974_v15 = vpop.permute.xlu0 %2748 }
  0x9c   : > { %v2465_v40 = vld [vmem:[#allocation2 + $0x54] sm:$0xe]  ;;  %v2197_v62 = vshrl.u32 %v2038_v60, 16  ;;  %v2200_v29 = vshll.u32 %v2038_v60, 16  ;;  %v1013_v5 = vsel %vm5448_vm13, %v1008_v27, %v1012_v22  ;;  %v740_v54 = vsel %vm5391_vm3, %v489_v44, %v739_v55 }
  0x9d   : > { %2934 = vrot.lane.b32.xlu0 %v4838_v9, %s5341_s26  ;;  %v1023_v20 = vsel %vm5448_vm13, %v1018_v61, %v1022_v19  ;;  %v5964_v30 = vld [vmem:[#allocation2 + $0x54] sm:$0xf]  ;;  %v502_v28 = vshll.u32 %v5922_v42, 16  ;;  %741 = vst [vmem:[#allocation2 + $0x5c] sm:$0x1] %v740_v54  ;;  %v4774_v18 = vrot.slane %v2465_v40, 9  ;;  %v4823_v33 = vcombine.low %v5946_v23, %v5954_v56 }
  0x9e   : > { %v2199_v7 = vrot.slane %v2197_v62, 4  ;;  %v2202_v31 = vrot.slane %v2200_v29, 5  ;;  %v1612_v9 = vshrl.u32 %v5964_v30, 16  ;;  %v1857_v26 = vld [vmem:[#allocation2 + $0x54] sm:$0xe]  ;;  %v5976_v25 = vpop.permute.xlu1 %3180  ;;  %v5978_v32 = vcombine.low %v1013_v5, %v1023_v20 }
  0x9f   : > { %v2039_v8 = vld [vmem:[#allocation2 + $0x58] sm:$0xf]  ;;  %v1615_v49 = vshll.u32 %v5964_v30, 16  ;;  %v496_v35 = vor.u32 %v494_v16, %v5948_v6  ;;  %v4759_v59 = vrot.slane %v1857_v26, 9  ;;  %v4933_v40 = vcombine.low %v5989_v58, %v5989_v58  ;;  %v6002_v5 = vpop.permute.xlu0 %2926 }
  0xa0   : > { %v5982_v34 = vld [vmem:[#allocation2 + $0x58] sm:$0xf]  ;;  %v2210_v13 = vshrl.u32 %v2039_v8, 16  ;;  %v4886_v46 = vcombine.low %v2038_v60, %v2039_v8  ;;  %v2203_v52 = vor.u32 %v2202_v31, %v2199_v7  ;;  %v2206_v22 = vshll.u32 %v2039_v8, 16  ;;  %v742_v63 = vld [vmem:[#allocation2 + $0x60] sm:$0xf] }
  0xa1   : > { %3094 = vrot.lane.b32.xlu0 %v4870_v21, %s5343_s28  ;;  %v2561_v41 = vrot.slane %v2039_v8, 5  ;;  %v1614_v44 = vrot.slane %v1612_v9, 4  ;;  %v1617_v45 = vrot.slane %v1615_v49, 5  ;;  %v1625_v48 = vshrl.u32 %v5982_v34, 16 }
  0xa2   : > { %3190 = vrot.lane.b32.xlu1 %v4886_v46, %s5342_s27  ;;  %v2204_v10 = vrot.slane %v2203_v52, 4  ;;  %v2208_v3 = vrot.slane %v2206_v22, 5  ;;  %v2212_v19 = vrot.slane %v2210_v13, 4  ;;  %v5994_v27 = vpop.permute.xlu1 %3182  ;;  %v1621_v60 = vshll.u32 %v5982_v34, 16 }
  0xa3   : > { %v1618_v16 = vor.u32 %v1617_v45, %v1614_v44  ;;  %v4934_v21 = vcombine.high %v5989_v58, %v5989_v58  ;;  %v2563_v62 = vrot.slane %v2561_v41, 4  ;;  %v1627_v29 = vrot.slane %v1625_v48, 4  ;;  %v310_v48 = vld [vmem:[#allocation2 + $0x68] sm:$0x1] }
  0xa4   : > { %v2213_v61 = vor.u32 %v2212_v19, %v2208_v3  ;;  %v1959_v55 = vrot.slane %v5982_v34, 5  ;;  %v2065_v54 = vld [vmem:[#allocation2 + $0x5c] sm:$0x1]  ;;  %v2209_v20 = vsel %vm5448_vm13, %v2204_v10, %v2208_v3  ;;  %v2562_v7 = vsel %vm5421_vm9, %v4774_v18, %v2561_v41  ;;  %v819_v10 = vld [vmem:[#allocation2 + $0x54] sm:$0xf] }
  0xa5   : > { %v1457_v31 = vld [vmem:[#allocation2 + $0x5c] sm:$0x1]  ;;  %v1623_v9 = vrot.slane %v1621_v60, 5  ;;  %v743_v26 = vsel %vm5441_vm12, %v496_v35, %v742_v63  ;;  %v2216_v49 = vshll.u32 %v2065_v54, 16  ;;  %v2564_v13 = vrot.slane %v2065_v54, 5 }
  0xa6   : > { %v2214_v8 = vrot.slane %v2213_v61, 4  ;;  %v1631_v46 = vshll.u32 %v1457_v31, 16  ;;  %744 = vst [vmem:[#allocation2 + $0x60] sm:$0xf] %v743_v26  ;;  %v1619_v52 = vrot.slane %v1618_v16, 4  ;;  %v6012_v44 = vsel %vm5421_vm9, %v4759_v59, %v1959_v55 }
  0xa7   : > { %v1628_v22 = vor.u32 %v1627_v29, %v1623_v9  ;;  %v1961_v45 = vrot.slane %v1959_v55, 4  ;;  %v2218_v18 = vrot.slane %v2216_v49, 5  ;;  %v2565_v41 = vsel %vm5421_vm9, %v2563_v62, %v2564_v13  ;;  %v820_v55 = vld [vmem:[#allocation2 + $0x58] sm:$0xf]  ;;  %v844_v49 = vld [vmem:[#allocation2 + $0x5c] sm:$0x1] }
  0xa8   : > { %v1633_v3 = vrot.slane %v1631_v46, 5  ;;  %v1962_v35 = vrot.slane %v1457_v31, 5  ;;  %v6016_v19 = vpop.permute.xlu1 %3340  ;;  %v4918_v63 = vcombine.low %v2562_v7, %v2565_v41  ;;  %v497_v16 = vrot.slane %v5948_v6, 4  ;;  %v6029_v31 = vpop.permute.xlu0 %3084 }
  0xa9   : > { %v1629_v60 = vrot.slane %v1628_v22, 4  ;;  %v501_v61 = vrot.slane %v499_v11, 7  ;;  %v2219_v59 = vsel %vm5448_vm13, %v2214_v8, %v2218_v18  ;;  %v311_v62 = vsel %vm5402_vm5, 0, %v310_v48  ;;  %v6040_v22 = vld [vmem:[#allocation2 + $0x24] sm:$0xf] }
  0xaa   : > { %v6025_v29 = vsel %vm5421_vm9, %v1961_v45, %v1962_v35  ;;  %v1025_v54 = vshrl.u32 %v819_v10, 16  ;;  %v4902_v7 = vcombine.low %v2209_v20, %v2219_v59  ;;  %3350 = vrot.lane.b32.xlu1 %v4918_v63, %s5344_s29  ;;  %v1624_v11 = vsel %vm5448_vm13, %v1619_v52, %v1623_v9  ;;  %312 = vst [vmem:[#allocation2 + $0x68] sm:$0x1] %v311_v62  ;;  %v6042_v20 = vld [vmem:[#allocation2 + $0x28] sm:$0xf] }
  0xab   : > { %v1634_v6 = vsel %vm5448_vm13, %v1629_v60, %v1633_v3  ;;  %v504_v26 = vor.u32 %v502_v28, %v501_v61  ;;  %v4839_v8 = vcombine.low %v5964_v30, %v5982_v34  ;;  %v1028_v46 = vshll.u32 %v819_v10, 16  ;;  %v1247_v45 = vld [vmem:[#allocation2 + $0x54] sm:$0xe] }
  0xac   : > { %v1027_v13 = vrot.slane %v1025_v54, 4  ;;  %3270 = vrot.lane.b32.xlu0 %v4902_v7, %s5345_s30  ;;  %v4871_v42 = vcombine.low %v6012_v44, %v6025_v29  ;;  %v1034_v30 = vshll.u32 %v820_v55, 16  ;;  %v1038_v34 = vshrl.u32 %v820_v55, 16  ;;  %v6052_v35 = vpop.permute.xlu1 %2830 }
  0xad   : > { %v505_v28 = vsel %vm5455_vm14, %v497_v16, %v504_v26  ;;  %v2040_v52 = vld [vmem:[#allocation2 + $0x60] sm:$0xf]  ;;  %v4855_v48 = vcombine.low %v1624_v11, %v1634_v6  ;;  %v1030_v3 = vrot.slane %v1028_v46, 5  ;;  %v506_v63 = vrot.slane %v501_v61, 4  ;;  %v6060_v6 = vpop.permute.xlu0 %3086 }
  0xae   : > { %745 = vst.msk [vmem:[#allocation2 + $0x64] sm:$0xf] %vm226_vm0, %v505_v28  ;;  %v2221_v10 = vshrl.u32 %v2040_v52, 16  ;;  %v2224_v18 = vshll.u32 %v2040_v52, 16  ;;  %v2466_v41 = vld [vmem:[#allocation2 + $0x60] sm:$0xe]  ;;  %2840 = vrot.lane.b32.xlu1 %v4823_v33, %s5339_s24 }
  0xaf   : > { %v1036_v60 = vrot.slane %v1034_v30, 5  ;;  %v1040_v16 = vrot.slane %v1038_v34, 4  ;;  %v1044_v59 = vshll.u32 %v844_v49, 16  ;;  %v6058_v62 = vld [vmem:[#allocation2 + $0x60] sm:$0xf]  ;;  %v1031_v11 = vor.u32 %v1030_v3, %v1027_v13 }
  0xb0   : > { %v2223_v54 = vrot.slane %v2221_v10, 4  ;;  %v2226_v7 = vrot.slane %v2224_v18, 5  ;;  %2760 = vrot.lane.b32.xlu0 %v5978_v32, %s5340_s25  ;;  %v4744_v28 = vrot.slane %v1247_v45, 9  ;;  %v1358_v23 = vrot.slane %v820_v55, 5 }
  0xb1   : > { %v1041_v26 = vor.u32 %v1040_v16, %v1036_v60  ;;  %v1046_v46 = vrot.slane %v1044_v59, 5  ;;  %v746_v56 = vld [vmem:[#allocation2 + $0x68] sm:$0x1]  ;;  %v4775_v33 = vrot.slane %v2466_v41, 9  ;;  %v1032_v61 = vrot.slane %v1031_v11, 4 }
  0xb2   : > { %v1361_v30 = vrot.slane %v844_v49, 5  ;;  %v1636_v34 = vshrl.u32 %v6058_v62, 16  ;;  %3016 = vrot.lane.b32.xlu1 %v4855_v48, %s5346_s6  ;;  %v747_v13 = vsel %vm5391_vm3, %v506_v63, %v746_v56  ;;  %v2227_v10 = vor.u32 %v2226_v7, %v2223_v54  ;;  %v6080_v48 = vpop.permute.xlu1 %3342  ;;  %v6091_v54 = vpop.permute.xlu0 %3260 }
  0xb3   : > { %v1042_v18 = vrot.slane %v1041_v26, 4  ;;  %v1360_v3 = vrot.slane %v1358_v23, 4  ;;  %748 = vst [vmem:[#allocation2 + $0x68] sm:$0x1] %v747_v13  ;;  %v1037_v32 = vsel %vm5448_vm13, %v1032_v61, %v1036_v60  ;;  %v3375_v55 = vsel %vm3372_vm15, %v4785_v39, %v5974_v15 }
  0xb4   : > { %v6077_v49 = vsel %vm5421_vm9, %v4744_v28, %v1358_v23  ;;  %v1639_v45 = vshll.u32 %v6058_v62, 16  ;;  %2936 = vrot.lane.b32.xlu0 %v4839_v8, %s5341_s26  ;;  %v1638_v37 = vrot.slane %v1636_v34, 4  ;;  %v2228_v7 = vrot.slane %v2227_v10, 4 }
  0xb5   : > { %v2041_v41 = vld [vmem:[#allocation2 + $0x64] sm:$0xf]  ;;  %v1047_v63 = vsel %vm5448_vm13, %v1042_v18, %v1046_v46  ;;  %v6087_v60 = vsel %vm5421_vm9, %v1360_v3, %v1361_v30  ;;  %vm3454_vm2 = vcmask 97280   ;;  %v3423_v56 = vsel %vm3421_vm1, %v3375_v55, %v5928_v47  ;;  %v1858_v3 = vld [vmem:[#allocation2 + $0x60] sm:$0xe] }
  0xb6   : > { %v6089_v36 = vld [vmem:[#allocation2 + $0x64] sm:$0xf]  ;;  %v2234_v39 = vshrl.u32 %v2041_v41, 16  ;;  %v4887_v15 = vcombine.low %v2040_v52, %v2041_v41  ;;  %v2230_v16 = vshll.u32 %v2041_v41, 16  ;;  %v2568_v59 = vrot.slane %v2041_v41, 5 }
  0xb7   : > { %v1641_v8 = vrot.slane %v1639_v45, 5  ;;  %v1649_v11 = vshrl.u32 %v6089_v36, 16  ;;  %v6095_v28 = vcombine.low %v1037_v32, %v1047_v63  ;;  %v4824_v23 = vcombine.low %v6077_v49, %v6087_v60  ;;  %v6110_v32 = vpop.permute.xlu1 %2832 }
  0xb8   : > { %3192 = vrot.lane.b32.xlu1 %v4887_v15, %s5342_s27  ;;  %v2232_v26 = vrot.slane %v2230_v16, 5  ;;  %v2236_v46 = vrot.slane %v2234_v39, 4  ;;  %3096 = vrot.lane.b32.xlu0 %v4871_v42, %s5343_s28  ;;  %v2569_v52 = vsel %vm5421_vm9, %v4775_v33, %v2568_v59  ;;  %v1645_v30 = vshll.u32 %v6089_v36, 16  ;;  %v2751_v39 = vpop.permute.xlu0 %2750 }
  0xb9   : > { %v1642_v61 = vor.u32 %v1641_v8, %v1638_v37  ;;  %v2570_v13 = vrot.slane %v2568_v59, 4  ;;  %v4840_v10 = vcombine.low %v6058_v62, %v6089_v36  ;;  %v1651_v18 = vrot.slane %v1649_v11, 4  ;;  %v263_v8 = vld [vmem:[#allocation2 + $0x6c] sm:$0x1]  ;;  %v353_v11 = vld [vmem:[%s5428_s23 + $0x40] sm:$0xf] }
  0xba   : > { %v2237_v34 = vor.u32 %v2236_v46, %v2232_v26  ;;  %v2066_v44 = vld [vmem:[#allocation2 + $0x68] sm:$0x1]  ;;  %v2233_v29 = vsel %vm5448_vm13, %v2228_v7, %v2232_v26  ;;  %v6116_v47 = vsel %vm3454_vm2, %v3423_v56, %v5932_v4  ;;  %v1647_v55 = vrot.slane %v1645_v30, 5 }
  0xbb   : > { %v1458_v42 = vld [vmem:[#allocation2 + $0x68] sm:$0x1]  ;;  %v1643_v33 = vrot.slane %v1642_v61, 4  ;;  %v2240_v41 = vshll.u32 %v2066_v44, 16  ;;  %v2571_v63 = vrot.slane %v2066_v44, 5  ;;  %v4760_v59 = vrot.slane %v1858_v3, 9 }
  0xbc   : > { %v2238_v45 = vrot.slane %v2237_v34, 4  ;;  %v1655_v37 = vshll.u32 %v1458_v42, 16  ;;  %v1652_v16 = vor.u32 %v1651_v18, %v1647_v55  ;;  %v1966_v7 = vrot.slane %v6089_v36, 5  ;;  %v354_v61 = vld [vmem:[%s5428_s23 + $0x44] sm:$0xf] }
  0xbd   : > { %v1648_v15 = vsel %vm5448_vm13, %v1643_v33, %v1647_v55  ;;  %v2242_v4 = vrot.slane %v2240_v41, 5  ;;  %v2572_v26 = vsel %vm5421_vm9, %v2570_v13, %v2571_v63  ;;  %v1969_v56 = vrot.slane %v1458_v42, 5  ;;  %v313_v18 = vld [vmem:[#allocation2 + $0x74] sm:$0x1]  ;;  %v821_v13 = vld [vmem:[#allocation2 + $0x60] sm:$0xf]  ;;  %v6133_v63 = vpop.permute.xlu1 %3004 }
  0xbe   : > { %v1657_v46 = vrot.slane %v1655_v37, 5  ;;  %v4919_v30 = vcombine.low %v2569_v52, %v2572_v26  ;;  %v1653_v34 = vrot.slane %v1652_v16, 4  ;;  %v6127_v44 = vsel %vm5421_vm9, %v4760_v59, %v1966_v7  ;;  %v822_v16 = vld [vmem:[#allocation2 + $0x64] sm:$0xf] }
  0xbf   : > { %v1968_v33 = vrot.slane %v1966_v7, 4  ;;  %v2243_v3 = vsel %vm5448_vm13, %v2238_v45, %v2242_v4  ;;  %v264_v55 = vsel %vm5391_vm3, 0, %v263_v8  ;;  %v508_v41 = vshrl.u32 %v353_v11, 16  ;;  %v6146_v4 = vpop.permute.xlu0 %3262 }
  0xc0   : > { %v511_v9 = vshll.u32 %v353_v11, 16  ;;  %v4903_v42 = vcombine.low %v2233_v29, %v2243_v3  ;;  %3352 = vrot.lane.b32.xlu1 %v4919_v30, %s5344_s29  ;;  %v1658_v52 = vsel %vm5448_vm13, %v1653_v34, %v1657_v46  ;;  %265 = vst [vmem:[#allocation2 + $0x6c] sm:$0x1] %v264_v55  ;;  %v516_v45 = vshrl.u32 %v354_v61, 16  ;;  %v1248_v11 = vld [vmem:[#allocation2 + $0x60] sm:$0xe] }
  0xc1   : > { %v6140_v37 = vsel %vm5421_vm9, %v1968_v33, %v1969_v56  ;;  %v4856_v59 = vcombine.low %v1648_v15, %v1658_v52  ;;  %v510_v7 = vrot.slane %v508_v41, 7  ;;  %v519_v8 = vshll.u32 %v354_v61, 16  ;;  %v845_v56 = vld [vmem:[#allocation2 + $0x68] sm:$0x1]  ;;  %v266_v3 = vld [vmem:[#allocation2 + $0x78] sm:$0x1] }
  0xc2   : > { %v3378_v29 = vsel %vm3372_vm15, %v4786_v17, %v2751_v39  ;;  %3272 = vrot.lane.b32.xlu0 %v4903_v42, %s5345_s30  ;;  %v518_v26 = vrot.slane %v516_v45, 7  ;;  %v314_v46 = vsel %vm5402_vm5, 0, %v313_v18  ;;  %v1049_v30 = vshrl.u32 %v821_v13, 16  ;;  %v355_v52 = vld [vmem:[%s5428_s23 + $0x48] sm:$0xf] }
  0xc3   : > { %v1052_v34 = vshll.u32 %v821_v13, 16  ;;  %v4872_v15 = vcombine.low %v6127_v44, %v6140_v37  ;;  %v514_v61 = vrot.slane %v510_v7, 4  ;;  %315 = vst [vmem:[#allocation2 + $0x74] sm:$0x1] %v314_v46  ;;  %v1058_v12 = vshll.u32 %v822_v16, 16 }
  0xc4   : > { %v1062_v51 = vshrl.u32 %v822_v16, 16  ;;  %2842 = vrot.lane.b32.xlu1 %v4824_v23, %s5339_s24  ;;  %v513_v17 = vor.u32 %v511_v9, %v510_v7  ;;  %v521_v39 = vor.u32 %v519_v8, %v518_v26  ;;  %v1051_v33 = vrot.slane %v1049_v30, 4  ;;  %v6158_v45 = vpop.permute.xlu1 %3006  ;;  %v356_v7 = vld [vmem:[%s5428_s23 + $0x4c] sm:$0xf]  ;;  %v316_v8 = vld [vmem:[#allocation2 + $0x80] sm:$0x1] }
  0xc5   : > { %v1054_v18 = vrot.slane %v1052_v34, 5  ;;  %v1060_v55 = vrot.slane %v1058_v12, 5  ;;  %v1068_v13 = vshll.u32 %v845_v56, 16  ;;  %v4745_v42 = vrot.slane %v1248_v11, 9 }
  0xc6   : > { %v1064_v41 = vrot.slane %v1062_v51, 4  ;;  %2762 = vrot.lane.b32.xlu0 %v6095_v28, %s5340_s25  ;;  %v522_v49 = vsel %vm5455_vm14, %v514_v61, %v521_v39  ;;  %v1365_v9 = vrot.slane %v822_v16, 5  ;;  %v1368_v23 = vrot.slane %v845_v56, 5  ;;  %v2753_v51 = vpop.permute.xlu0 %2752 }
  0xc7   : > { %v1055_v60 = vor.u32 %v1054_v18, %v1051_v33  ;;  %v523_v46 = vrot.slane %v518_v26, 4  ;;  %v749_v30 = vld [vmem:[#allocation2 + $0x6c] sm:$0xf]  ;;  %752 = vst.msk [vmem:[#allocation2 + $0x70] sm:$0xf] %vm226_vm0, %v522_v49  ;;  %v1070_v11 = vrot.slane %v1068_v13, 5  ;;  %v6193_v62 = vsel %vm3421_vm1, %v3378_v29, %v6052_v35 }
  0xc8   : > { %v1065_v34 = vor.u32 %v1064_v41, %v1060_v55  ;;  %v267_v12 = vsel %vm5391_vm3, 0, %v266_v3  ;;  %3018 = vrot.lane.b32.xlu1 %v4856_v59, %s5346_s6  ;;  %v750_v28 = vsel %vm5441_vm12, %v513_v17, %v749_v30  ;;  %v6173_v16 = vsel %vm5421_vm9, %v4745_v42, %v1365_v9 }
  0xc9   : > { %v1056_v61 = vrot.slane %v1055_v60, 4  ;;  %v1367_v26 = vrot.slane %v1365_v9, 4  ;;  %268 = vst [vmem:[#allocation2 + $0x78] sm:$0x1] %v267_v12  ;;  %751 = vst [vmem:[#allocation2 + $0x6c] sm:$0xf] %v750_v28  ;;  %v3381_v60 = vsel %vm3372_vm15, %v4787_v38, %v2753_v51 }
  0xca   : > { %v1066_v56 = vrot.slane %v1065_v34, 4  ;;  %v525_v39 = vshrl.u32 %v355_v52, 16  ;;  %v528_v33 = vshll.u32 %v355_v52, 16  ;;  %v533_v18 = vshrl.u32 %v356_v7, 16  ;;  %2938 = vrot.lane.b32.xlu0 %v4840_v10, %s5341_s26  ;;  %v753_v59 = vld [vmem:[#allocation2 + $0x74] sm:$0x1]  ;;  %v6195_v10 = vpop.permute.xlu1 %3008 }
  0xcb   : > { %v1061_v17 = vsel %vm5448_vm13, %v1056_v61, %v1060_v55  ;;  %v6183_v3 = vsel %vm5421_vm9, %v1367_v26, %v1368_v23  ;;  %v536_v41 = vshll.u32 %v356_v7, 16  ;;  %v317_v13 = vsel %vm5402_vm5, 0, %v316_v8  ;;  %v2929_v23 = vpop.permute.xlu0 %2928 }
  0xcc   : > { %v754_v42 = vsel %vm5391_vm3, %v523_v46, %v753_v59  ;;  %v1071_v52 = vsel %vm5448_vm13, %v1066_v56, %v1070_v11  ;;  %v527_v36 = vrot.slane %v525_v39, 7  ;;  %318 = vst [vmem:[#allocation2 + $0x80] sm:$0x1] %v317_v13  ;;  %v4825_v55 = vcombine.low %v6173_v16, %v6183_v3 }
  0xcd   : > { %755 = vst [vmem:[#allocation2 + $0x74] sm:$0x1] %v754_v42  ;;  %v6199_v49 = vrot.slane %v533_v18, 7  ;;  %vm3487_vm4 = vcmask 130048   ;;  %v6205_v9 = vcombine.low %v1061_v17, %v1071_v52  ;;  %vm3520_vm6 = vcmask 162816  }
  0xce   : > { %v530_v35 = vor.u32 %v528_v33, %v527_v36  ;;  %v531_v29 = vrot.slane %v527_v36, 4  ;;  %3098 = vrot.lane.b32.xlu0 %v4872_v15, %s5343_s28  ;;  %v2043_v7 = vld [vmem:[#allocation2 + $0x70] sm:$0xf]  ;;  %v3489_v24 = vsel %vm3487_vm4, %v6116_v47, %v6133_v63  ;;  %v3427_v38 = vsel %vm3421_vm1, %v3381_v60, %v6110_v32  ;;  %v6235_v33 = vpop.permute.xlu1 %3184 }
  0xcf   : > { %v6211_v8 = vld [vmem:[#allocation2 + $0x70] sm:$0xf]  ;;  %v538_v46 = vor.u32 %v536_v41, %v6199_v49  ;;  %v540_v53 = vrot.slane %v6199_v49, 4  ;;  %v2258_v30 = vshrl.u32 %v2043_v7, 16  ;;  %v2254_v34 = vshll.u32 %v2043_v7, 16  ;;  %v6238_v13 = vpop.permute.xlu0 %3088 }
  0xd0   : > { %v2575_v11 = vrot.slane %v2043_v7, 5  ;;  %v1673_v44 = vshrl.u32 %v6211_v8, 16  ;;  %v756_v37 = vld [vmem:[#allocation2 + $0x78] sm:$0xf]  ;;  %v2042_v15 = vld [vmem:[#allocation2 + $0x6c] sm:$0xf]  ;;  %v6229_v47 = vsel %vm3520_vm6, %v3489_v24, %v6029_v31  ;;  %v6232_v32 = vsel %vm3454_vm2, %v3427_v38, %v2929_v23 }
  0xd1   : > { %v2467_v12 = vld [vmem:[#allocation2 + $0x6c] sm:$0xe]  ;;  %v539_v28 = vsel %vm5455_vm14, %v531_v29, %v538_v46  ;;  %v757_v61 = vsel %vm5441_vm12, %v530_v35, %v756_v37  ;;  %v2245_v63 = vshrl.u32 %v2042_v15, 16  ;;  %v2248_v26 = vshll.u32 %v2042_v15, 16 }
  0xd2   : > { %v6221_v51 = vld [vmem:[#allocation2 + $0x6c] sm:$0xf]  ;;  %v4888_v56 = vcombine.low %v2042_v15, %v2043_v7  ;;  %v2256_v39 = vrot.slane %v2254_v34, 5  ;;  %758 = vst [vmem:[#allocation2 + $0x78] sm:$0xf] %v757_v61  ;;  %v2260_v18 = vrot.slane %v2258_v30, 4 }
  0xd3   : > { %759 = vst.msk [vmem:[#allocation2 + $0x7c] sm:$0xf] %vm226_vm0, %v539_v28  ;;  %v4776_v59 = vrot.slane %v2467_v12, 9  ;;  %v2577_v17 = vrot.slane %v2575_v11, 4  ;;  %v1660_v41 = vshrl.u32 %v6221_v51, 16  ;;  %v2247_v31 = vrot.slane %v2245_v63, 4  ;;  %v6249_v0 = vpop.permute.xlu1 %3344 }
  0xd4   : > { %v2250_v42 = vrot.slane %v2248_v26, 5  ;;  %3194 = vrot.lane.b32.xlu1 %v4888_v56, %s5342_s27  ;;  %v2067_v52 = vld [vmem:[#allocation2 + $0x74] sm:$0x1]  ;;  %v1663_v36 = vshll.u32 %v6221_v51, 16  ;;  %v4841_v60 = vcombine.low %v6221_v51, %v6211_v8  ;;  %v2261_v35 = vor.u32 %v2260_v18, %v2256_v39  ;;  %v1859_v46 = vld [vmem:[#allocation2 + $0x6c] sm:$0xe] }
  0xd5   : > { %v2264_v29 = vshll.u32 %v2067_v52, 16  ;;  %v2576_v23 = vsel %vm5421_vm9, %v4776_v59, %v2575_v11  ;;  %v2578_v7 = vrot.slane %v2067_v52, 5  ;;  %v1662_v38 = vrot.slane %v1660_v41, 4  ;;  %v1459_v34 = vld [vmem:[#allocation2 + $0x74] sm:$0x1] }
  0xd6   : > { %v2251_v24 = vor.u32 %v2250_v42, %v2247_v31  ;;  %v1665_v30 = vrot.slane %v1663_v36, 5  ;;  %v1669_v37 = vshll.u32 %v6211_v8, 16  ;;  %v2262_v15 = vrot.slane %v2261_v35, 4  ;;  %v6291_v49 = vld [vmem:[#allocation2 + $0x74] sm:$0x1] }
  0xd7   : > { %v2266_v12 = vrot.slane %v2264_v29, 5  ;;  %v2579_v28 = vsel %vm5421_vm9, %v2577_v17, %v2578_v7  ;;  %v1675_v61 = vrot.slane %v1673_v44, 4  ;;  %v1679_v59 = vshll.u32 %v1459_v34, 16  ;;  %v6256_v52 = vpop.permute.xlu0 %3264 }
  0xd8   : > { %v2252_v63 = vrot.slane %v2251_v24, 4  ;;  %v4920_v26 = vcombine.low %v2576_v23, %v2579_v28  ;;  %v1666_v56 = vor.u32 %v1665_v30, %v1662_v38  ;;  %v1671_v18 = vrot.slane %v1669_v37, 5  ;;  %v760_v23 = vld [vmem:[#allocation2 + $0x80] sm:$0x1] }
  0xd9   : > { %v2267_v11 = vsel %vm5448_vm13, %v2262_v15, %v2266_v12  ;;  %v4761_v41 = vrot.slane %v1859_v46, 9  ;;  %v1973_v31 = vrot.slane %v6211_v8, 5  ;;  %v6254_v42 = vld [vmem:[#allocation2 + $0x78] sm:$0xf]  ;;  %vm3553_vm7 = vcmask 195584  }
  0xda   : > { %v2257_v44 = vsel %vm5448_vm13, %v2252_v63, %v2256_v39  ;;  %3354 = vrot.lane.b32.xlu1 %v4920_v26, %s5344_s29  ;;  %v1667_v17 = vrot.slane %v1666_v56, 4  ;;  %v1676_v36 = vor.u32 %v1675_v61, %v1671_v18  ;;  %v1976_v35 = vrot.slane %v1459_v34, 5  ;;  %v6261_v29 = vld [vmem:[#allocation2 + $0x7c] sm:$0xf]  ;;  %v2468_v12 = vld [vmem:[#allocation2 + $0x78] sm:$0xe] }
  0xdb   : > { %v4904_v7 = vcombine.low %v2257_v44, %v2267_v11  ;;  %v1681_v46 = vrot.slane %v1679_v59, 5  ;;  %v6265_v24 = vsel %vm5421_vm9, %v4761_v41, %v1973_v31  ;;  %v1975_v38 = vrot.slane %v1973_v31, 4  ;;  %v823_v26 = vld [vmem:[#allocation2 + $0x6c] sm:$0xf]  ;;  %v824_v41 = vld [vmem:[#allocation2 + $0x70] sm:$0xf]  ;;  %v6293_v31 = vpop.permute.xlu1 %2834  ;;  %v6296_v3 = vpop.permute.xlu0 %2754 }
  0xdc   : > { %v1672_v30 = vsel %vm5448_vm13, %v1667_v17, %v1671_v18  ;;  %v1677_v37 = vrot.slane %v1676_v36, 4  ;;  %v2269_v39 = vshrl.u32 %v6254_v42, 16  ;;  %v2272_v15 = vshll.u32 %v6254_v42, 16 }
  0xdd   : > { %3274 = vrot.lane.b32.xlu0 %v4904_v7, %s5345_s30  ;;  %v6274_v34 = vsel %vm5421_vm9, %v1975_v38, %v1976_v35  ;;  %v2282_v28 = vshrl.u32 %v6261_v29, 16  ;;  %v4889_v61 = vcombine.low %v6254_v42, %v6261_v29  ;;  %v761_v63 = vsel %vm5391_vm3, %v540_v53, %v760_v23 }
  0xde   : > { %2844 = vrot.lane.b32.xlu1 %v4825_v55, %s5339_s24  ;;  %v1682_v56 = vsel %vm5448_vm13, %v1677_v37, %v1681_v46  ;;  %v4873_v18 = vcombine.low %v6265_v24, %v6274_v34  ;;  %v2271_v11 = vrot.slane %v2269_v39, 4  ;;  %v2274_v59 = vrot.slane %v2272_v15, 5  ;;  %762 = vst [vmem:[#allocation2 + $0x80] sm:$0x1] %v761_v63  ;;  %v1249_v15 = vld [vmem:[#allocation2 + $0x6c] sm:$0xe] }
  0xdf   : > { %v4857_v53 = vcombine.low %v1672_v30, %v1682_v56  ;;  %v2278_v42 = vshll.u32 %v6261_v29, 16  ;;  %v2284_v44 = vrot.slane %v2282_v28, 4  ;;  %v4777_v16 = vrot.slane %v2468_v12, 9  ;;  %v6312_v56 = vld [vmem:[#allocation2 + $0x78] sm:$0xf] }
  0xe0   : > { %v2275_v55 = vor.u32 %v2274_v59, %v2271_v11  ;;  %v2582_v17 = vrot.slane %v6261_v29, 5  ;;  %v1073_v36 = vshrl.u32 %v823_v26, 16  ;;  %v1076_v35 = vshll.u32 %v823_v26, 16  ;;  %v6314_v11 = vpop.permute.xlu1 %3010 }
  0xe1   : > { %2764 = vrot.lane.b32.xlu0 %v6205_v9, %s5340_s25  ;;  %v2280_v23 = vrot.slane %v2278_v42, 5  ;;  %v1082_v7 = vshll.u32 %v824_v41, 16  ;;  %v1086_v46 = vshrl.u32 %v824_v41, 16  ;;  %v1092_v24 = vshll.u32 %v6291_v49, 16 }
  0xe2   : > { %3020 = vrot.lane.b32.xlu1 %v4857_v53, %s5346_s6  ;;  %v2276_v38 = vrot.slane %v2275_v55, 4  ;;  %v2583_v30 = vsel %vm5421_vm9, %v4777_v16, %v2582_v17  ;;  %v2584_v37 = vrot.slane %v2582_v17, 4  ;;  %v1075_v39 = vrot.slane %v1073_v36, 4 }
  0xe3   : > { %v2285_v29 = vor.u32 %v2284_v44, %v2280_v23  ;;  %v1078_v12 = vrot.slane %v1076_v35, 5  ;;  %v1084_v34 = vrot.slane %v1082_v7, 5  ;;  %v1088_v28 = vrot.slane %v1086_v46, 4 }
  0xe4   : > { %v2281_v9 = vsel %vm5448_vm13, %v2276_v38, %v2280_v23  ;;  %v1094_v63 = vrot.slane %v1092_v24, 5  ;;  %v6310_v26 = vsel %vm3553_vm7, %v6229_v47, %v5976_v25  ;;  %vm3727_vm8 = vcmask 1041408   ;;  %v6324_v47 = vpop.permute.xlu0 %2930 }
  0xe5   : > { %2940 = vrot.lane.b32.xlu0 %v4841_v60, %s5341_s26  ;;  %v2068_v59 = vld [vmem:[#allocation2 + $0x80] sm:$0x1]  ;;  %v2286_v53 = vrot.slane %v2285_v29, 4  ;;  %v1079_v42 = vor.u32 %v1078_v12, %v1075_v39  ;;  %v1089_v44 = vor.u32 %v1088_v28, %v1084_v34  ;;  %4935 = vmatprep.subr.msk.bf16.mxu0 %vm3727_vm8, %v4934_v21  ;;  %v4746_v25 = vrot.slane %v1249_v15, 9 }
  0xe6   : > { %3196 = vrot.lane.b32.xlu1 %v4889_v61, %s5342_s27  ;;  %v2288_v16 = vshll.u32 %v2068_v59, 16  ;;  %v2585_v55 = vrot.slane %v2068_v59, 5  ;;  %v1372_v17 = vrot.slane %v824_v41, 5  ;;  %v1375_v8 = vrot.slane %v6291_v49, 5  ;;  %v6337_v41 = vld [vmem:[#allocation2 + $0x7c] sm:$0xf] }
  0xe7   : > { %v1080_v51 = vrot.slane %v1079_v42, 4  ;;  %v1090_v60 = vrot.slane %v1089_v44, 4  ;;  %v3729_v36 = vsel %vm3727_vm8, %v4933_v40, 0  ;;  %v1684_v35 = vshrl.u32 %v6312_v56, 16  ;;  %v1460_v24 = vld [vmem:[#allocation2 + $0x80] sm:$0x1]  ;;  %v6349_v29 = vpop.permute.xlu1 %3186 }
  0xe8   : > { %v2290_v21 = vrot.slane %v2288_v16, 5  ;;  %v2586_v23 = vsel %vm5421_vm9, %v2584_v37, %v2585_v55  ;;  %v1373_v61 = vsel %vm5421_vm9, %v4746_v25, %v1372_v17  ;;  %v1374_v7 = vrot.slane %v1372_v17, 4  ;;  %3739 = vmatpush1.bf16.msra.mxu0 %v3729_v36  ;;  %v6355_v28 = vpop.permute.xlu0 %3090 }
  0xe9   : > { %3100 = vrot.lane.b32.xlu0 %v4873_v18, %s5343_s28  ;;  %v4921_v49 = vcombine.low %v2583_v30, %v2586_v23  ;;  %v1085_v58 = vsel %vm5448_vm13, %v1080_v51, %v1084_v34  ;;  %v1095_v40 = vsel %vm5448_vm13, %v1090_v60, %v1094_v63  ;;  %v1686_v46 = vrot.slane %v1684_v35, 4 }
  0xea   : > { %v2291_v38 = vsel %vm5448_vm13, %v2286_v53, %v2290_v21  ;;  %v4810_v37 = vcombine.low %v1085_v58, %v1095_v40  ;;  %v1376_v39 = vsel %vm5421_vm9, %v1374_v7, %v1375_v8  ;;  %v1687_v15 = vshll.u32 %v6312_v56, 16  ;;  %v358_v21 = vld [vmem:[%s5428_s23 + $0x54] sm:$0xf]  ;;  %v319_v7 = vld [vmem:[#allocation2 + $0x8c] sm:$0x1] }
  0xeb   : > { %v4905_v18 = vcombine.low %v2281_v9, %v2291_v38  ;;  %3356 = vrot.lane.b32.xlu1 %v4921_v49, %s5344_s29  ;;  %v4826_v30 = vcombine.low %v1373_v61, %v1376_v39  ;;  %v1697_v12 = vshrl.u32 %v6337_v41, 16  ;;  %v4842_v34 = vcombine.low %v6312_v56, %v6337_v41  ;;  %v1860_v9 = vld [vmem:[#allocation2 + $0x78] sm:$0xe] }
  0xec   : > { %v1689_v63 = vrot.slane %v1687_v15, 5  ;;  %v3458_v59 = vsel %vm3454_vm2, %v6193_v62, %v6002_v5  ;;  %v1693_v53 = vshll.u32 %v6337_v41, 16  ;;  %v1703_v42 = vshll.u32 %v1460_v24, 16  ;;  %v269_v5 = vld [vmem:[#allocation2 + $0x84] sm:$0x1] }
  0xed   : > { %3276 = vrot.lane.b32.xlu0 %v4905_v18, %s5345_s30  ;;  %v3491_v44 = vsel %vm3487_vm4, %v3458_v59, %v6158_v45  ;;  %v1699_v25 = vrot.slane %v1697_v12, 4  ;;  %vm3586_vm10 = vcmask 228352   ;;  %vm3619_vm11 = vcmask 261120   ;;  %v357_v62 = vld [vmem:[%s5428_s23 + $0x50] sm:$0xf] }
  0xee   : > { %v3524_v56 = vsel %vm3520_vm6, %v3491_v44, %v6060_v6  ;;  %v1690_v16 = vor.u32 %v1689_v63, %v1686_v46  ;;  %v1695_v55 = vrot.slane %v1693_v53, 5  ;;  %v1705_v17 = vrot.slane %v1703_v42, 5  ;;  %v6377_v23 = vpop.permute.xlu1 %3346  ;;  %v826_v12 = vld [vmem:[#allocation2 + $0x7c] sm:$0xf] }
  0xef   : > { %2846 = vrot.lane.b32.xlu1 %v4826_v30, %s5339_s24  ;;  %v3557_v8 = vsel %vm3553_vm7, %v3524_v56, %v5994_v27  ;;  %v3588_v45 = vsel %vm3586_vm10, %v6310_v26, %v6091_v54  ;;  %vm3694_vm8 = vcmask 293888   ;;  %v4762_v51 = vrot.slane %v1860_v9, 9 }
  0xf0   : > { %v1691_v60 = vrot.slane %v1690_v16, 4  ;;  %v1700_v36 = vor.u32 %v1699_v25, %v1695_v55  ;;  %v3621_v6 = vsel %vm3619_vm11, %v3588_v45, %v6016_v19  ;;  %v1980_v35 = vrot.slane %v6337_v41, 5  ;;  %v6386_v19 = vpop.permute.xlu0 %3266  ;;  %v847_v25 = vld [vmem:[#allocation2 + $0x80] sm:$0x1] }
  0xf1   : > { %2766 = vrot.lane.b32.xlu0 %v4810_v37, %s5340_s25  ;;  %4936 = vmatmul.mubr.msk.bf16.vlgmr.msra.gmra.mrb[0].mxu0 %vm3694_vm8, %v3621_v6  ;;  %v1983_v27 = vrot.slane %v1460_v24, 5  ;;  %v3493_v54 = vsel %vm3487_vm4, %v6232_v32, %v6195_v10  ;;  %v270_v26 = vsel %vm5391_vm3, 0, %v269_v5  ;;  %v542_v61 = vshrl.u32 %v357_v62, 16  ;;  %v825_v37 = vld [vmem:[#allocation2 + $0x78] sm:$0xf] }
  0xf2   : > { %v1696_v41 = vsel %vm5448_vm13, %v1691_v60, %v1695_v55  ;;  %v1701_v49 = vrot.slane %v1700_v36, 4  ;;  %v1981_v58 = vsel %vm5421_vm9, %v4762_v51, %v1980_v35  ;;  %v1982_v40 = vrot.slane %v1980_v35, 4  ;;  %271 = vst [vmem:[#allocation2 + $0x84] sm:$0x1] %v270_v26  ;;  %v6406_v16 = vpop.permute.xlu1 %2836  ;;  %v6411_v5 = vld [vmem:[#allocation2 + $0x30] sm:$0xf] }
  0xf3   : > { %v7765_v46 = vmov 0   ;;  %v3526_v10 = vsel %vm3520_vm6, %v3493_v54, %v6238_v13  ;;  %v544_v32 = vrot.slane %v542_v61, 7  ;;  %v545_v24 = vshll.u32 %v357_v62, 16  ;;  %v6413_v62 = vld [vmem:[#allocation2 + $0x34] sm:$0xf] }
  0xf4   : > { %3776 = vmatprep.mubr.bf16.mxu0 %v7765_v46  ;;  %v550_v38 = vshrl.u32 %v358_v21, 16  ;;  %v1706_v39 = vsel %vm5448_vm13, %v1701_v49, %v1705_v17  ;;  %v1984_v15 = vsel %vm5421_vm9, %v1982_v40, %v1983_v27  ;;  %v553_v18 = vshll.u32 %v358_v21, 16  ;;  %v6417_v45 = vpop.permute.xlu0 %2756  ;;  %v1250_v36 = vld [vmem:[#allocation2 + $0x78] sm:$0xe]  ;;  %v272_v6 = vld [vmem:[#allocation2 + $0x90] sm:$0x1] }
  0xf5   : > { %v320_v30 = vsel %vm5402_vm5, 0, %v319_v7  ;;  %2942 = vrot.lane.b32.xlu0 %v4842_v34, %s5341_s26  ;;  %v4858_v63 = vcombine.low %v1696_v41, %v1706_v39  ;;  %v4874_v59 = vcombine.low %v1981_v58, %v1984_v15  ;;  %v547_v13 = vor.u32 %v545_v24, %v544_v32 }
  0xf6   : > { %v548_v53 = vrot.slane %v544_v32, 4  ;;  %321 = vst [vmem:[#allocation2 + $0x8c] sm:$0x1] %v320_v30  ;;  %v552_v42 = vrot.slane %v550_v38, 7  ;;  %v3559_v9 = vsel %vm3553_vm7, %v3526_v10, %v6235_v33  ;;  %v3590_v44 = vsel %vm3586_vm10, %v3557_v8, %v6146_v4  ;;  %v359_v32 = vld [vmem:[%s5428_s23 + $0x58] sm:$0xf] }
  0xf7   : > { %v1097_v56 = vshrl.u32 %v825_v37, 16  ;;  %3022 = vrot.lane.b32.xlu1 %v4858_v63, %s5346_s6  ;;  %v3592_v34 = vsel %vm3586_vm10, %v3559_v9, %v6256_v52  ;;  %v1100_v55 = vshll.u32 %v825_v37, 16  ;;  %v1106_v17 = vshll.u32 %v826_v12, 16 }
  0xf8   : > { %v4789_v33 = vcombine.low %v6411_v5, %v6413_v62  ;;  %v555_v4 = vor.u32 %v553_v18, %v552_v42  ;;  %v3623_v8 = vsel %vm3619_vm11, %v3590_v44, %v6080_v48  ;;  %v1110_v60 = vshrl.u32 %v826_v12, 16  ;;  %v6450_v63 = vpop.permute.xlu0 %2932 }
  0xf9   : > { %v1099_v51 = vrot.slane %v1097_v56, 4  ;;  %3102 = vrot.lane.b32.xlu0 %v4874_v59, %s5343_s28  ;;  %v557_v52 = vrot.slane %v552_v42, 4  ;;  %v763_v35 = vld [vmem:[#allocation2 + $0x84] sm:$0xf]  ;;  %4937 = vmatmul.mubr.msk.bf16.gmra.mrb[4].mxu0 %vm3694_vm8, %v3623_v8  ;;  %v1102_v21 = vrot.slane %v1100_v55, 5  ;;  %v1108_v27 = vrot.slane %v1106_v17, 5 }
  0xfa   : > { %v1116_v54 = vshll.u32 %v847_v25, 16  ;;  %v556_v26 = vsel %vm5455_vm14, %v548_v53, %v555_v4  ;;  %v764_v48 = vsel %vm5441_vm12, %v547_v13, %v763_v35  ;;  %v1112_v61 = vrot.slane %v1110_v60, 4  ;;  %3786 = vmatprep.mubr.bf16.mxu0 %v7765_v46  ;;  %v322_v42 = vld [vmem:[#allocation2 + $0x98] sm:$0x1] }
  0xfb   : > { %v7766_v7 = vcombine.low %v6040_v22, %v6042_v20  ;;  %765 = vst [vmem:[#allocation2 + $0x84] sm:$0xf] %v764_v48  ;;  %766 = vst.msk [vmem:[#allocation2 + $0x88] sm:$0xf] %vm226_vm0, %v556_v26  ;;  %v1103_v49 = vor.u32 %v1102_v21, %v1099_v51  ;;  %v4747_v40 = vrot.slane %v1250_v36, 9  ;;  %v1379_v10 = vrot.slane %v826_v12, 5 }
  0xfc   : > { %v1118_v58 = vrot.slane %v1116_v54, 5  ;;  %v1113_v38 = vor.u32 %v1112_v61, %v1108_v27  ;;  %v1382_v37 = vrot.slane %v847_v25, 5  ;;  %v273_v22 = vsel %vm5391_vm3, 0, %v272_v6  ;;  %v6440_v20 = vld [vmem:[%s5428_s23 + $0x5c] sm:$0xf] }
  0xfd   : > { %v3384_v41 = vsel %vm3372_vm15, %v7766_v7, %v6296_v3  ;;  %v767_v24 = vld [vmem:[#allocation2 + $0x8c] sm:$0x1]  ;;  %v6442_v3 = vpop.permute.xlu1 %3012  ;;  %v1104_v18 = vrot.slane %v1103_v49, 4  ;;  %v6448_v30 = vsel %vm5421_vm9, %v4747_v40, %v1379_v10  ;;  %v1381_v12 = vrot.slane %v1379_v10, 4  ;;  %274 = vst [vmem:[#allocation2 + $0x90] sm:$0x1] %v273_v22  ;;  %v6500_v7 = vpop.permute.xlu0 %3092 }
  0xfe   : > { %v3429_v39 = vsel %vm3421_vm1, %v3384_v41, %v6293_v31  ;;  %v768_v15 = vsel %vm5391_vm3, %v557_v52, %v767_v24  ;;  %v1114_v31 = vrot.slane %v1113_v38, 4  ;;  %v559_v13 = vshrl.u32 %v359_v32, 16 }
  0xff   : > { %769 = vst [vmem:[#allocation2 + $0x8c] sm:$0x1] %v768_v15  ;;  %v3462_v59 = vsel %vm3454_vm2, %v3429_v39, %v6324_v47  ;;  %v562_v53 = vshll.u32 %v359_v32, 16  ;;  %v1109_v9 = vsel %vm5448_vm13, %v1104_v18, %v1108_v27  ;;  %v6458_v44 = vsel %vm5421_vm9, %v1381_v12, %v1382_v37 }
 0x100   : > { %v3495_v25 = vsel %vm3487_vm4, %v3462_v59, %v6314_v11  ;;  %v567_v56 = vshrl.u32 %v6440_v20, 16  ;;  %v1119_v55 = vsel %vm5448_vm13, %v1114_v31, %v1118_v58  ;;  %v3625_v47 = vsel %vm3619_vm11, %v3592_v34, %v6249_v0 }
 0x101   : > { %v4827_v17 = vcombine.low %v6448_v30, %v6458_v44  ;;  %v6469_v4 = vrot.slane %v559_v13, 7  ;;  %4938 = vmatmul.mubr.msk.bf16.gmra.mrb[8].mxu0 %vm3694_vm8, %v3625_v47  ;;  %v3528_v8 = vsel %vm3520_vm6, %v3495_v25, %v6355_v28  ;;  %v570_v11 = vshll.u32 %v6440_v20, 16  ;;  %v6496_v21 = vpop.permute.xlu1 %3188  ;;  %v6514_v25 = vld [vmem:[#allocation2 + $0x40] sm:$0xf] }
 0x102   : > { %v6474_v51 = vrot.slane %v567_v56, 7  ;;  %v323_v60 = vsel %vm5402_vm5, 0, %v322_v42  ;;  %v2046_v36 = vld [vmem:[#allocation2 + $0x84] sm:$0xf]  ;;  %v2047_v6 = vld [vmem:[#allocation2 + $0x88] sm:$0xf]  ;;  %v6479_v34 = vcombine.low %v1109_v9, %v1119_v55  ;;  %v6486_v35 = vsel %vm3553_vm7, %v3528_v8, %v6349_v29  ;;  %3796 = vmatprep.mubr.bf16.mxu0 %v7765_v46 }
 0x103   : > { %v2469_v0 = vld [vmem:[#allocation2 + $0x84] sm:$0xe]  ;;  %v6482_v52 = vor.u32 %v562_v53, %v6469_v4  ;;  %324 = vst [vmem:[#allocation2 + $0x98] sm:$0x1] %v323_v60  ;;  %v6494_v28 = vsel %vm3372_vm15, %v4789_v33, %v6417_v45  ;;  %v2293_v27 = vshrl.u32 %v2046_v36, 16  ;;  %v2296_v54 = vshll.u32 %v2046_v36, 16 }
 0x104   : > { %v2306_v26 = vshrl.u32 %v2047_v6, 16  ;;  %v4890_v48 = vcombine.low %v2046_v36, %v2047_v6  ;;  %v6498_v61 = vld [vmem:[#allocation2 + $0x84] sm:$0xf]  ;;  %v2302_v29 = vshll.u32 %v2047_v6, 16  ;;  %v4778_v41 = vrot.slane %v2469_v0, 9 }
 0x105   : > { %v2589_v49 = vrot.slane %v2047_v6, 5  ;;  %v6502_v58 = vld [vmem:[#allocation2 + $0x88] sm:$0xf]  ;;  %v1708_v5 = vshrl.u32 %v6498_v61, 16  ;;  %v2295_v62 = vrot.slane %v2293_v27, 4  ;;  %v2298_v33 = vrot.slane %v2296_v54, 5  ;;  %v6510_v42 = vpop.permute.xlu1 %3348 }
 0x106   : > { %3198 = vrot.lane.b32.xlu1 %v4890_v48, %s5342_s27  ;;  %v2069_v45 = vld [vmem:[#allocation2 + $0x8c] sm:$0x1]  ;;  %v2308_v40 = vrot.slane %v2306_v26, 4  ;;  %v1711_v10 = vshll.u32 %v6498_v61, 16  ;;  %v2304_v32 = vrot.slane %v2302_v29, 5  ;;  %v1721_v13 = vshrl.u32 %v6502_v58, 16 }
 0x107   : > { %v2312_v24 = vshll.u32 %v2069_v45, 16  ;;  %v2590_v38 = vsel %vm5421_vm9, %v4778_v41, %v2589_v49  ;;  %v2591_v37 = vrot.slane %v2589_v49, 4  ;;  %v2299_v39 = vor.u32 %v2298_v33, %v2295_v62  ;;  %v1461_v12 = vld [vmem:[#allocation2 + $0x8c] sm:$0x1]  ;;  %v1861_v53 = vld [vmem:[#allocation2 + $0x84] sm:$0xe]  ;;  %v6521_v36 = vpop.permute.xlu0 %3268 }
 0x108   : > { %v2592_v22 = vrot.slane %v2069_v45, 5  ;;  %v1710_v15 = vrot.slane %v1708_v5, 4  ;;  %v1713_v18 = vrot.slane %v1711_v10, 5  ;;  %v2309_v31 = vor.u32 %v2308_v40, %v2304_v32  ;;  %v6512_v9 = vld [vmem:[#allocation2 + $0x3c] sm:$0xf] }
 0x109   : > { %v2314_v59 = vrot.slane %v2312_v24, 5  ;;  %v4790_v56 = vcombine.low %v6512_v9, %v6514_v25  ;;  %v2300_v55 = vrot.slane %v2299_v39, 4  ;;  %v1717_v60 = vshll.u32 %v6502_v58, 16  ;;  %v770_v45 = vld [vmem:[#allocation2 + $0x90] sm:$0xf] }
 0x10a   : > { %v2593_v47 = vsel %vm5421_vm9, %v2591_v37, %v2592_v22  ;;  %v1714_v8 = vor.u32 %v1713_v18, %v1710_v15  ;;  %v2310_v6 = vrot.slane %v2309_v31, 4  ;;  %v1723_v27 = vrot.slane %v1721_v13, 4  ;;  %v827_v40 = vld [vmem:[#allocation2 + $0x84] sm:$0xf]  ;;  %v774_v37 = vld [vmem:[#allocation2 + $0x98] sm:$0x1] }
 0x10b   : > { %v4922_v0 = vcombine.low %v2590_v38, %v2593_v47  ;;  %v1727_v54 = vshll.u32 %v1461_v12, 16  ;;  %v2305_v26 = vsel %vm5448_vm13, %v2300_v55, %v2304_v32  ;;  %v1719_v29 = vrot.slane %v1717_v60, 5  ;;  %v828_v31 = vld [vmem:[#allocation2 + $0x88] sm:$0xf]  ;;  %v2759_v20 = vpop.permute.xlu0 %2758 }
 0x10c   : > { %v1715_v48 = vrot.slane %v1714_v8, 4  ;;  %v4763_v41 = vrot.slane %v1861_v53, 9  ;;  %v2315_v49 = vsel %vm5448_vm13, %v2310_v6, %v2314_v59  ;;  %v4843_v5 = vcombine.low %v6498_v61, %v6502_v58  ;;  %v6538_v59 = vpop.permute.xlu1 %2838  ;;  %v848_v53 = vld [vmem:[#allocation2 + $0x8c] sm:$0x1]  ;;  %v1251_v8 = vld [vmem:[#allocation2 + $0x84] sm:$0xe] }
 0x10d   : > { %3358 = vrot.lane.b32.xlu1 %v4922_v0, %s5344_s29  ;;  %v1729_v62 = vrot.slane %v1727_v54, 5  ;;  %v1987_v33 = vrot.slane %v6502_v58, 5  ;;  %v4906_v10 = vcombine.low %v2305_v26, %v2315_v49  ;;  %v1724_v24 = vor.u32 %v1723_v27, %v1719_v29  ;;  %v275_v26 = vld [vmem:[#allocation2 + $0x9c] sm:$0x1] }
 0x10e   : > { %v1990_v38 = vrot.slane %v1461_v12, 5  ;;  %v565_v32 = vrot.slane %v6469_v4, 4  ;;  %v1720_v39 = vsel %vm5448_vm13, %v1715_v48, %v1719_v29  ;;  %v572_v15 = vor.u32 %v570_v11, %v6474_v51 }
 0x10f   : > { %v1989_v22 = vrot.slane %v1987_v33, 4  ;;  %v574_v18 = vrot.slane %v6474_v51, 4  ;;  %3278 = vrot.lane.b32.xlu0 %v4906_v10, %s5345_s30  ;;  %v1725_v13 = vrot.slane %v1724_v24, 4  ;;  %v6543_v4 = vsel %vm5421_vm9, %v4763_v41, %v1987_v33 }
 0x110   : > { %v771_v12 = vsel %vm5441_vm12, %v6482_v52, %v770_v45  ;;  %v1121_v55 = vshrl.u32 %v827_v40, 16  ;;  %v573_v51 = vsel %vm5455_vm14, %v565_v32, %v572_v15  ;;  %v3594_v47 = vsel %vm3586_vm10, %v6486_v35, %v6386_v19  ;;  %v6574_v45 = vld [vmem:[%s5428_s23 + $0x60] sm:$0xf] }
 0x111   : > { %2848 = vrot.lane.b32.xlu1 %v4827_v17, %s5339_s24  ;;  %772 = vst [vmem:[#allocation2 + $0x90] sm:$0xf] %v771_v12  ;;  %v775_v11 = vsel %vm5391_vm3, %v574_v18, %v774_v37  ;;  %v1124_v52 = vshll.u32 %v827_v40, 16  ;;  %v1730_v60 = vsel %vm5448_vm13, %v1725_v13, %v1729_v62  ;;  %v1991_v30 = vsel %vm5421_vm9, %v1989_v22, %v1990_v38  ;;  %v6576_v40 = vpop.permute.xlu1 %3014  ;;  %v6586_v38 = vpop.permute.xlu0 %2934  ;;  %v6620_v12 = vld [vmem:[#allocation2 + $0x48] sm:$0xf] }
 0x112   : > { %773 = vst.msk [vmem:[#allocation2 + $0x94] sm:$0xf] %vm226_vm0, %v573_v51  ;;  %776 = vst [vmem:[#allocation2 + $0x98] sm:$0x1] %v775_v11  ;;  %v1123_v44 = vrot.slane %v1121_v55, 4  ;;  %v1130_v17 = vshll.u32 %v828_v31, 16  ;;  %v4859_v6 = vcombine.low %v1720_v39, %v1730_v60  ;;  %v3627_v35 = vsel %vm3619_vm11, %v3594_v47, %v6377_v23 }
 0x113   : > { %v1126_v0 = vrot.slane %v1124_v52, 5  ;;  %v1134_v27 = vshrl.u32 %v828_v31, 16  ;;  %v1140_v54 = vshll.u32 %v848_v53, 16  ;;  %2768 = vrot.lane.b32.xlu0 %v6479_v34, %s5340_s25  ;;  %v4748_v48 = vrot.slane %v1251_v8, 9  ;;  %4939 = vmatmul.mubr.msk.bf16.gmra.mrb[12].mxu0 %vm3694_vm8, %v3627_v35 }
 0x114   : > { %v6566_v19 = vrot.slane %v1130_v17, 5  ;;  %v1386_v29 = vrot.slane %v828_v31, 5  ;;  %v4875_v41 = vcombine.low %v6543_v4, %v1991_v30  ;;  %v1389_v33 = vrot.slane %v848_v53, 5  ;;  %3806 = vmatprep.mubr.bf16.mxu0 %v7765_v46 }
 0x115   : > { %3024 = vrot.lane.b32.xlu1 %v4859_v6, %s5346_s6  ;;  %v1127_v49 = vor.u32 %v1126_v0, %v1123_v44  ;;  %v1136_v62 = vrot.slane %v1134_v27, 4  ;;  %v6578_v34 = vrot.slane %v1140_v54, 5  ;;  %v3431_v23 = vsel %vm3421_vm1, %v6494_v28, %v6406_v16  ;;  %v6630_v60 = vpop.permute.xlu1 %3190  ;;  %v6634_v0 = vpop.permute.xlu0 %3094 }
 0x116   : > { %v1388_v10 = vrot.slane %v1386_v29, 4  ;;  %v276_v24 = vsel %vm5391_vm3, 0, %v275_v26  ;;  %v6593_v39 = vsel %vm5421_vm9, %v4748_v48, %v1386_v29  ;;  %v3464_v22 = vsel %vm3454_vm2, %v3431_v23, %v6450_v63 }
 0x117   : > { %v6588_v32 = vrot.slane %v1127_v49, 4  ;;  %v1137_v37 = vor.u32 %v1136_v62, %v6566_v19  ;;  %277 = vst [vmem:[#allocation2 + $0x9c] sm:$0x1] %v276_v24  ;;  %2944 = vrot.lane.b32.xlu0 %v4843_v5, %s5341_s26  ;;  %v6607_v18 = vsel %vm3487_vm4, %v3464_v22, %v6442_v3  ;;  %v576_v31 = vshrl.u32 %v6574_v45, 16  ;;  %v6622_v3 = vld [vmem:[#allocation2 + $0x4c] sm:$0xf] }
 0x118   : > { %v2048_v16 = vld [vmem:[#allocation2 + $0x90] sm:$0xf]  ;;  %v6603_v15 = vsel %vm5421_vm9, %v1388_v10, %v1389_v33  ;;  %v6614_v63 = vsel %vm3372_vm15, %v4790_v56, %v2759_v20  ;;  %v4791_v53 = vcombine.low %v6620_v12, %v6622_v3 }
 0x119   : > { %v2470_v28 = vld [vmem:[#allocation2 + $0x90] sm:$0xe]  ;;  %v2049_v61 = vld [vmem:[#allocation2 + $0x94] sm:$0xf]  ;;  %v2317_v58 = vshrl.u32 %v2048_v16, 16  ;;  %v2320_v5 = vshll.u32 %v2048_v16, 16  ;;  %v1133_v4 = vsel %vm5448_vm13, %v6588_v32, %v6566_v19  ;;  %v4828_v10 = vcombine.low %v6593_v39, %v6603_v15 }
 0x11a   : > { %v2070_v13 = vld [vmem:[#allocation2 + $0x98] sm:$0x1]  ;;  %v2330_v9 = vshrl.u32 %v2049_v61, 16  ;;  %v4891_v25 = vcombine.low %v2048_v16, %v2049_v61  ;;  %v2326_v56 = vshll.u32 %v2049_v61, 16  ;;  %v6626_v20 = vld [vmem:[#allocation2 + $0x90] sm:$0xf] }
 0x11b   : > { %v2336_v55 = vshll.u32 %v2070_v13, 16  ;;  %v2319_v51 = vrot.slane %v2317_v58, 4  ;;  %v2322_v11 = vrot.slane %v2320_v5, 5  ;;  %v4779_v47 = vrot.slane %v2470_v28, 9  ;;  %v6628_v8 = vld [vmem:[#allocation2 + $0x94] sm:$0xf]  ;;  %3104 = vrot.lane.b32.xlu0 %v4875_v41, %s5343_s28 }
 0x11c   : > { %v2596_v52 = vrot.slane %v2049_v61, 5  ;;  %3200 = vrot.lane.b32.xlu1 %v4891_v25, %s5342_s27  ;;  %v2328_v30 = vrot.slane %v2326_v56, 5  ;;  %v2332_v44 = vrot.slane %v2330_v9, 4  ;;  %v2599_v6 = vrot.slane %v2070_v13, 5  ;;  %v1462_v23 = vld [vmem:[#allocation2 + $0x98] sm:$0x1] }
 0x11d   : > { %v2338_v17 = vrot.slane %v2336_v55, 5  ;;  %v2323_v27 = vor.u32 %v2322_v11, %v2319_v51  ;;  %v1138_v19 = vrot.slane %v1137_v37, 4  ;;  %v1732_v48 = vshrl.u32 %v6626_v20, 16  ;;  %v1862_v24 = vld [vmem:[#allocation2 + $0x90] sm:$0xe] }
 0x11e   : > { %v2597_v54 = vsel %vm5421_vm9, %v4779_v47, %v2596_v52  ;;  %v2598_v26 = vrot.slane %v2596_v52, 4  ;;  %v2333_v35 = vor.u32 %v2332_v44, %v2328_v30  ;;  %v1735_v29 = vshll.u32 %v6626_v20, 16  ;;  %v6659_v25 = vpop.permute.xlu0 %3270  ;;  %v362_v47 = vld [vmem:[%s5428_s23 + $0x64] sm:$0xf] }
 0x11f   : > { %v1745_v41 = vshrl.u32 %v6628_v8, 16  ;;  %v2324_v49 = vrot.slane %v2323_v27, 4  ;;  %v1143_v33 = vsel %vm5448_vm13, %v1138_v19, %v6578_v34  ;;  %v1734_v22 = vrot.slane %v1732_v48, 4  ;;  %v6653_v34 = vpop.permute.xlu1 %3350  ;;  %v325_v52 = vld [vmem:[#allocation2 + $0xa4] sm:$0x1] }
 0x120   : > { %v2600_v62 = vsel %vm5421_vm9, %v2598_v26, %v2599_v6  ;;  %v2334_v32 = vrot.slane %v2333_v35, 4  ;;  %v4844_v16 = vcombine.low %v6626_v20, %v6628_v8  ;;  %v1737_v61 = vrot.slane %v1735_v29, 5  ;;  %v829_v35 = vld [vmem:[#allocation2 + $0x90] sm:$0xf] }
 0x121   : > { %v4923_v37 = vcombine.low %v2597_v54, %v2600_v62  ;;  %v2329_v28 = vsel %vm5448_vm13, %v2324_v49, %v2328_v30  ;;  %v1741_v58 = vshll.u32 %v6628_v8, 16  ;;  %v1747_v5 = vrot.slane %v1745_v41, 4  ;;  %v777_v41 = vld [vmem:[#allocation2 + $0x9c] sm:$0xf] }
 0x122   : > { %v2339_v39 = vsel %vm5448_vm13, %v2334_v32, %v2338_v17  ;;  %v1751_v15 = vshll.u32 %v1462_v23, 16  ;;  %v4764_v13 = vrot.slane %v1862_v24, 9  ;;  %v1994_v9 = vrot.slane %v6628_v8, 5  ;;  %v849_v32 = vld [vmem:[#allocation2 + $0x98] sm:$0x1] }
 0x123   : > { %3360 = vrot.lane.b32.xlu1 %v4923_v37, %s5344_s29  ;;  %v4907_v56 = vcombine.low %v2329_v28, %v2339_v39  ;;  %v1738_v55 = vor.u32 %v1737_v61, %v1734_v22  ;;  %v1743_v51 = vrot.slane %v1741_v58, 5  ;;  %v1997_v11 = vrot.slane %v1462_v23, 5  ;;  %v6680_v23 = vpop.permute.xlu1 %2840  ;;  %v6684_v22 = vpop.permute.xlu0 %2760  ;;  %v1252_v39 = vld [vmem:[#allocation2 + $0x90] sm:$0xe] }
 0x124   : > { %v4812_v30 = vcombine.low %v1133_v4, %v1143_v33  ;;  %v1753_v44 = vrot.slane %v1751_v15, 5  ;;  %v6664_v6 = vsel %vm5421_vm9, %v4764_v13, %v1994_v9  ;;  %v1996_v17 = vrot.slane %v1994_v9, 4 }
 0x125   : > { %3280 = vrot.lane.b32.xlu0 %v4907_v56, %s5345_s30  ;;  %v1739_v27 = vrot.slane %v1738_v55, 4  ;;  %v1748_v54 = vor.u32 %v1747_v5, %v1743_v51  ;;  %v578_v26 = vrot.slane %v576_v31, 7  ;;  %v579_v19 = vshll.u32 %v6574_v45, 16 }
 0x126   : > { %v3530_v4 = vsel %vm3520_vm6, %v6607_v18, %v6500_v7  ;;  %v584_v48 = vshrl.u32 %v362_v47, 16  ;;  %v587_v29 = vshll.u32 %v362_v47, 16  ;;  %v326_v49 = vsel %vm5402_vm5, 0, %v325_v52 }
 0x127   : > { %2850 = vrot.lane.b32.xlu1 %v4828_v10, %s5339_s24  ;;  %v1744_v62 = vsel %vm5448_vm13, %v1739_v27, %v1743_v51  ;;  %v1749_v33 = vrot.slane %v1748_v54, 4  ;;  %v1998_v45 = vsel %vm5421_vm9, %v1996_v17, %v1997_v11  ;;  %v581_v31 = vor.u32 %v579_v19, %v578_v26  ;;  %327 = vst [vmem:[#allocation2 + $0xa4] sm:$0x1] %v326_v49  ;;  %v830_v10 = vld [vmem:[#allocation2 + $0x94] sm:$0xf] }
 0x128   : > { %v582_v24 = vrot.slane %v578_v26, 4  ;;  %v586_v7 = vrot.slane %v584_v48, 7  ;;  %v3563_v18 = vsel %vm3553_vm7, %v3530_v4, %v6496_v21  ;;  %v1145_v37 = vshrl.u32 %v829_v35, 16  ;;  %v278_v26 = vld [vmem:[#allocation2 + $0xa8] sm:$0x1] }
 0x129   : > { %2770 = vrot.lane.b32.xlu0 %v4812_v30, %s5340_s25  ;;  %v1754_v28 = vsel %vm5448_vm13, %v1749_v33, %v1753_v44  ;;  %v778_v61 = vsel %vm5441_vm12, %v581_v31, %v777_v41  ;;  %v3596_v58 = vsel %vm3586_vm10, %v3563_v18, %v6521_v36  ;;  %v1148_v5 = vshll.u32 %v829_v35, 16  ;;  %v6706_v19 = vld [vmem:[%s5428_s23 + $0x68] sm:$0xf] }
 0x12a   : > { %v4860_v15 = vcombine.low %v1744_v62, %v1754_v28  ;;  %v589_v13 = vor.u32 %v587_v29, %v586_v7  ;;  %v591_v21 = vrot.slane %v586_v7, 4  ;;  %779 = vst [vmem:[#allocation2 + $0x9c] sm:$0xf] %v778_v61  ;;  %v1147_v9 = vrot.slane %v1145_v37, 4 }
 0x12b   : > { %v1150_v56 = vrot.slane %v1148_v5, 5  ;;  %v1154_v55 = vshll.u32 %v830_v10, 16  ;;  %v1158_v51 = vshrl.u32 %v830_v10, 16  ;;  %v1164_v11 = vshll.u32 %v849_v32, 16 }
 0x12c   : > { %3026 = vrot.lane.b32.xlu1 %v4860_v15, %s5346_s6  ;;  %v590_v47 = vsel %vm5455_vm14, %v582_v24, %v589_v13  ;;  %v3629_v36 = vsel %vm3619_vm11, %v3596_v58, %v6510_v42  ;;  %v4749_v52 = vrot.slane %v1252_v39, 9  ;;  %v1393_v30 = vrot.slane %v830_v10, 5  ;;  %v6708_v42 = vpop.permute.xlu1 %3016 }
 0x12d   : > { %2946 = vrot.lane.b32.xlu0 %v4844_v16, %s5341_s26  ;;  %v4876_v44 = vcombine.low %v6664_v6, %v1998_v45  ;;  %780 = vst.msk [vmem:[#allocation2 + $0xa0] sm:$0xf] %vm226_vm0, %v590_v47  ;;  %v1151_v17 = vor.u32 %v1150_v56, %v1147_v9  ;;  %v1156_v27 = vrot.slane %v1154_v55, 5  ;;  %v1160_v54 = vrot.slane %v1158_v51, 4  ;;  %4940 = vmatmul.mubr.msk.bf16.gmra.mrb[16].mxu0 %vm3694_vm8, %v3629_v36  ;;  %v6718_v6 = vpop.permute.xlu0 %2936 }
 0x12e   : > { %v781_v35 = vld [vmem:[#allocation2 + $0xa4] sm:$0x1]  ;;  %v6712_v4 = vsel %vm5421_vm9, %v4749_v52, %v1393_v30  ;;  %v1395_v20 = vrot.slane %v1393_v30, 4  ;;  %v1396_v8 = vrot.slane %v849_v32, 5  ;;  %v3433_v16 = vsel %vm3421_vm1, %v6614_v63, %v6538_v59  ;;  %3816 = vmatprep.mubr.bf16.mxu0 %v7765_v46 }
 0x12f   : > { %v782_v48 = vsel %vm5391_vm3, %v591_v21, %v781_v35  ;;  %v1152_v29 = vrot.slane %v1151_v17, 4  ;;  %v1161_v41 = vor.u32 %v1160_v54, %v1156_v27  ;;  %v1166_v49 = vrot.slane %v1164_v11, 5 }
 0x130   : > { %783 = vst [vmem:[#allocation2 + $0xa4] sm:$0x1] %v782_v48  ;;  %v6724_v62 = vsel %vm5421_vm9, %v1395_v20, %v1396_v8  ;;  %v3466_v33 = vsel %vm3454_vm2, %v3433_v16, %v6586_v38  ;;  %v279_v59 = vsel %vm5391_vm3, 0, %v278_v26  ;;  %v593_v63 = vshrl.u32 %v6706_v19, 16  ;;  %v6747_v13 = vpop.permute.xlu1 %3192 }
 0x131   : > { %3106 = vrot.lane.b32.xlu0 %v4876_v44, %s5343_s28  ;;  %v2050_v45 = vld [vmem:[#allocation2 + $0x9c] sm:$0xf]  ;;  %v1157_v10 = vsel %vm5448_vm13, %v1152_v29, %v1156_v27  ;;  %v1162_v24 = vrot.slane %v1161_v41, 4  ;;  %v4829_v7 = vcombine.low %v6712_v4, %v6724_v62  ;;  %v3499_v18 = vsel %vm3487_vm4, %v3466_v33, %v6576_v40  ;;  %280 = vst [vmem:[#allocation2 + $0xa8] sm:$0x1] %v279_v59  ;;  %v6755_v11 = vpop.permute.xlu0 %3096 }
 0x132   : > { %v2471_v31 = vld [vmem:[#allocation2 + $0x9c] sm:$0xe]  ;;  %v2341_v38 = vshrl.u32 %v2050_v45, 16  ;;  %v2344_v32 = vshll.u32 %v2050_v45, 16  ;;  %v6740_v61 = vrot.slane %v593_v63, 7  ;;  %v596_v15 = vshll.u32 %v6706_v19, 16 }
 0x133   : > { %v4780_v37 = vrot.slane %v2471_v31, 9  ;;  %v6738_v28 = vld [vmem:[#allocation2 + $0x9c] sm:$0xf]  ;;  %v1167_v58 = vsel %vm5448_vm13, %v1162_v24, %v1166_v49  ;;  %v3532_v51 = vsel %vm3520_vm6, %v3499_v18, %v6634_v0 }
 0x134   : > { %v1756_v5 = vshrl.u32 %v6738_v28, 16  ;;  %v1759_v39 = vshll.u32 %v6738_v28, 16  ;;  %v2051_v40 = vld [vmem:[#allocation2 + $0xa0] sm:$0xf]  ;;  %v2343_v21 = vrot.slane %v2341_v38, 4  ;;  %v2346_v9 = vrot.slane %v2344_v32, 5  ;;  %v6764_v31 = vpop.permute.xlu1 %3352 }
 0x135   : > { %v6749_v56 = vcombine.low %v1157_v10, %v1167_v58  ;;  %v6751_v55 = vld [vmem:[#allocation2 + $0xa0] sm:$0xf]  ;;  %v2354_v47 = vshrl.u32 %v2051_v40, 16  ;;  %v4892_v36 = vcombine.low %v2050_v45, %v2051_v40  ;;  %v2350_v52 = vshll.u32 %v2051_v40, 16  ;;  %v1863_v45 = vld [vmem:[#allocation2 + $0x9c] sm:$0xe]  ;;  %v6770_v38 = vpop.permute.xlu0 %3272 }
 0x136   : > { %v2603_v30 = vrot.slane %v2051_v40, 5  ;;  %v2347_v44 = vor.u32 %v2346_v9, %v2343_v21  ;;  %v1758_v17 = vrot.slane %v1756_v5, 4  ;;  %v1761_v27 = vrot.slane %v1759_v39, 5  ;;  %v364_v39 = vld [vmem:[%s5428_s23 + $0x6c] sm:$0xf] }
 0x137   : > { %v1769_v54 = vshrl.u32 %v6751_v55, 16  ;;  %3202 = vrot.lane.b32.xlu1 %v4892_v36, %s5342_s27  ;;  %v2071_v26 = vld [vmem:[#allocation2 + $0xa4] sm:$0x1]  ;;  %v2352_v19 = vrot.slane %v2350_v52, 5  ;;  %v2356_v35 = vrot.slane %v2354_v47, 4  ;;  %v3565_v0 = vsel %vm3553_vm7, %v3532_v51, %v6630_v60 }
 0x138   : > { %v2605_v20 = vrot.slane %v2603_v30, 4  ;;  %v2348_v8 = vrot.slane %v2347_v44, 4  ;;  %v2360_v16 = vshll.u32 %v2071_v26, 16  ;;  %v2604_v48 = vsel %vm5421_vm9, %v4780_v37, %v2603_v30  ;;  %v1463_v41 = vld [vmem:[#allocation2 + $0xa4] sm:$0x1] }
 0x139   : > { %v2606_v29 = vrot.slane %v2071_v26, 5  ;;  %v2357_v49 = vor.u32 %v2356_v35, %v2352_v19  ;;  %v1762_v33 = vor.u32 %v1761_v27, %v1758_v17  ;;  %v1765_v59 = vshll.u32 %v6751_v55, 16  ;;  %v784_v47 = vld [vmem:[#allocation2 + $0xa8] sm:$0xf]  ;;  %v328_v17 = vld [vmem:[#allocation2 + $0xb0] sm:$0x1] }
 0x13a   : > { %v1771_v63 = vrot.slane %v1769_v54, 4  ;;  %v2353_v10 = vsel %vm5448_vm13, %v2348_v8, %v2352_v19  ;;  %v2362_v60 = vrot.slane %v2360_v16, 5  ;;  %v1775_v18 = vshll.u32 %v1463_v41, 16  ;;  %v831_v27 = vld [vmem:[#allocation2 + $0x9c] sm:$0xf] }
 0x13b   : > { %v2607_v24 = vsel %vm5421_vm9, %v2605_v20, %v2606_v29  ;;  %v2358_v32 = vrot.slane %v2357_v49, 4  ;;  %v1763_v58 = vrot.slane %v1762_v33, 4  ;;  %v1767_v5 = vrot.slane %v1765_v59, 5  ;;  %v6788_v29 = vld [vmem:[#allocation2 + $0xa0] sm:$0xf] }
 0x13c   : > { %v4924_v37 = vcombine.low %v2604_v48, %v2607_v24  ;;  %v4845_v40 = vcombine.low %v6738_v28, %v6751_v55  ;;  %v4765_v21 = vrot.slane %v1863_v45, 9  ;;  %v2001_v9 = vrot.slane %v6751_v55, 5  ;;  %v6800_v59 = vld [vmem:[#allocation2 + $0xa4] sm:$0x1]  ;;  %v6802_v45 = vpop.permute.xlu0 %2762 }
 0x13d   : > { %v2004_v51 = vrot.slane %v1463_v41, 5  ;;  %v2363_v36 = vsel %vm5448_vm13, %v2358_v32, %v2362_v60  ;;  %v1772_v52 = vor.u32 %v1771_v63, %v1767_v5  ;;  %v1777_v30 = vrot.slane %v1775_v18, 5 }
 0x13e   : > { %3362 = vrot.lane.b32.xlu1 %v4924_v37, %s5344_s29  ;;  %v598_v44 = vor.u32 %v596_v15, %v6740_v61  ;;  %v4908_v54 = vcombine.low %v2353_v10, %v2363_v36  ;;  %v1768_v26 = vsel %vm5448_vm13, %v1763_v58, %v1767_v5  ;;  %v6784_v19 = vsel %vm5421_vm9, %v4765_v21, %v2001_v9  ;;  %v6790_v15 = vpop.permute.xlu1 %2842  ;;  %v1253_v5 = vld [vmem:[#allocation2 + $0x9c] sm:$0xe] }
 0x13f   : > { %v2003_v35 = vrot.slane %v2001_v9, 4  ;;  %v1773_v20 = vrot.slane %v1772_v52, 4  ;;  %v601_v8 = vshrl.u32 %v364_v39, 16  ;;  %v604_v16 = vshll.u32 %v364_v39, 16 }
 0x140   : > { %v785_v48 = vsel %vm5441_vm12, %v598_v44, %v784_v47  ;;  %3282 = vrot.lane.b32.xlu0 %v4908_v54, %s5345_s30  ;;  %v599_v49 = vrot.slane %v6740_v61, 4  ;;  %v329_v33 = vsel %vm5402_vm5, 0, %v328_v17  ;;  %v1169_v63 = vshrl.u32 %v831_v27, 16 }
 0x141   : > { %v6795_v41 = vsel %vm5421_vm9, %v2003_v35, %v2004_v51  ;;  %786 = vst [vmem:[#allocation2 + $0xa8] sm:$0xf] %v785_v48  ;;  %v1778_v10 = vsel %vm5448_vm13, %v1773_v20, %v1777_v30  ;;  %v603_v60 = vrot.slane %v601_v8, 7  ;;  %330 = vst [vmem:[#allocation2 + $0xb0] sm:$0x1] %v329_v33  ;;  %v3598_v61 = vsel %vm3586_vm10, %v3565_v0, %v6659_v25 }
 0x142   : > { %2852 = vrot.lane.b32.xlu1 %v4829_v7, %s5339_s24  ;;  %v1172_v24 = vshll.u32 %v831_v27, 16  ;;  %v4861_v18 = vcombine.low %v1768_v26, %v1778_v10  ;;  %v1171_v32 = vrot.slane %v1169_v63, 4  ;;  %v1178_v37 = vshll.u32 %v6788_v29, 16  ;;  %v281_v51 = vld [vmem:[#allocation2 + $0xb4] sm:$0x1]  ;;  %v6828_v30 = vpop.permute.xlu1 %3018 }
 0x143   : > { %v1182_v58 = vshrl.u32 %v6788_v29, 16  ;;  %v606_v39 = vor.u32 %v604_v16, %v603_v60  ;;  %v608_v21 = vrot.slane %v603_v60, 4  ;;  %v1188_v62 = vshll.u32 %v6800_v59, 16  ;;  %v5317_v48 = vld [vmem:[#allocation2 + $0x58] sm:$0xf] }
 0x144   : > { %v1174_v4 = vrot.slane %v1172_v24, 5  ;;  %2772 = vrot.lane.b32.xlu0 %v6749_v56, %s5340_s25  ;;  %v1180_v7 = vrot.slane %v1178_v37, 5  ;;  %v3631_v25 = vsel %vm3619_vm11, %v3598_v61, %v6653_v34  ;;  %v3393_v0 = vsel %vm3372_vm15, %v4791_v53, %v6684_v22  ;;  %v6836_v22 = vpop.permute.xlu0 %2938  ;;  %v6864_v60 = vld [vmem:[%s5428_s23 + $0x70] sm:$0xf] }
 0x145   : > { %v1184_v9 = vrot.slane %v1182_v58, 4  ;;  %v607_v47 = vsel %vm5455_vm14, %v599_v49, %v606_v39  ;;  %v1190_v52 = vrot.slane %v1188_v62, 5  ;;  %v4750_v56 = vrot.slane %v1253_v5, 9  ;;  %4941 = vmatmul.mubr.msk.bf16.gmra.mrb[20].mxu0 %vm3694_vm8, %v3631_v25 }
 0x146   : > { %3028 = vrot.lane.b32.xlu1 %v4861_v18, %s5346_s6  ;;  %v1175_v36 = vor.u32 %v1174_v4, %v1171_v32  ;;  %787 = vst.msk [vmem:[#allocation2 + $0xac] sm:$0xf] %vm226_vm0, %v607_v47  ;;  %v1400_v12 = vrot.slane %v6788_v29, 5  ;;  %v1403_v3 = vrot.slane %v6800_v59, 5  ;;  %v3435_v53 = vsel %vm3421_vm1, %v3393_v0, %v6680_v23  ;;  %3826 = vmatprep.mubr.bf16.mxu0 %v7765_v46  ;;  %v6873_v37 = vpop.permute.xlu1 %3194 }
 0x147   : > { %v1185_v34 = vor.u32 %v1184_v9, %v1180_v7  ;;  %v4877_v44 = vcombine.low %v6784_v19, %v6795_v41  ;;  %v3468_v26 = vsel %vm3454_vm2, %v3435_v53, %v6718_v6  ;;  %v282_v35 = vsel %vm5391_vm3, 0, %v281_v51  ;;  %v5316_v19 = vld [vmem:[#allocation2 + $0x54] sm:$0xf] }
 0x148   : > { %v2052_v17 = vld [vmem:[#allocation2 + $0xa8] sm:$0xf]  ;;  %v1176_v54 = vrot.slane %v1175_v36, 4  ;;  %2948 = vrot.lane.b32.xlu0 %v4845_v40, %s5341_s26  ;;  %v788_v8 = vld [vmem:[#allocation2 + $0xb0] sm:$0x1]  ;;  %v4792_v29 = vcombine.low %v5316_v19, %v5317_v48  ;;  %v6854_v49 = vsel %vm5421_vm9, %v4750_v56, %v1400_v12  ;;  %v1402_v28 = vrot.slane %v1400_v12, 4  ;;  %v6879_v4 = vpop.permute.xlu0 %3098 }
 0x149   : > { %v2472_v27 = vld [vmem:[#allocation2 + $0xa8] sm:$0xe]  ;;  %v2365_v23 = vshrl.u32 %v2052_v17, 16  ;;  %v2368_v20 = vshll.u32 %v2052_v17, 16  ;;  %v1186_v16 = vrot.slane %v1185_v34, 4  ;;  %v789_v6 = vsel %vm5391_vm3, %v608_v21, %v788_v8 }
 0x14a   : > { %283 = vst [vmem:[#allocation2 + $0xb4] sm:$0x1] %v282_v35  ;;  %v1181_v41 = vsel %vm5448_vm13, %v1176_v54, %v1180_v7  ;;  %v6856_v55 = vld [vmem:[#allocation2 + $0xa8] sm:$0xf]  ;;  %790 = vst [vmem:[#allocation2 + $0xb0] sm:$0x1] %v789_v6  ;;  %v6870_v18 = vsel %vm5421_vm9, %v1402_v28, %v1403_v3  ;;  %v3501_v21 = vsel %vm3487_vm4, %v3468_v26, %v6708_v42 }
 0x14b   : > { %v6858_v40 = vld [vmem:[#allocation2 + $0xa8] sm:$0xe]  ;;  %v2367_v33 = vrot.slane %v2365_v23, 4  ;;  %v2370_v59 = vrot.slane %v2368_v20, 5  ;;  %v1191_v63 = vsel %vm5448_vm13, %v1186_v16, %v1190_v52  ;;  %v1780_v10 = vshrl.u32 %v6856_v55, 16 }
 0x14c   : > { %v4781_v61 = vrot.slane %v2472_v27, 9  ;;  %v6866_v24 = vcombine.low %v1181_v41, %v1191_v63  ;;  %v1783_v32 = vshll.u32 %v6856_v55, 16  ;;  %3108 = vrot.lane.b32.xlu0 %v4877_v44, %s5343_s28  ;;  %v4766_v39 = vrot.slane %v6858_v40, 9  ;;  %v6900_v20 = vpop.permute.xlu1 %3354 }
 0x14d   : > { %v2371_v58 = vor.u32 %v2370_v59, %v2367_v33  ;;  %v1782_v5 = vrot.slane %v1780_v10, 4  ;;  %v2053_v62 = vld [vmem:[#allocation2 + $0xac] sm:$0xf]  ;;  %v4830_v7 = vcombine.low %v6854_v49, %v6870_v18  ;;  %v3534_v0 = vsel %vm3520_vm6, %v3501_v21, %v6755_v11  ;;  %v331_v21 = vld [vmem:[#allocation2 + $0xbc] sm:$0x1] }
 0x14e   : > { %v6883_v9 = vld [vmem:[#allocation2 + $0xac] sm:$0xf]  ;;  %v1785_v25 = vrot.slane %v1783_v32, 5  ;;  %v610_v51 = vshrl.u32 %v6864_v60, 16  ;;  %v2378_v47 = vshrl.u32 %v2053_v62, 16  ;;  %v4893_v36 = vcombine.low %v2052_v17, %v2053_v62 }
 0x14f   : > { %v2374_v52 = vshll.u32 %v2053_v62, 16  ;;  %v6890_v42 = vsel %vm3372_vm15, %v4792_v29, %v6802_v45  ;;  %v2372_v56 = vrot.slane %v2371_v58, 4  ;;  %v2610_v34 = vrot.slane %v2053_v62, 5  ;;  %v6904_v29 = vpop.permute.xlu0 %3274 }
 0x150   : > { %v1793_v12 = vshrl.u32 %v6883_v9, 16  ;;  %v1786_v3 = vor.u32 %v1785_v25, %v1782_v5  ;;  %3204 = vrot.lane.b32.xlu1 %v4893_v36, %s5342_s27  ;;  %v2380_v44 = vrot.slane %v2378_v47, 4  ;;  %v1789_v11 = vshll.u32 %v6883_v9, 16  ;;  %v6916_v36 = vld [vmem:[#allocation2 + $0xa8] sm:$0xf] }
 0x151   : > { %v2376_v53 = vrot.slane %v2374_v52, 5  ;;  %v2008_v27 = vrot.slane %v6883_v9, 5  ;;  %v2072_v54 = vld [vmem:[#allocation2 + $0xb0] sm:$0x1]  ;;  %v2611_v17 = vsel %vm5421_vm9, %v4781_v61, %v2610_v34  ;;  %v2612_v26 = vrot.slane %v2610_v34, 4 }
 0x152   : > { %v4846_v45 = vcombine.low %v6856_v55, %v6883_v9  ;;  %v1464_v35 = vld [vmem:[#allocation2 + $0xb0] sm:$0x1]  ;;  %v1787_v23 = vrot.slane %v1786_v3, 4  ;;  %v2384_v16 = vshll.u32 %v2072_v54, 16  ;;  %v2613_v19 = vrot.slane %v2072_v54, 5 }
 0x153   : > { %v2381_v8 = vor.u32 %v2380_v44, %v2376_v53  ;;  %v3567_v48 = vsel %vm3553_vm7, %v3534_v0, %v6747_v13  ;;  %v2377_v6 = vsel %vm5448_vm13, %v2372_v56, %v2376_v53  ;;  %v1791_v41 = vrot.slane %v1789_v11, 5  ;;  %v366_v61 = vld [vmem:[%s5428_s23 + $0x74] sm:$0xf]  ;;  %v6919_v53 = vpop.permute.xlu1 %2844  ;;  %v6931_v54 = vld [vmem:[#allocation2 + $0xac] sm:$0xf] }
 0x154   : > { %v1795_v28 = vrot.slane %v1793_v12, 4  ;;  %v1799_v40 = vshll.u32 %v1464_v35, 16  ;;  %v2386_v59 = vrot.slane %v2384_v16, 5  ;;  %v2614_v63 = vsel %vm5421_vm9, %v2612_v26, %v2613_v19  ;;  %v791_v3 = vld [vmem:[#allocation2 + $0xb4] sm:$0xf] }
 0x155   : > { %v2382_v33 = vrot.slane %v2381_v8, 4  ;;  %v2010_v10 = vrot.slane %v2008_v27, 4  ;;  %v4925_v32 = vcombine.low %v2611_v17, %v2614_v63  ;;  %v1792_v58 = vsel %vm5448_vm13, %v1787_v23, %v1791_v41  ;;  %v6933_v17 = vpop.permute.xlu0 %2764  ;;  %v851_v23 = vld [vmem:[#allocation2 + $0xb0] sm:$0x1] }
 0x156   : > { %v1796_v13 = vor.u32 %v1795_v28, %v1791_v41  ;;  %v1801_v5 = vrot.slane %v1799_v40, 5  ;;  %v2011_v25 = vrot.slane %v1464_v35, 5  ;;  %v612_v0 = vrot.slane %v610_v51, 7  ;;  %v1254_v41 = vld [vmem:[#allocation2 + $0xa8] sm:$0xe] }
 0x157   : > { %v2387_v62 = vsel %vm5448_vm13, %v2382_v33, %v2386_v59  ;;  %v613_v47 = vshll.u32 %v6864_v60, 16  ;;  %3364 = vrot.lane.b32.xlu1 %v4925_v32, %s5344_s29  ;;  %v618_v34 = vshrl.u32 %v366_v61, 16  ;;  %v621_v12 = vshll.u32 %v366_v61, 16  ;;  %v284_v33 = vld [vmem:[#allocation2 + $0xc0] sm:$0x1] }
 0x158   : > { %v4909_v52 = vcombine.low %v2377_v6, %v2387_v62  ;;  %v1797_v56 = vrot.slane %v1796_v13, 4  ;;  %v6923_v44 = vsel %vm5421_vm9, %v4766_v39, %v2008_v27  ;;  %v6927_v51 = vsel %vm5421_vm9, %v2010_v10, %v2011_v25  ;;  %v6953_v32 = vld [vmem:[%s5428_s23 + $0x78] sm:$0xf]  ;;  %v6960_v13 = vpop.permute.xlu1 %3020 }
 0x159   : > { %v615_v60 = vor.u32 %v613_v47, %v612_v0  ;;  %v332_v11 = vsel %vm5402_vm5, 0, %v331_v21  ;;  %v616_v35 = vrot.slane %v612_v0, 4  ;;  %v620_v39 = vrot.slane %v618_v34, 7 }
 0x15a   : > { %3284 = vrot.lane.b32.xlu0 %v4909_v52, %s5345_s30  ;;  %v1802_v26 = vsel %vm5448_vm13, %v1797_v56, %v1801_v5  ;;  %333 = vst [vmem:[#allocation2 + $0xbc] sm:$0x1] %v332_v11  ;;  %v3600_v27 = vsel %vm3586_vm10, %v3567_v48, %v6770_v38  ;;  %v1193_v19 = vshrl.u32 %v6916_v36, 16  ;;  %v1196_v6 = vshll.u32 %v6916_v36, 16 }
 0x15b   : > { %v4862_v8 = vcombine.low %v1792_v58, %v1802_v26  ;;  %v792_v16 = vsel %vm5441_vm12, %v615_v60, %v791_v3  ;;  %2854 = vrot.lane.b32.xlu1 %v4830_v7, %s5339_s24  ;;  %v623_v28 = vor.u32 %v621_v12, %v620_v39  ;;  %v625_v40 = vrot.slane %v620_v39, 4 }
 0x15c   : > { %793 = vst [vmem:[#allocation2 + $0xb4] sm:$0xf] %v792_v16  ;;  %v1202_v38 = vshll.u32 %v6931_v54, 16  ;;  %v1206_v48 = vshrl.u32 %v6931_v54, 16  ;;  %v1195_v59 = vrot.slane %v1193_v19, 4  ;;  %v1198_v63 = vrot.slane %v1196_v6, 5 }
 0x15d   : > { %v1212_v10 = vshll.u32 %v851_v23, 16  ;;  %v3633_v61 = vsel %vm3619_vm11, %v3600_v27, %v6764_v31  ;;  %v624_v49 = vsel %vm5455_vm14, %v616_v35, %v623_v28  ;;  %v4751_v58 = vrot.slane %v1254_v41, 9  ;;  %v7002_v27 = vpop.permute.xlu1 %3196 }
 0x15e   : > { %2774 = vrot.lane.b32.xlu0 %v6866_v24, %s5340_s25  ;;  %v1204_v18 = vrot.slane %v1202_v38, 5  ;;  %v1208_v7 = vrot.slane %v1206_v48, 4  ;;  %4942 = vmatmul.mubr.msk.bf16.gmra.mrb[24].mxu0 %vm3694_vm8, %v3633_v61  ;;  %794 = vst.msk [vmem:[#allocation2 + $0xb8] sm:$0xf] %vm226_vm0, %v624_v49  ;;  %v1199_v5 = vor.u32 %v1198_v63, %v1195_v59  ;;  %v1407_v31 = vrot.slane %v6931_v54, 5  ;;  %v6965_v24 = vpop.permute.xlu0 %2940 }
 0x15f   : > { %v1214_v21 = vrot.slane %v1212_v10, 5  ;;  %v1410_v62 = vrot.slane %v851_v23, 5  ;;  %3836 = vmatprep.mubr.bf16.mxu0 %v7765_v46  ;;  %3030 = vrot.lane.b32.xlu1 %v4862_v8, %s5346_s6  ;;  %v3437_v0 = vsel %vm3421_vm1, %v6890_v42, %v6790_v15  ;;  %v285_v47 = vsel %vm5391_vm3, 0, %v284_v33  ;;  %v5318_v33 = vld [vmem:[#allocation2 + $0x60] sm:$0xf] }
 0x160   : > { %v1209_v25 = vor.u32 %v1208_v7, %v1204_v18  ;;  %v627_v52 = vshrl.u32 %v6953_v32, 16  ;;  %v4878_v56 = vcombine.low %v6923_v44, %v6927_v51  ;;  %v1200_v12 = vrot.slane %v1199_v5, 4  ;;  %286 = vst [vmem:[#allocation2 + $0xc0] sm:$0x1] %v285_v47  ;;  %v5319_v59 = vld [vmem:[#allocation2 + $0x64] sm:$0xf] }
 0x161   : > { %v795_v34 = vld [vmem:[#allocation2 + $0xbc] sm:$0x1]  ;;  %v1409_v3 = vrot.slane %v1407_v31, 4  ;;  %v3470_v60 = vsel %vm3454_vm2, %v3437_v0, %v6836_v22  ;;  %v6992_v35 = vsel %vm5421_vm9, %v4751_v58, %v1407_v31  ;;  %v4793_v63 = vcombine.low %v5318_v33, %v5319_v59 }
 0x162   : > { %2950 = vrot.lane.b32.xlu0 %v4846_v45, %s5341_s26  ;;  %v796_v15 = vsel %vm5391_vm3, %v625_v40, %v795_v34  ;;  %v1210_v42 = vrot.slane %v1209_v25, 4  ;;  %v3503_v11 = vsel %vm3487_vm4, %v3470_v60, %v6828_v30  ;;  %v6986_v44 = vrot.slane %v627_v52, 7  ;;  %v7008_v6 = vpop.permute.xlu0 %3100 }
 0x163   : > { %v2054_v51 = vld [vmem:[#allocation2 + $0xb4] sm:$0xf]  ;;  %797 = vst [vmem:[#allocation2 + $0xbc] sm:$0x1] %v796_v15  ;;  %v1205_v22 = vsel %vm5448_vm13, %v1200_v12, %v1204_v18  ;;  %v7000_v30 = vsel %vm5421_vm9, %v1409_v3, %v1410_v62  ;;  %v3536_v19 = vsel %vm3520_vm6, %v3503_v11, %v6879_v4  ;;  %v7024_v3 = vpop.permute.xlu1 %3356  ;;  %v7038_v33 = vsel %vm3372_vm15, %v4793_v63, %v6933_v17 }
 0x164   : > { %v2473_v26 = vld [vmem:[#allocation2 + $0xb4] sm:$0xe]  ;;  %v2389_v9 = vshrl.u32 %v2054_v51, 16  ;;  %v2392_v45 = vshll.u32 %v2054_v51, 16  ;;  %v1215_v39 = vsel %vm5448_vm13, %v1210_v42, %v1214_v21  ;;  %v4831_v25 = vcombine.low %v6992_v35, %v7000_v30 }
 0x165   : > { %v6994_v55 = vld [vmem:[#allocation2 + $0xb4] sm:$0xf]  ;;  %v4782_v23 = vrot.slane %v2473_v26, 9  ;;  %v2055_v41 = vld [vmem:[#allocation2 + $0xb8] sm:$0xf]  ;;  %v7011_v38 = vcombine.low %v1205_v22, %v1215_v39 }
 0x166   : > { %v1804_v8 = vshrl.u32 %v6994_v55, 16  ;;  %v1807_v16 = vshll.u32 %v6994_v55, 16  ;;  %3110 = vrot.lane.b32.xlu0 %v4878_v56, %s5343_s28  ;;  %v2391_v28 = vrot.slane %v2389_v9, 4  ;;  %v2394_v40 = vrot.slane %v2392_v45, 5  ;;  %v7013_v48 = vld [vmem:[#allocation2 + $0xb8] sm:$0xf] }
 0x167   : > { %v2402_v10 = vshrl.u32 %v2055_v41, 16  ;;  %v4894_v61 = vcombine.low %v2054_v51, %v2055_v41  ;;  %v2398_v49 = vshll.u32 %v2055_v41, 16  ;;  %v2617_v18 = vrot.slane %v2055_v41, 5  ;;  %v7026_v51 = vpop.permute.xlu0 %3276  ;;  %v1865_v9 = vld [vmem:[#allocation2 + $0xb4] sm:$0xe]  ;;  %v7049_v63 = vpop.permute.xlu1 %2846 }
 0x168   : > { %v2395_v7 = vor.u32 %v2394_v40, %v2391_v28  ;;  %v1806_v4 = vrot.slane %v1804_v8, 4  ;;  %v1809_v58 = vrot.slane %v1807_v16, 5  ;;  %v1817_v5 = vshrl.u32 %v7013_v48, 16  ;;  %v368_v16 = vld [vmem:[%s5428_s23 + $0x7c] sm:$0xf] }
 0x169   : > { %3206 = vrot.lane.b32.xlu1 %v4894_v61, %s5342_s27  ;;  %v2400_v21 = vrot.slane %v2398_v49, 5  ;;  %v2404_v31 = vrot.slane %v2402_v10, 4  ;;  %v2619_v62 = vrot.slane %v2617_v18, 4  ;;  %v2618_v52 = vsel %vm5421_vm9, %v4782_v23, %v2617_v18  ;;  %v334_v61 = vld [vmem:[#allocation2 + $0xc8] sm:$0x1] }
 0x16a   : > { %v2073_v0 = vld [vmem:[#allocation2 + $0xbc] sm:$0x1]  ;;  %v2396_v47 = vrot.slane %v2395_v7, 4  ;;  %v1810_v34 = vor.u32 %v1809_v58, %v1806_v4  ;;  %v1813_v12 = vshll.u32 %v7013_v48, 16  ;;  %v1819_v11 = vrot.slane %v1817_v5, 4 }
 0x16b   : > { %v7021_v56 = vld [vmem:[#allocation2 + $0xbc] sm:$0x1]  ;;  %v2405_v60 = vor.u32 %v2404_v31, %v2400_v21  ;;  %v2408_v15 = vshll.u32 %v2073_v0, 16  ;;  %v2620_v42 = vrot.slane %v2073_v0, 5  ;;  %v3569_v45 = vsel %vm3553_vm7, %v3536_v19, %v6873_v37  ;;  %v798_v58 = vld [vmem:[#allocation2 + $0xc0] sm:$0xf] }
 0x16c   : > { %v1811_v26 = vrot.slane %v1810_v34, 4  ;;  %v1815_v22 = vrot.slane %v1813_v12, 5  ;;  %v1823_v35 = vshll.u32 %v7021_v56, 16  ;;  %v2401_v39 = vsel %vm5448_vm13, %v2396_v47, %v2400_v21  ;;  %v7047_v17 = vld [vmem:[#allocation2 + $0xb4] sm:$0xf]  ;;  %v5157_v0 = vld [vmem:[%s7748_s3 + $0x40] sm:$0xff]  }
 0x16d   : > { %v2406_v30 = vrot.slane %v2405_v60, 4  ;;  %v2410_v23 = vrot.slane %v2408_v15, 5  ;;  %v2621_v8 = vsel %vm5421_vm9, %v2619_v62, %v2620_v42  ;;  %v4767_v37 = vrot.slane %v1865_v9, 9  ;;  %v7053_v62 = vpop.permute.xlu0 %2766  ;;  %v5158_v47 = vld [vmem:[%s7748_s3] sm:$0xff]   ;;  %v7067_v60 = vld [vmem:[#allocation2 + $0xb8] sm:$0xf]  ;;  %4973 = vmatprep.subr.bf16.mxu0 %v5157_v0  ;;  %5085 = vmatprep.subr.bf16.mxu1 %v5157_v0 }
 0x16e   : > { %v4926_v41 = vcombine.low %v2618_v52, %v2621_v8  ;;  %v1820_v28 = vor.u32 %v1819_v11, %v1815_v22  ;;  %v1825_v40 = vrot.slane %v1823_v35, 5  ;;  %v2015_v19 = vrot.slane %v7013_v48, 5  ;;  %4974 = vmatpush3.bf16.msra.mxu0 %v5158_v47  ;;  %5093 = vmatpush3.bf16.msra.mxu1 %v5158_v47  ;;  %v7097_v8 = vpop.permute.xlu1 %3022 }
 0x16f   : > { %v2411_v59 = vsel %vm5448_vm13, %v2406_v30, %v2410_v23  ;;  %v630_v10 = vshll.u32 %v6953_v32, 16  ;;  %v1816_v18 = vsel %vm5448_vm13, %v1811_v26, %v1815_v22  ;;  %v635_v4 = vshrl.u32 %v368_v16, 16  ;;  %v7077_v26 = vld [vmem:[#allocation2 + $0xbc] sm:$0x1]  ;;  %v7088_v30 = vld [vmem:[#allocation2 + $0xcc] sm:$0xf]  ;;  %4975 = vmatprep.subr.bf16.mxu0 %v5159_v1  ;;  %5086 = vmatprep.subr.bf16.mxu1 %v5159_v1 }
 0x170   : > { %v4910_v49 = vcombine.low %v2401_v39, %v2411_v59  ;;  %3366 = vrot.lane.b32.xlu1 %v4926_v41, %s5344_s29  ;;  %v1821_v7 = vrot.slane %v1820_v28, 4  ;;  %v2017_v5 = vrot.slane %v2015_v19, 4  ;;  %v2018_v21 = vrot.slane %v7021_v56, 5 }
 0x171   : > { %v632_v31 = vor.u32 %v630_v10, %v6986_v44  ;;  %v638_v32 = vshll.u32 %v368_v16, 16  ;;  %v633_v56 = vrot.slane %v6986_v44, 4  ;;  %v637_v34 = vrot.slane %v635_v4, 7  ;;  %v7104_v57 = vpop.permute.xlu0 %2942 }
 0x172   : > { %3286 = vrot.lane.b32.xlu0 %v4910_v49, %s5345_s30  ;;  %v1826_v52 = vsel %vm5448_vm13, %v1821_v7, %v1825_v40  ;;  %v335_v12 = vsel %vm5402_vm5, 0, %v334_v61  ;;  %v4847_v15 = vcombine.low %v6994_v55, %v7013_v48  ;;  %v7073_v42 = vsel %vm5421_vm9, %v4767_v37, %v2015_v19  ;;  %v1255_v40 = vld [vmem:[#allocation2 + $0xb4] sm:$0xe] }
 0x173   : > { %v799_v11 = vsel %vm5441_vm12, %v632_v31, %v798_v58  ;;  %336 = vst [vmem:[#allocation2 + $0xc8] sm:$0x1] %v335_v12  ;;  %v1217_v44 = vshrl.u32 %v7047_v17, 16  ;;  %v4863_v2 = vcombine.low %v1816_v18, %v1826_v52  ;;  %v640_v22 = vor.u32 %v638_v32, %v637_v34 }
 0x174   : > { %2856 = vrot.lane.b32.xlu1 %v4831_v25, %s5339_s24  ;;  %800 = vst [vmem:[#allocation2 + $0xc0] sm:$0xf] %v799_v11  ;;  %v3602_v55 = vsel %vm3586_vm10, %v3569_v45, %v6904_v29  ;;  %v1220_v48 = vshll.u32 %v7047_v17, 16  ;;  %v2019_v43 = vsel %vm5421_vm9, %v2017_v5, %v2018_v21  ;;  %v1226_v9 = vshll.u32 %v7067_v60, 16 }
 0x175   : > { %v1219_v35 = vrot.slane %v1217_v44, 4  ;;  %v1230_v39 = vshrl.u32 %v7067_v60, 16  ;;  %v641_v29 = vsel %vm5455_vm14, %v633_v56, %v640_v22  ;;  %v1236_v45 = vshll.u32 %v7077_v26, 16  ;;  %v7138_v11 = vpop.permute.xlu0 %3102 }
 0x176   : > { %2776 = vrot.lane.b32.xlu0 %v7011_v38, %s5340_s25  ;;  %v1222_v25 = vrot.slane %v1220_v48, 5  ;;  %v3635_v23 = vsel %vm3619_vm11, %v3602_v55, %v6900_v20  ;;  %v642_v16 = vrot.slane %v637_v34, 4  ;;  %801 = vst.msk [vmem:[#allocation2 + $0xc4] sm:$0xf] %vm226_vm0, %v641_v29  ;;  %v7100_v41 = vrot.slane %v1226_v9, 5 }
 0x177   : > { %v1232_v28 = vrot.slane %v1230_v39, 4  ;;  %v1414_v38 = vrot.slane %v7067_v60, 5  ;;  %4943 = vmatmul.mubr.msk.bf16.gmra.mrb[28].mxu0 %vm3694_vm8, %v3635_v23  ;;  %v2437_v20 = vshrl.u32 %v7088_v30, 16  ;;  %v4879_v37 = vcombine.low %v7073_v42, %v2019_v43 }
 0x178   : > { %3032 = vrot.lane.b32.xlu1 %v4863_v2, %s5346_s6  ;;  %v1223_v59 = vor.u32 %v1222_v25, %v1219_v35  ;;  %3846 = vmatprep.mubr.bf16.mxu0 %v7765_v46  ;;  %v3439_v10 = vsel %vm3421_vm1, %v7038_v33, %v6919_v53  ;;  %v7115_v49 = vrot.slane %v1236_v45, 5  ;;  %v4752_v18 = vrot.slane %v1255_v40, 9  ;;  %v7129_v56 = vpop.permute.xlu1 %3198 }
 0x179   : > { %v1233_v19 = vor.u32 %v1232_v28, %v7100_v41  ;;  %v1416_v7 = vrot.slane %v1414_v38, 4  ;;  %v1417_v4 = vrot.slane %v7077_v26, 5  ;;  %v7122_v32 = vrot.slane %v2437_v20, 4 }
 0x17a   : > { %2952 = vrot.lane.b32.xlu0 %v4847_v15, %s5341_s26  ;;  %v802_v61 = vld [vmem:[#allocation2 + $0xc8] sm:$0x1]  ;;  %v7120_v31 = vrot.slane %v1223_v59, 4  ;;  %v3472_v47 = vsel %vm3454_vm2, %v3439_v10, %v6965_v24  ;;  %v2440_v52 = vshll.u32 %v7088_v30, 16  ;;  %v7146_v22 = vsel %vm5421_vm9, %v4752_v18, %v1414_v38  ;;  %v5163_v59 = vld [vmem:[%s7748_s3 + $0x10] sm:$0xff]  }
 0x17b   : > { %v2056_v58 = vld [vmem:[#allocation2 + $0xc0] sm:$0xf]  ;;  %v803_v5 = vsel %vm5391_vm3, %v642_v16, %v802_v61  ;;  %v7134_v12 = vrot.slane %v1233_v19, 4  ;;  %v5160_v24 = vld [vmem:[%s7748_s3 + $0x8] sm:$0xff]   ;;  %v3505_v48 = vsel %vm3487_vm4, %v3472_v47, %v6960_v13  ;;  %v5162_v16 = vld [vmem:[%s7748_s3 + $0x50] sm:$0xff]   ;;  %v7159_v40 = vsel %vm5421_vm9, %v1416_v7, %v1417_v4 }
 0x17c   : > { %v2474_v21 = vld [vmem:[#allocation2 + $0xc0] sm:$0xe]  ;;  %v2413_v0 = vshrl.u32 %v2056_v58, 16  ;;  %v2416_v53 = vshll.u32 %v2056_v58, 16  ;;  %804 = vst [vmem:[#allocation2 + $0xc8] sm:$0x1] %v803_v5  ;;  %4976 = vmatpush3.bf16.msra.mxu0 %v5160_v24  ;;  %5094 = vmatpush3.bf16.msra.mxu1 %v5160_v24  ;;  %v3538_v38 = vsel %vm3520_vm6, %v3505_v48, %v7008_v6  ;;  %v1229_v6 = vsel %vm5448_vm13, %v7120_v31, %v7100_v41 }
 0x17d   : > { %v7124_v33 = vld [vmem:[#allocation2 + $0xc0] sm:$0xf]  ;;  %v4783_v34 = vrot.slane %v2474_v21, 9  ;;  %v2057_v26 = vld [vmem:[#allocation2 + $0xc4] sm:$0xf]  ;;  %4977 = vmatprep.subr.bf16.mxu0 %v5162_v16  ;;  %5087 = vmatprep.subr.bf16.mxu1 %v5162_v16  ;;  %v1239_v7 = vsel %vm5448_vm13, %v7134_v12, %v7115_v49  ;;  %v4832_v1 = vcombine.low %v7146_v22, %v7159_v40  ;;  %v5164_v49 = vld [vmem:[%s7748_s3 + $0x58] sm:$0xff]  }
 0x17e   : > { %v1828_v15 = vshrl.u32 %v7124_v33, 16  ;;  %v1831_v42 = vshll.u32 %v7124_v33, 16  ;;  %3112 = vrot.lane.b32.xlu0 %v4879_v37, %s5343_s28  ;;  %v2415_v44 = vrot.slane %v2413_v0, 4  ;;  %v2418_v2 = vrot.slane %v2416_v53, 5  ;;  %v7148_v55 = vld [vmem:[#allocation2 + $0xc4] sm:$0xf] }
 0x17f   : > { %v2426_v43 = vshrl.u32 %v2057_v26, 16  ;;  %v4895_v35 = vcombine.low %v2056_v58, %v2057_v26  ;;  %v2422_v9 = vshll.u32 %v2057_v26, 16  ;;  %v2624_v39 = vrot.slane %v2057_v26, 5  ;;  %v7167_v61 = vpop.permute.xlu1 %3358  ;;  %v7185_v41 = vld [vmem:[#allocation2 + $0xd0] sm:$0xf] }
 0x180   : > { %v2419_v29 = vor.u32 %v2418_v2, %v2415_v44  ;;  %v1830_v25 = vrot.slane %v1828_v15, 4  ;;  %v1833_v45 = vrot.slane %v1831_v42, 5  ;;  %v1841_v23 = vshrl.u32 %v7148_v55, 16  ;;  %4978 = vmatpush3.bf16.msra.mxu0 %v5163_v59  ;;  %5095 = vmatpush3.bf16.msra.mxu1 %v5163_v59  ;;  %v7193_v24 = vld [vmem:[#allocation2 + $0xc0] sm:$0xe] }
 0x181   : > { %3208 = vrot.lane.b32.xlu1 %v4895_v35, %s5342_s27  ;;  %v2424_v13 = vrot.slane %v2422_v9, 5  ;;  %v2428_v28 = vrot.slane %v2426_v43, 4  ;;  %v2626_v37 = vrot.slane %v2624_v39, 4  ;;  %v1837_v10 = vshll.u32 %v7148_v55, 16  ;;  %v7179_v21 = vpop.permute.xlu0 %3278  ;;  %4979 = vmatprep.subr.bf16.mxu0 %v5164_v49  ;;  %v7207_v16 = vld [vmem:[#allocation2 + $0xd4] sm:$0x1] }
 0x182   : > { %v2420_v20 = vrot.slane %v2419_v29, 4  ;;  %v1834_v19 = vor.u32 %v1833_v45, %v1830_v25  ;;  %v1843_v5 = vrot.slane %v1841_v23, 4  ;;  %v2625_v53 = vsel %vm5421_vm9, %v4783_v34, %v2624_v39  ;;  %v5165_v34 = vld [vmem:[%s7748_s3 + $0x18] sm:$0xff]   ;;  %5088 = vmatprep.subr.bf16.mxu1 %v5164_v49 }
 0x183   : > { %v2074_v18 = vld [vmem:[#allocation2 + $0xc8] sm:$0x1]  ;;  %v2429_v58 = vor.u32 %v2428_v28, %v2424_v13  ;;  %v1839_v15 = vrot.slane %v1837_v10, 5  ;;  %v2022_v22 = vrot.slane %v7148_v55, 5  ;;  %v2442_v9 = vrot.slane %v2440_v52, 5  ;;  %v5166_v28 = vld [vmem:[%s7748_s3 + $0x60] sm:$0xff]  }
 0x184   : > { %v7177_v4 = vld [vmem:[#allocation2 + $0xc8] sm:$0x1]  ;;  %v2432_v0 = vshll.u32 %v2074_v18, 16  ;;  %v2627_v47 = vrot.slane %v2074_v18, 5  ;;  %v2425_v31 = vsel %vm5448_vm13, %v2420_v20, %v2424_v13  ;;  %v1835_v2 = vrot.slane %v1834_v19, 4  ;;  %4980 = vmatpush3.bf16.msra.mxu0 %v5165_v34  ;;  %v2849_v13 = vpop.permute.xlu1 %2848  ;;  %5096 = vmatpush3.bf16.msra.mxu1 %v5165_v34 }
 0x185   : > { %v2430_v12 = vrot.slane %v2429_v58, 4  ;;  %v1847_v42 = vshll.u32 %v7177_v4, 16  ;;  %v1844_v43 = vor.u32 %v1843_v5, %v1839_v15  ;;  %v2769_v39 = vpop.permute.xlu0 %2768  ;;  %v4816_v25 = vcombine.low %v1229_v6, %v1239_v7  ;;  %v2475_v6 = vld [vmem:[#allocation2 + $0xcc] sm:$0xe]  ;;  %4981 = vmatprep.subr.bf16.mxu0 %v5166_v28  ;;  %5089 = vmatprep.subr.bf16.mxu1 %v5166_v28 }
 0x186   : > { %v2434_v26 = vrot.slane %v2432_v0, 5  ;;  %v2628_v44 = vsel %vm5421_vm9, %v2626_v37, %v2627_v47  ;;  %v4768_v45 = vrot.slane %v7193_v24, 9  ;;  %v2450_v23 = vshrl.u32 %v7185_v41, 16  ;;  %v5167_v37 = vld [vmem:[%s7748_s3 + $0x20] sm:$0xff]   ;;  %v5168_v47 = vld [vmem:[%s7748_s3 + $0x68] sm:$0xff]  }
 0x187   : > { %v4927_v48 = vcombine.low %v2625_v53, %v2628_v44  ;;  %v1849_v35 = vrot.slane %v1847_v42, 5  ;;  %v1845_v52 = vrot.slane %v1844_v43, 4  ;;  %v2446_v59 = vshll.u32 %v7185_v41, 16  ;;  %v5320_v42 = vld [vmem:[#allocation2 + $0x6c] sm:$0xf] }
 0x188   : > { %v2435_v29 = vsel %vm5448_vm13, %v2430_v12, %v2434_v26  ;;  %v3571_v20 = vsel %vm3553_vm7, %v3538_v38, %v7002_v27  ;;  %v1840_v19 = vsel %vm5448_vm13, %v1835_v2, %v1839_v15  ;;  %v2024_v10 = vrot.slane %v2022_v22, 4  ;;  %4982 = vmatpush3.bf16.msra.mxu0 %v5167_v37  ;;  %5097 = vmatpush3.bf16.msra.mxu1 %v5167_v37  ;;  %v5321_v24 = vld [vmem:[#allocation2 + $0x70] sm:$0xf]  ;;  %v5323_v26 = vld [vmem:[#allocation2 + $0x7c] sm:$0xf]  ;;  %v3025_v2 = vpop.permute.xlu1 %3024 }
 0x189   : > { %v4911_v40 = vcombine.low %v2425_v31, %v2435_v29  ;;  %3368 = vrot.lane.b32.xlu1 %v4927_v48, %s5344_s29  ;;  %v2025_v18 = vrot.slane %v7177_v4, 5  ;;  %v2452_v58 = vrot.slane %v2450_v23, 4  ;;  %v1850_v7 = vsel %vm5448_vm13, %v1845_v52, %v1849_v35  ;;  %4983 = vmatprep.subr.bf16.mxu0 %v5168_v47 }
 0x18a   : > { %v2443_v27 = vor.u32 %v2442_v9, %v7122_v32  ;;  %v7226_v38 = vrot.slane %v2446_v59, 5  ;;  %v2456_v5 = vshll.u32 %v7207_v16, 16  ;;  %v4848_v0 = vcombine.low %v7124_v33, %v7148_v55  ;;  %v2945_v33 = vpop.permute.xlu0 %2944  ;;  %5090 = vmatprep.subr.bf16.mxu1 %v5168_v47 }
 0x18b   : > { %3288 = vrot.lane.b32.xlu0 %v4911_v40, %s5345_s30  ;;  %v3604_v4 = vsel %vm3586_vm10, %v3571_v20, %v7026_v51  ;;  %v2631_v53 = vrot.slane %v7185_v41, 5  ;;  %v4864_v32 = vcombine.low %v1840_v19, %v1850_v7  ;;  %v4784_v31 = vrot.slane %v2475_v6, 9  ;;  %v5169_v51 = vld [vmem:[%s7748_s3 + $0x28] sm:$0xff]  }
 0x18c   : > { %v2453_v49 = vor.u32 %v2452_v58, %v7226_v38  ;;  %v3637_v12 = vsel %vm3619_vm11, %v3604_v4, %v7024_v3  ;;  %v2634_v15 = vrot.slane %v7207_v16, 5  ;;  %v4794_v34 = vcombine.low %v5320_v42, %v5321_v24  ;;  %4984 = vmatpush3.bf16.msra.mxu0 %v5169_v51  ;;  %5098 = vmatpush3.bf16.msra.mxu1 %v5169_v51  ;;  %v5324_v4 = vld [vmem:[#allocation2 + $0x84] sm:$0xf] }
 0x18d   : > { %2858 = vrot.lane.b32.xlu1 %v4832_v1, %s5339_s24  ;;  %v2633_v55 = vrot.slane %v2631_v53, 4  ;;  %4944 = vmatmul.mubr.msk.bf16.gmra.mrb[32].mxu0 %vm3694_vm8, %v3637_v12  ;;  %v5322_v1 = vld [vmem:[#allocation2 + $0x78] sm:$0xf]  ;;  %v2023_v3 = vsel %vm5421_vm9, %v4768_v45, %v2022_v22  ;;  %v2026_v48 = vsel %vm5421_vm9, %v2024_v10, %v2025_v18  ;;  %v2444_v43 = vrot.slane %v2443_v27, 4  ;;  %v5170_v22 = vld [vmem:[%s7748_s3 + $0x70] sm:$0xff]  }
 0x18e   : > { %v4795_v44 = vcombine.low %v5322_v1, %v5323_v26  ;;  %v2458_v35 = vrot.slane %v2456_v5, 5  ;;  %3856 = vmatprep.mubr.bf16.mxu0 %v7765_v46  ;;  %v2454_v9 = vrot.slane %v2453_v49, 4  ;;  %v3402_v29 = vsel %vm3372_vm15, %v4794_v34, %v7053_v62  ;;  %v3105_v59 = vpop.permute.xlu0 %3104  ;;  %v3201_v19 = vpop.permute.xlu1 %3200  ;;  %4985 = vmatprep.subr.bf16.mxu0 %v5170_v22 }
 0x18f   : > { %2778 = vrot.lane.b32.xlu0 %v4816_v25, %s5340_s25  ;;  %v4799_v16 = vcombine.low %v6916_v36, %v6931_v54  ;;  %v4896_v25 = vcombine.low %v7088_v30, %v7185_v41  ;;  %v3441_v45 = vsel %vm3421_vm1, %v3402_v29, %v7049_v63  ;;  %v2632_v28 = vsel %vm5421_vm9, %v4784_v31, %v2631_v53  ;;  %v5172_v63 = vld [vmem:[%s7748_s3 + $0x78] sm:$0xff]   ;;  %v5325_v53 = vld [vmem:[#allocation2 + $0x88] sm:$0xf] }
 0x190   : > { %v3405_v23 = vsel %vm3372_vm15, %v4795_v44, %v2769_v39  ;;  %v5171_v39 = vld [vmem:[%s7748_s3 + $0x30] sm:$0xff]   ;;  %v2635_v40 = vsel %vm5421_vm9, %v2633_v55, %v2634_v15  ;;  %v3474_v52 = vsel %vm3454_vm2, %v3441_v45, %v7104_v57  ;;  %v4800_v30 = vcombine.low %v7047_v17, %v7067_v60  ;;  %5091 = vmatprep.subr.bf16.mxu1 %v5170_v22 }
 0x191   : > { %3034 = vrot.lane.b32.xlu1 %v4864_v32, %s5346_s6  ;;  %v3443_v62 = vsel %vm3421_vm1, %v3405_v23, %v2849_v13  ;;  %v4880_v41 = vcombine.low %v2023_v3, %v2026_v48  ;;  %v2449_v13 = vsel %vm5448_vm13, %v2444_v43, %v7226_v38  ;;  %v3507_v14 = vsel %vm3487_vm4, %v3474_v52, %v7097_v8  ;;  %v5326_v43 = vld [vmem:[#allocation2 + $0x90] sm:$0xf] }
 0x192   : > { %v2459_v57 = vsel %vm5448_vm13, %v2454_v9, %v2458_v35  ;;  %v3540_v20 = vsel %vm3520_vm6, %v3507_v14, %v7138_v11  ;;  %v3476_v37 = vsel %vm3454_vm2, %v3443_v62, %v2945_v33  ;;  %v4928_v10 = vcombine.low %v2632_v28, %v2635_v40  ;;  %4986 = vmatpush3.bf16.msra.mxu0 %v5171_v39  ;;  %v5173_v11 = vld [vmem:[%s7748_s3 + $0x38] sm:$0xff]   ;;  %v5327_v35 = vld [vmem:[#allocation2 + $0x94] sm:$0xf]  ;;  %v3657_v62 = vld [vmem:[%s7747_s2] sm:$0x3] }
 0x193   : > { %2954 = vrot.lane.b32.xlu0 %v4848_v0, %s5341_s26  ;;  %v3573_v18 = vsel %vm3553_vm7, %v3540_v20, %v7129_v56  ;;  %v3509_v8 = vsel %vm3487_vm4, %v3476_v37, %v3025_v2  ;;  %4987 = vmatprep.subr.bf16.mxu0 %v5172_v63  ;;  %v4912_v58 = vcombine.low %v2449_v13, %v2459_v57  ;;  %v3659_v2 = vlaneseq }
 0x194   : > { %v3606_v50 = vsel %vm3586_vm10, %v3573_v18, %v7179_v21  ;;  %5099 = vmatpush3.bf16.msra.mxu1 %v5171_v39  ;;  %v3542_v56 = vsel %vm3520_vm6, %v3509_v8, %v3105_v59  ;;  %v4796_v47 = vcombine.low %v5324_v4, %v5325_v53  ;;  %v4797_v9 = vcombine.low %v5326_v43, %v5327_v35 }
 0x195   : > { %3210 = vrot.lane.b32.xlu1 %v4896_v25, %s5342_s27  ;;  %v3639_v6 = vsel %vm3619_vm11, %v3606_v50, %v7167_v61  ;;  %5092 = vmatprep.subr.bf16.mxu1 %v5172_v63  ;;  %v3575_v21 = vsel %vm3553_vm7, %v3542_v56, %v3201_v19  ;;  %v3361_v27 = vpop.permute.xlu1 %3360  ;;  %v3660_v29 = vshrl.u32 %v3659_v2, 7 }
 0x196   : > { %4945 = vmatmul.mubr.msk.bf16.gmra.mrb[36].mxu0 %vm3694_vm8, %v3639_v6 }
 0x197   : > { %3114 = vrot.lane.b32.xlu0 %v4880_v41, %s5343_s28  ;;  %v3281_v7 = vpop.permute.xlu0 %3280  ;;  %3866 = vmatprep.mubr.bf16.mxu0 %v7765_v46  ;;  %v3661_v25 = vsub.s32 0, %v3660_v29  ;;  %v3665_v39 = vsub.s32 1, %v3660_v29 }
 0x198   : > { %4988 = vmatpush3.bf16.msra.mxu0 %v5173_v11  ;;  %5100 = vmatpush3.bf16.msra.mxu1 %v5173_v11  ;;  %v3608_v61 = vsel %vm3586_vm10, %v3575_v21, %v3281_v7 }
 0x199   : > { %3370 = vrot.lane.b32.xlu1 %v4928_v10, %s5344_s29  ;;  %v3641_v38 = vsel %vm3619_vm11, %v3608_v61, %v3361_v27  ;;  %v2851_v5 = vpop.permute.xlu1 %2850  ;;  %v7328_v40 = vrot.slane %v3657_v62, %v3661_v25  ;;  %v7330_v52 = vrot.slane %v3657_v62, %v3665_v39 }
 0x19b   : > { %3290 = vrot.lane.b32.xlu0 %v4912_v58, %s5345_s30  ;;  %v2771_v0 = vpop.permute.xlu0 %2770 }
 0x19c   : > { %v3408_v32 = vsel %vm3372_vm15, %v4796_v47, %v2771_v0 }
 0x19d   : > { %v3445_v12 = vsel %vm3421_vm1, %v3408_v32, %v2851_v5 }
 0x19e   : > { %4946 = vmatmul.mubr.msk.bf16.gmra.mrb[40].mxu0 %vm3694_vm8, %v3641_v38  ;;  %v3027_v49 = vpop.permute.xlu1 %3026 }
 0x19f   : > { %3876 = vmatprep.mubr.bf16.mxu0 %v7765_v46  ;;  %v2947_v31 = vpop.permute.xlu0 %2946 }
 0x1a0   : > { %v3478_v33 = vsel %vm3454_vm2, %v3445_v12, %v2947_v31 }
 0x1a1   : > { %v3511_v55 = vsel %vm3487_vm4, %v3478_v33, %v3027_v49 }
 0x1a3   : > { %v3107_v15 = vpop.permute.xlu0 %3106 }
 0x1a4   : > { %v3544_v42 = vsel %vm3520_vm6, %v3511_v55, %v3107_v15  ;;  %v5328_v15 = vld [vmem:[#allocation2 + $0x9c] sm:$0xf] }
 0x1a9   : > { %v3203_v51 = vpop.permute.xlu1 %3202 }
 0x1aa   : > { %v3577_v24 = vsel %vm3553_vm7, %v3544_v42, %v3203_v51  ;;  %v5329_v42 = vld [vmem:[#allocation2 + $0xa0] sm:$0xf] }
 0x1b0   : > { %v3363_v34 = vpop.permute.xlu1 %3362 }
 0x1b2   : > { %v3283_v1 = vpop.permute.xlu0 %3282 }
 0x1b3   : > { %v3610_v26 = vsel %vm3586_vm10, %v3577_v24, %v3283_v1  ;;  %v4798_v24 = vcombine.low %v5328_v15, %v5329_v42 }
 0x1b4   : > { %v3643_v44 = vsel %vm3619_vm11, %v3610_v26, %v3363_v34  ;;  %v2853_v3 = vpop.permute.xlu1 %2852 }
 0x1b5   : > { %4947 = vmatmul.mubr.msk.bf16.gmra.mrb[44].mxu0 %vm3694_vm8, %v3643_v44 }
 0x1b6   : > { %3886 = vmatprep.mubr.bf16.mxu0 %v7765_v46  ;;  %v2773_v48 = vpop.permute.xlu0 %2772 }
 0x1b7   : > { %v3411_v23 = vsel %vm3372_vm15, %v4797_v9, %v2773_v48 }
 0x1b8   : > { %v3029_v22 = vpop.permute.xlu1 %3028  ;;  %v3447_v28 = vsel %vm3421_vm1, %v3411_v23, %v2853_v3 }
 0x1ba   : > { %v2949_v45 = vpop.permute.xlu0 %2948 }
 0x1bb   : > { %v3480_v63 = vsel %vm3454_vm2, %v3447_v28, %v2949_v45 }
 0x1bc   : > { %v3513_v13 = vsel %vm3487_vm4, %v3480_v63, %v3029_v22 }
 0x1be   : > { %v3109_v14 = vpop.permute.xlu0 %3108 }
 0x1bf   : > { %v3546_v10 = vsel %vm3520_vm6, %v3513_v13, %v3109_v14 }
 0x1c2   : > { %v3205_v41 = vpop.permute.xlu1 %3204 }
 0x1c3   : > { %v3579_v50 = vsel %vm3553_vm7, %v3546_v10, %v3205_v41 }
 0x1c4   : > { %v3768_v59 = vpop.f32.mrb[0].mxu0 }
 0x1c5   : > { %v3769_v57 = vadd.f32 %v3768_v59, %v7328_v40  ;;  %v3770_v20 = vpop.f32.mrb[1].mxu0 }
 0x1c6   : > { %v3771_v37 = vadd.f32 %v3770_v20, %v7330_v52  ;;  %v3772_v19 = vpop.f32.mrb[2].mxu0 }
 0x1c7   : > { %v3773_v18 = vadd.f32 %v3772_v19, %v7328_v40  ;;  %v3774_v8 = vpop.f32.mrb[3].mxu0  ;;  %v3927_v6 = vmax.f32 %v3769_v57, 0.0 }
 0x1c8   : > { %v3775_v11 = vadd.f32 %v3774_v8, %v7330_v52  ;;  %v3928_v7 = vmax.f32 %v3771_v37, 0.0 }
 0x1c9   : > { %v3365_v58 = vpop.permute.xlu1 %3364  ;;  %v3929_v56 = vmax.f32 %v3773_v18, 0.0 }
 0x1ca   : > { %v3930_v27 = vmax.f32 %v3775_v11, 0.0 }
 0x1cb   : > { %v7341_v38 = vpack.c.bf16 %v3929_v56, %v3927_v6 }
 0x1cc   : > { %v3285_v21 = vpop.permute.xlu0 %3284  ;;  %v7344_v0 = vpack.c.bf16 %v3930_v27, %v3928_v7  ;;  %v3778_v4 = vpop.f32.mrb[4].mxu0 }
 0x1cd   : > { %v3612_v61 = vsel %vm3586_vm10, %v3579_v50, %v3285_v21  ;;  %v3779_v53 = vadd.f32 %v3778_v4, %v7328_v40  ;;  %v3780_v47 = vpop.f32.mrb[5].mxu0  ;;  %v2855_v31 = vpop.permute.xlu1 %2854 }
 0x1ce   : > { %v3645_v5 = vsel %vm3619_vm11, %v3612_v61, %v3365_v58  ;;  %v3781_v32 = vadd.f32 %v3780_v47, %v7330_v52  ;;  %v3782_v49 = vpop.f32.mrb[6].mxu0 }
 0x1cf   : > { %4948 = vmatmul.mubr.msk.bf16.gmra.mrb[48].mxu0 %vm3694_vm8, %v3645_v5  ;;  %v3783_v12 = vadd.f32 %v3782_v49, %v7328_v40  ;;  %v3784_v33 = vpop.f32.mrb[7].mxu0  ;;  %v3931_v34 = vmax.f32 %v3779_v53, 0.0 }
 0x1d0   : > { %3896 = vmatprep.mubr.bf16.mxu0 %v7765_v46  ;;  %v2775_v51 = vpop.permute.xlu0 %2774  ;;  %v3785_v55 = vadd.f32 %v3784_v33, %v7330_v52  ;;  %v3932_v26 = vmax.f32 %v3781_v32, 0.0 }
 0x1d1   : > { %v3933_v1 = vmax.f32 %v3783_v12, 0.0  ;;  %v3414_v43 = vsel %vm3372_vm15, %v4798_v24, %v2775_v51  ;;  %v3031_v35 = vpop.permute.xlu1 %3030 }
 0x1d2   : > { %v3934_v44 = vmax.f32 %v3785_v55, 0.0  ;;  %v3449_v39 = vsel %vm3421_vm1, %v3414_v43, %v2855_v31 }
 0x1d3   : > { %v3993_v2 = vpack.c.bf16 %v3933_v1, %v3931_v34 }
 0x1d4   : > { %v3788_v3 = vpop.f32.mrb[8].mxu0  ;;  %v3994_v48 = vpack.c.bf16 %v3934_v44, %v3932_v26  ;;  %v2951_v23 = vpop.permute.xlu0 %2950 }
 0x1d5   : > { %v3789_v9 = vadd.f32 %v3788_v3, %v7328_v40  ;;  %v3790_v29 = vpop.f32.mrb[9].mxu0  ;;  %v3482_v59 = vsel %vm3454_vm2, %v3449_v39, %v2951_v23 }
 0x1d6   : > { %v3791_v22 = vadd.f32 %v3790_v29, %v7330_v52  ;;  %v3792_v25 = vpop.f32.mrb[10].mxu0  ;;  %4198 = vmatprep.mubr.bf16.mxu1 %v3994_v48  ;;  %v3515_v37 = vsel %vm3487_vm4, %v3482_v59, %v3031_v35 }
 0x1d7   : > { %v3793_v45 = vadd.f32 %v3792_v25, %v7328_v40  ;;  %v3794_v62 = vpop.f32.mrb[11].mxu0  ;;  %4199 = vmatmul.mubr.bf16.vlgmr.msra.gmra.mrb[0].mxu1 %v3993_v2  ;;  %v3935_v63 = vmax.f32 %v3789_v9, 0.0 }
 0x1d8   : > { %v3795_v28 = vadd.f32 %v3794_v62, %v7330_v52  ;;  %v3936_v13 = vmax.f32 %v3791_v22, 0.0  ;;  %v3111_v19 = vpop.permute.xlu0 %3110 }
 0x1d9   : > { %v3937_v41 = vmax.f32 %v3793_v45, 0.0  ;;  %v3548_v18 = vsel %vm3520_vm6, %v3515_v37, %v3111_v19 }
 0x1da   : > { %v3938_v14 = vmax.f32 %v3795_v28, 0.0 }
 0x1db   : > { %v3207_v57 = vpop.permute.xlu1 %3206  ;;  %v3995_v20 = vpack.c.bf16 %v3937_v41, %v3935_v63 }
 0x1dc   : > { %v3996_v10 = vpack.c.bf16 %v3938_v14, %v3936_v13  ;;  %v3581_v8 = vsel %vm3553_vm7, %v3548_v18, %v3207_v57 }
 0x1de   : > { %4206 = vmatprep.mubr.bf16.mxu1 %v3996_v10 }
 0x1df   : > { %4207 = vmatmul.mubr.bf16.gmra.mrb[4].mxu1 %v3995_v20 }
 0x1e2   : > { %v3367_v50 = vpop.permute.xlu1 %3366 }
 0x1e4   : > { %v3287_v11 = vpop.permute.xlu0 %3286 }
 0x1e5   : > { %v3614_v58 = vsel %vm3586_vm10, %v3581_v8, %v3287_v11 }
 0x1e6   : > { %v3647_v6 = vsel %vm3619_vm11, %v3614_v58, %v3367_v50  ;;  %v2857_v56 = vpop.permute.xlu1 %2856  ;;  %v3798_v21 = vpop.f32.mrb[12].mxu0 }
 0x1e7   : > { %4949 = vmatmul.mubr.msk.bf16.gmra.mrb[52].mxu0 %vm3694_vm8, %v3647_v6  ;;  %v3799_v7 = vadd.f32 %v3798_v21, %v7328_v40  ;;  %v3800_v27 = vpop.f32.mrb[13].mxu0 }
 0x1e8   : > { %3906 = vmatprep.mubr.bf16.mxu0 %v7765_v46  ;;  %v2777_v61 = vpop.permute.xlu0 %2776  ;;  %v3801_v5 = vadd.f32 %v3800_v27, %v7330_v52  ;;  %v3802_v4 = vpop.f32.mrb[14].mxu0 }
 0x1e9   : > { %v3803_v53 = vadd.f32 %v3802_v4, %v7328_v40  ;;  %v3804_v47 = vpop.f32.mrb[15].mxu0  ;;  %v3939_v49 = vmax.f32 %v3799_v7, 0.0  ;;  %v3417_v55 = vsel %vm3372_vm15, %v4799_v16, %v2777_v61 }
 0x1ea   : > { %v3805_v32 = vadd.f32 %v3804_v47, %v7330_v52  ;;  %v3033_v12 = vpop.permute.xlu1 %3032  ;;  %v3940_v33 = vmax.f32 %v3801_v5, 0.0  ;;  %v3451_v34 = vsel %vm3421_vm1, %v3417_v55, %v2857_v56 }
 0x1eb   : > { %v3941_v31 = vmax.f32 %v3803_v53, 0.0 }
 0x1ec   : > { %v3942_v51 = vmax.f32 %v3805_v32, 0.0  ;;  %v2953_v42 = vpop.permute.xlu0 %2952 }
 0x1ed   : > { %v3997_v15 = vpack.c.bf16 %v3941_v31, %v3939_v49  ;;  %v3484_v26 = vsel %vm3454_vm2, %v3451_v34, %v2953_v42 }
 0x1ee   : > { %v3998_v24 = vpack.c.bf16 %v3942_v51, %v3940_v33  ;;  %v3517_v44 = vsel %vm3487_vm4, %v3484_v26, %v3033_v12 }
 0x1f0   : > { %4214 = vmatprep.mubr.bf16.mxu1 %v3998_v24  ;;  %v3113_v2 = vpop.permute.xlu0 %3112 }
 0x1f1   : > { %4215 = vmatmul.mubr.bf16.gmra.mrb[8].mxu1 %v3997_v15  ;;  %v3550_v3 = vsel %vm3520_vm6, %v3517_v44, %v3113_v2 }
 0x1f3   : > { %v3209_v1 = vpop.permute.xlu1 %3208 }
 0x1f4   : > { %v3583_v48 = vsel %vm3553_vm7, %v3550_v3, %v3209_v1 }
 0x1fb   : > { %v3369_v36 = vpop.permute.xlu1 %3368 }
 0x1fd   : > { %v3289_v54 = vpop.permute.xlu0 %3288 }
 0x1fe   : > { %v3616_v16 = vsel %vm3586_vm10, %v3583_v48, %v3289_v54 }
 0x1ff   : > { %v3649_v43 = vsel %vm3619_vm11, %v3616_v16, %v3369_v36  ;;  %v2859_v35 = vpop.permute.xlu1 %2858 }
 0x200   : > { %4950 = vmatmul.mubr.msk.bf16.gmra.mrb[56].mxu0 %vm3694_vm8, %v3649_v43  ;;  %v3808_v29 = vpop.f32.mrb[16].mxu0 }
 0x201   : > { %v2779_v9 = vpop.permute.xlu0 %2778  ;;  %3916 = vmatprep.mubr.bf16.mxu0 %v7765_v46  ;;  %v3809_v22 = vadd.f32 %v3808_v29, %v7328_v40  ;;  %v3810_v25 = vpop.f32.mrb[17].mxu0 }
 0x202   : > { %v3420_v23 = vsel %vm3372_vm15, %v4800_v30, %v2779_v9  ;;  %v3811_v39 = vadd.f32 %v3810_v25, %v7330_v52  ;;  %v3812_v28 = vpop.f32.mrb[18].mxu0 }
 0x203   : > { %v3453_v45 = vsel %vm3421_vm1, %v3420_v23, %v2859_v35  ;;  %v3035_v62 = vpop.permute.xlu1 %3034  ;;  %v3813_v63 = vadd.f32 %v3812_v28, %v7328_v40  ;;  %v3814_v41 = vpop.f32.mrb[19].mxu0  ;;  %v3943_v17 = vmax.f32 %v3809_v22, 0.0 }
 0x204   : > { %v3815_v46 = vadd.f32 %v3814_v41, %v7330_v52  ;;  %v3944_v57 = vmax.f32 %v3811_v39, 0.0 }
 0x205   : > { %v2955_v13 = vpop.permute.xlu0 %2954  ;;  %v3945_v60 = vmax.f32 %v3813_v63, 0.0 }
 0x206   : > { %v3486_v14 = vsel %vm3454_vm2, %v3453_v45, %v2955_v13  ;;  %v3946_v20 = vmax.f32 %v3815_v46, 0.0 }
 0x207   : > { %v3519_v30 = vsel %vm3487_vm4, %v3486_v14, %v3035_v62  ;;  %v3211_v59 = vpop.permute.xlu1 %3210  ;;  %v3999_v37 = vpack.c.bf16 %v3945_v60, %v3943_v17 }
 0x208   : > { %v4000_v10 = vpack.c.bf16 %v3946_v20, %v3944_v57 }
 0x209   : > { %v3115_v19 = vpop.permute.xlu0 %3114 }
 0x20a   : > { %v3552_v18 = vsel %vm3520_vm6, %v3519_v30, %v3115_v19  ;;  %4222 = vmatprep.mubr.bf16.mxu1 %v4000_v10 }
 0x20b   : > { %v3585_v8 = vsel %vm3553_vm7, %v3552_v18, %v3211_v59  ;;  %v3371_v50 = vpop.permute.xlu1 %3370  ;;  %4223 = vmatmul.mubr.bf16.gmra.mrb[12].mxu1 %v3999_v37 }
 0x20d   : > { %v3291_v11 = vpop.permute.xlu0 %3290 }
 0x20e   : > { %v3618_v58 = vsel %vm3586_vm10, %v3585_v8, %v3291_v11 }
 0x20f   : > { %v3651_v6 = vsel %vm3619_vm11, %v3618_v58, %v3371_v50 }
 0x210   : > { %4951 = vmatmul.mubr.msk.bf16.gmra.mrb[60].mxu0 %vm3694_vm8, %v3651_v6 }
 0x211   : > { %4190 = vmatprep.mubr.bf16.mxu0 %v7344_v0 }
 0x218   : > { %4191 = vmatmul.mubr.bf16.vlgmr.msra.gmra.mrb[64].mxu0 %v7341_v38  ;;  %v3818_v56 = vpop.f32.mrb[20].mxu0 }
 0x219   : > { %v3819_v21 = vadd.f32 %v3818_v56, %v7328_v40  ;;  %v3820_v7 = vpop.f32.mrb[21].mxu0 }
 0x21a   : > { %v3821_v27 = vadd.f32 %v3820_v7, %v7330_v52  ;;  %v3822_v61 = vpop.f32.mrb[22].mxu0 }
 0x21b   : > { %v3823_v5 = vadd.f32 %v3822_v61, %v7328_v40  ;;  %v3824_v4 = vpop.f32.mrb[23].mxu0  ;;  %v3947_v47 = vmax.f32 %v3819_v21, 0.0 }
 0x21c   : > { %v3825_v53 = vadd.f32 %v3824_v4, %v7330_v52  ;;  %v3948_v49 = vmax.f32 %v3821_v27, 0.0 }
 0x21d   : > { %v3949_v32 = vmax.f32 %v3823_v5, 0.0 }
 0x21e   : > { %v3950_v31 = vmax.f32 %v3825_v53, 0.0 }
 0x21f   : > { %v4001_v12 = vpack.c.bf16 %v3949_v32, %v3947_v47 }
 0x220   : > { %v4002_v0 = vpack.c.bf16 %v3950_v31, %v3948_v49 }
 0x222   : > { %4230 = vmatprep.mubr.bf16.mxu1 %v4002_v0 }
 0x223   : > { %4231 = vmatmul.mubr.bf16.gmra.mrb[16].mxu1 %v4001_v12 }
 0x231   : > { %v3828_v38 = vpop.f32.mrb[24].mxu0 }
 0x232   : > { %v3829_v33 = vadd.f32 %v3828_v38, %v7328_v40  ;;  %v3830_v51 = vpop.f32.mrb[25].mxu0 }
 0x233   : > { %v3831_v55 = vadd.f32 %v3830_v51, %v7330_v52  ;;  %v3832_v15 = vpop.f32.mrb[26].mxu0 }
 0x234   : > { %v3833_v42 = vadd.f32 %v3832_v15, %v7328_v40  ;;  %v3834_v24 = vpop.f32.mrb[27].mxu0  ;;  %v3951_v1 = vmax.f32 %v3829_v33, 0.0 }
 0x235   : > { %v3835_v34 = vadd.f32 %v3834_v24, %v7330_v52  ;;  %v3952_v44 = vmax.f32 %v3831_v55, 0.0 }
 0x236   : > { %v3953_v26 = vmax.f32 %v3833_v42, 0.0 }
 0x237   : > { %v3954_v2 = vmax.f32 %v3835_v34, 0.0 }
 0x238   : > { %v4003_v3 = vpack.c.bf16 %v3953_v26, %v3951_v1 }
 0x239   : > { %v4004_v48 = vpack.c.bf16 %v3954_v2, %v3952_v44 }
 0x23b   : > { %4238 = vmatprep.mubr.bf16.mxu1 %v4004_v48 }
 0x23c   : > { %4239 = vmatmul.mubr.bf16.gmra.mrb[20].mxu1 %v4003_v3 }
 0x24a   : > { %v3838_v36 = vpop.f32.mrb[28].mxu0 }
 0x24b   : > { %v3839_v54 = vadd.f32 %v3838_v36, %v7328_v40  ;;  %v3840_v16 = vpop.f32.mrb[29].mxu0 }
 0x24c   : > { %v3841_v43 = vadd.f32 %v3840_v16, %v7330_v52  ;;  %v3842_v35 = vpop.f32.mrb[30].mxu0 }
 0x24d   : > { %v3843_v9 = vadd.f32 %v3842_v35, %v7328_v40  ;;  %v3844_v29 = vpop.f32.mrb[31].mxu0  ;;  %v3955_v22 = vmax.f32 %v3839_v54, 0.0 }
 0x24e   : > { %v3845_v23 = vadd.f32 %v3844_v29, %v7330_v52  ;;  %v3956_v45 = vmax.f32 %v3841_v43, 0.0 }
 0x24f   : > { %v3957_v25 = vmax.f32 %v3843_v9, 0.0 }
 0x250   : > { %v3958_v62 = vmax.f32 %v3845_v23, 0.0 }
 0x251   : > { %v4005_v39 = vpack.c.bf16 %v3957_v25, %v3955_v22 }
 0x252   : > { %v4006_v28 = vpack.c.bf16 %v3958_v62, %v3956_v45 }
 0x254   : > { %4246 = vmatprep.mubr.bf16.mxu1 %v4006_v28 }
 0x255   : > { %4247 = vmatmul.mubr.bf16.gmra.mrb[24].mxu1 %v4005_v39 }
 0x260   : > { %v3848_v63 = vpop.f32.mrb[32].mxu0 }
 0x261   : > { %v3849_v41 = vadd.f32 %v3848_v63, %v7328_v40  ;;  %v3850_v13 = vpop.f32.mrb[33].mxu0 }
 0x262   : > { %v3851_v46 = vadd.f32 %v3850_v13, %v7330_v52  ;;  %v3852_v14 = vpop.f32.mrb[34].mxu0 }
 0x263   : > { %v3853_v17 = vadd.f32 %v3852_v14, %v7328_v40  ;;  %v3854_v60 = vpop.f32.mrb[35].mxu0  ;;  %v3959_v59 = vmax.f32 %v3849_v41, 0.0 }
 0x264   : > { %v3855_v30 = vadd.f32 %v3854_v60, %v7330_v52  ;;  %v3960_v20 = vmax.f32 %v3851_v46, 0.0 }
 0x265   : > { %v3961_v57 = vmax.f32 %v3853_v17, 0.0 }
 0x266   : > { %v3962_v37 = vmax.f32 %v3855_v30, 0.0 }
 0x267   : > { %v4007_v19 = vpack.c.bf16 %v3961_v57, %v3959_v59 }
 0x268   : > { %v4008_v10 = vpack.c.bf16 %v3962_v37, %v3960_v20 }
 0x269   : > { %v3858_v18 = vpop.f32.mrb[36].mxu0 }
 0x26a   : > { %4254 = vmatprep.mubr.bf16.mxu1 %v4008_v10  ;;  %v3859_v8 = vadd.f32 %v3858_v18, %v7328_v40  ;;  %v3860_v50 = vpop.f32.mrb[37].mxu0 }
 0x26b   : > { %4255 = vmatmul.mubr.bf16.gmra.mrb[28].mxu1 %v4007_v19  ;;  %v3861_v11 = vadd.f32 %v3860_v50, %v7330_v52  ;;  %v3862_v58 = vpop.f32.mrb[38].mxu0  ;;  %v7436_v19 = vld [vmem:[%s7749_s4] ss:$0 sm:$0xff] }
 0x26c   : > { %v3863_v6 = vadd.f32 %v3862_v58, %v7328_v40  ;;  %v3864_v56 = vpop.f32.mrb[39].mxu0  ;;  %v3963_v7 = vmax.f32 %v3859_v8, 0.0 }
 0x26d   : > { %v3865_v21 = vadd.f32 %v3864_v56, %v7330_v52  ;;  %v3964_v61 = vmax.f32 %v3861_v11, 0.0 }
 0x26e   : > { %v3965_v27 = vmax.f32 %v3863_v6, 0.0 }
 0x26f   : > { %v3966_v5 = vmax.f32 %v3865_v21, 0.0 }
 0x270   : > { %v4009_v4 = vpack.c.bf16 %v3965_v27, %v3963_v7 }
 0x271   : > { %v4010_v53 = vpack.c.bf16 %v3966_v5, %v3964_v61  ;;  %v3868_v47 = vpop.f32.mrb[40].mxu0 }
 0x272   : > { %v3869_v32 = vadd.f32 %v3868_v47, %v7328_v40  ;;  %v3870_v49 = vpop.f32.mrb[41].mxu0 }
 0x273   : > { %4262 = vmatprep.mubr.bf16.mxu1 %v4010_v53  ;;  %v3871_v31 = vadd.f32 %v3870_v49, %v7330_v52  ;;  %v3872_v12 = vpop.f32.mrb[42].mxu0 }
 0x274   : > { %4263 = vmatmul.mubr.bf16.gmra.mrb[32].mxu1 %v4009_v4  ;;  %v3873_v0 = vadd.f32 %v3872_v12, %v7328_v40  ;;  %v3874_v38 = vpop.f32.mrb[43].mxu0  ;;  %v3967_v51 = vmax.f32 %v3869_v32, 0.0 }
 0x275   : > { %v3875_v33 = vadd.f32 %v3874_v38, %v7330_v52  ;;  %v3968_v15 = vmax.f32 %v3871_v31, 0.0 }
 0x276   : > { %v3969_v55 = vmax.f32 %v3873_v0, 0.0 }
 0x277   : > { %v3970_v42 = vmax.f32 %v3875_v33, 0.0 }
 0x278   : > { %v4011_v24 = vpack.c.bf16 %v3969_v55, %v3967_v51 }
 0x279   : > { %v4012_v34 = vpack.c.bf16 %v3970_v42, %v3968_v15 }
 0x27b   : > { %4270 = vmatprep.mubr.bf16.mxu1 %v4012_v34 }
 0x27c   : > { %4271 = vmatmul.mubr.bf16.gmra.mrb[36].mxu1 %v4011_v24 }
 0x288   : > { %v3878_v1 = vpop.f32.mrb[44].mxu0 }
 0x289   : > { %v3879_v26 = vadd.f32 %v3878_v1, %v7328_v40  ;;  %v3880_v44 = vpop.f32.mrb[45].mxu0 }
 0x28a   : > { %v3881_v2 = vadd.f32 %v3880_v44, %v7330_v52  ;;  %v3882_v3 = vpop.f32.mrb[46].mxu0 }
 0x28b   : > { %v3883_v48 = vadd.f32 %v3882_v3, %v7328_v40  ;;  %v3884_v36 = vpop.f32.mrb[47].mxu0  ;;  %v3971_v16 = vmax.f32 %v3879_v26, 0.0 }
 0x28c   : > { %v3885_v54 = vadd.f32 %v3884_v36, %v7330_v52  ;;  %v3972_v35 = vmax.f32 %v3881_v2, 0.0 }
 0x28d   : > { %v3973_v43 = vmax.f32 %v3883_v48, 0.0 }
 0x28e   : > { %v3974_v9 = vmax.f32 %v3885_v54, 0.0 }
 0x28f   : > { %v4013_v29 = vpack.c.bf16 %v3973_v43, %v3971_v16 }
 0x290   : > { %v4014_v23 = vpack.c.bf16 %v3974_v9, %v3972_v35 }
 0x292   : > { %4278 = vmatprep.mubr.bf16.mxu1 %v4014_v23 }
 0x293   : > { %4279 = vmatmul.mubr.bf16.gmra.mrb[40].mxu1 %v4013_v29 }
 0x2a2   : > { %v3888_v22 = vpop.f32.mrb[48].mxu0 }
 0x2a3   : > { %v3889_v25 = vadd.f32 %v3888_v22, %v7328_v40  ;;  %v3890_v45 = vpop.f32.mrb[49].mxu0 }
 0x2a4   : > { %v3891_v62 = vadd.f32 %v3890_v45, %v7330_v52  ;;  %v3892_v39 = vpop.f32.mrb[50].mxu0 }
 0x2a5   : > { %v3893_v28 = vadd.f32 %v3892_v39, %v7328_v40  ;;  %v3894_v63 = vpop.f32.mrb[51].mxu0  ;;  %v3975_v13 = vmax.f32 %v3889_v25, 0.0 }
 0x2a6   : > { %v3895_v41 = vadd.f32 %v3894_v63, %v7330_v52  ;;  %v3976_v14 = vmax.f32 %v3891_v62, 0.0 }
 0x2a7   : > { %v3977_v46 = vmax.f32 %v3893_v28, 0.0 }
 0x2a8   : > { %v3978_v17 = vmax.f32 %v3895_v41, 0.0 }
 0x2a9   : > { %v4015_v60 = vpack.c.bf16 %v3977_v46, %v3975_v13 }
 0x2aa   : > { %v4016_v30 = vpack.c.bf16 %v3978_v17, %v3976_v14  ;;  %v4995_v59 = vpop.f32.mrb[0].mxu1 }
 0x2ab   : > { %v4996_v57 = vpop.f32.mrb[1].mxu1 }
 0x2ac   : > { %4286 = vmatprep.mubr.bf16.mxu1 %v4016_v30  ;;  %v4997_v20 = vadd.f32 %v4996_v57, %v4995_v59  ;;  %v4998_v37 = vpop.f32.mrb[2].mxu1 }
 0x2ad   : > { %4287 = vmatmul.mubr.bf16.gmra.mrb[44].mxu1 %v4015_v60  ;;  %v4999_v10 = vpop.f32.mrb[3].mxu1 }
 0x2ae   : > { %v7439_v18 = vadd.f32 %v4997_v20, %v7436_v19  ;;  %v5000_v8 = vadd.f32 %v4999_v10, %v4998_v37 }
 0x2b0   : > { %4323 = vmax.xlane.f32.xlu1 %v7439_v18  ;;  %v7443_v50 = vadd.f32 %v5000_v8, %v7436_v19 }
 0x2b2   : > { %v5001_v11 = vpop.f32.mrb[4].mxu1 }
 0x2b3   : > { %v5002_v58 = vpop.f32.mrb[5].mxu1 }
 0x2b4   : > { %v5003_v6 = vadd.f32 %v5002_v58, %v5001_v11  ;;  %4325 = vmax.xlane.f32.xlu1 %v7443_v50  ;;  %v5004_v56 = vpop.f32.mrb[6].mxu1 }
 0x2b5   : > { %v5005_v21 = vpop.f32.mrb[7].mxu1 }
 0x2b6   : > { %v7447_v7 = vadd.f32 %v5003_v6, %v7436_v19  ;;  %v5006_v27 = vadd.f32 %v5005_v21, %v5004_v56 }
 0x2b8   : > { %4327 = vmax.xlane.f32.xlu1 %v7447_v7  ;;  %v7453_v32 = vadd.f32 %v5006_v27, %v7436_v19 }
 0x2ba   : > { %v3898_v61 = vpop.f32.mrb[52].mxu0 }
 0x2bb   : > { %v3899_v5 = vadd.f32 %v3898_v61, %v7328_v40  ;;  %v3900_v4 = vpop.f32.mrb[53].mxu0 }
 0x2bc   : > { %v3901_v53 = vadd.f32 %v3900_v4, %v7330_v52  ;;  %v3902_v47 = vpop.f32.mrb[54].mxu0  ;;  %4329 = vmax.xlane.f32.xlu1 %v7453_v32 }
 0x2bd   : > { %v3903_v49 = vadd.f32 %v3902_v47, %v7328_v40  ;;  %v3904_v31 = vpop.f32.mrb[55].mxu0  ;;  %v3979_v0 = vmax.f32 %v3899_v5, 0.0 }
 0x2be   : > { %v3905_v12 = vadd.f32 %v3904_v31, %v7330_v52  ;;  %v3980_v33 = vmax.f32 %v3901_v53, 0.0 }
 0x2bf   : > { %v3981_v38 = vmax.f32 %v3903_v49, 0.0 }
 0x2c0   : > { %v3982_v51 = vmax.f32 %v3905_v12, 0.0 }
 0x2c1   : > { %v4017_v55 = vpack.c.bf16 %v3981_v38, %v3979_v0 }
 0x2c2   : > { %v4018_v15 = vpack.c.bf16 %v3982_v51, %v3980_v33 }
 0x2c4   : > { %4294 = vmatprep.mubr.bf16.mxu1 %v4018_v15  ;;  %v5007_v42 = vpop.f32.mrb[8].mxu1 }
 0x2c5   : > { %4295 = vmatmul.mubr.bf16.gmra.mrb[48].mxu1 %v4017_v55  ;;  %v5008_v24 = vpop.f32.mrb[9].mxu1 }
 0x2c6   : > { %v5009_v34 = vadd.f32 %v5008_v24, %v5007_v42  ;;  %v5010_v1 = vpop.f32.mrb[10].mxu1 }
 0x2c7   : > { %v5011_v26 = vpop.f32.mrb[11].mxu1 }
 0x2c8   : > { %v7459_v44 = vadd.f32 %v5009_v34, %v7436_v19  ;;  %v5012_v2 = vadd.f32 %v5011_v26, %v5010_v1 }
 0x2ca   : > { %4331 = vmax.xlane.f32.xlu1 %v7459_v44  ;;  %v7463_v3 = vadd.f32 %v5012_v2, %v7436_v19 }
 0x2ce   : > { %4333 = vmax.xlane.f32.xlu1 %v7463_v3 }
 0x2d3   : > { %v3908_v48 = vpop.f32.mrb[56].mxu0 }
 0x2d4   : > { %v3909_v36 = vadd.f32 %v3908_v48, %v7328_v40  ;;  %v3910_v54 = vpop.f32.mrb[57].mxu0 }
 0x2d5   : > { %v3911_v16 = vadd.f32 %v3910_v54, %v7330_v52  ;;  %v3912_v43 = vpop.f32.mrb[58].mxu0 }
 0x2d6   : > { %v3913_v35 = vadd.f32 %v3912_v43, %v7328_v40  ;;  %v3914_v9 = vpop.f32.mrb[59].mxu0  ;;  %v3983_v23 = vmax.f32 %v3909_v36, 0.0 }
 0x2d7   : > { %v3915_v29 = vadd.f32 %v3914_v9, %v7330_v52  ;;  %v3984_v25 = vmax.f32 %v3911_v16, 0.0 }
 0x2d8   : > { %v3985_v22 = vmax.f32 %v3913_v35, 0.0 }
 0x2d9   : > { %v3986_v45 = vmax.f32 %v3915_v29, 0.0 }
 0x2da   : > { %v4019_v62 = vpack.c.bf16 %v3985_v22, %v3983_v23 }
 0x2db   : > { %v4020_v39 = vpack.c.bf16 %v3986_v45, %v3984_v25 }
 0x2dd   : > { %4302 = vmatprep.mubr.bf16.mxu1 %v4020_v39 }
 0x2de   : > { %4303 = vmatmul.mubr.bf16.gmra.mrb[52].mxu1 %v4019_v62  ;;  %v5013_v28 = vpop.f32.mrb[12].mxu1 }
 0x2df   : > { %v5014_v63 = vpop.f32.mrb[13].mxu1 }
 0x2e0   : > { %v5015_v41 = vadd.f32 %v5014_v63, %v5013_v28  ;;  %v5016_v13 = vpop.f32.mrb[14].mxu1 }
 0x2e1   : > { %v5017_v46 = vpop.f32.mrb[15].mxu1 }
 0x2e2   : > { %v7471_v17 = vadd.f32 %v5015_v41, %v7436_v19  ;;  %v5018_v60 = vadd.f32 %v5017_v46, %v5016_v13 }
 0x2e3   : > { %v3918_v14 = vpop.f32.mrb[60].mxu0 }
 0x2e4   : > { %v3919_v30 = vadd.f32 %v3918_v14, %v7328_v40  ;;  %v3920_v59 = vpop.f32.mrb[61].mxu0  ;;  %4335 = vmax.xlane.f32.xlu1 %v7471_v17  ;;  %v7494_v62 = vadd.f32 %v5018_v60, %v7436_v19 }
 0x2e5   : > { %v3921_v57 = vadd.f32 %v3920_v59, %v7330_v52  ;;  %v3922_v20 = vpop.f32.mrb[62].mxu0 }
 0x2e6   : > { %v3923_v37 = vadd.f32 %v3922_v20, %v7328_v40  ;;  %v3924_v10 = vpop.f32.mrb[63].mxu0  ;;  %v3987_v11 = vmax.f32 %v3919_v30, 0.0 }
 0x2e7   : > { %v3925_v8 = vadd.f32 %v3924_v10, %v7330_v52  ;;  %v3988_v6 = vmax.f32 %v3921_v57, 0.0 }
 0x2e8   : > { %v3989_v58 = vmax.f32 %v3923_v37, 0.0 }
 0x2e9   : > { %v3990_v56 = vmax.f32 %v3925_v8, 0.0 }
 0x2ea   : > { %v4021_v21 = vpack.c.bf16 %v3989_v58, %v3987_v11 }
 0x2eb   : > { %v4022_v27 = vpack.c.bf16 %v3990_v56, %v3988_v6  ;;  %v4989_v61 = vpop.f32.mrb[64].mxu0 }
 0x2ec   : > { %v4990_v5 = vpop.f32.mrb[65].mxu0 }
 0x2ed   : > { %v4991_v4 = vadd.f32 %v4990_v5, %v4989_v61  ;;  %v4992_v53 = vpop.f32.mrb[66].mxu0  ;;  %4310 = vmatprep.mubr.bf16.mxu1 %v4022_v27 }
 0x2ee   : > { %v4993_v47 = vpop.f32.mrb[67].mxu0  ;;  %4311 = vmatmul.mubr.bf16.gmra.mrb[56].mxu1 %v4021_v21 }
 0x2ef   : > { %v7479_v49 = vadd.f32 %v4991_v4, %v7436_v19  ;;  %v4994_v40 = vadd.f32 %v4993_v47, %v4992_v53 }
 0x2f1   : > { %4319 = vmax.xlane.f32.xlu0 %v7479_v49  ;;  %v7483_v52 = vadd.f32 %v4994_v40, %v7436_v19 }
 0x2f5   : > { %4321 = vmax.xlane.f32.xlu0 %v7483_v52 }
 0x2f6   : > { %v5019_v31 = vpop.f32.mrb[16].mxu1 }
 0x2f7   : > { %v5020_v12 = vpop.f32.mrb[17].mxu1 }
 0x2f8   : > { %v5021_v0 = vadd.f32 %v5020_v12, %v5019_v31  ;;  %v5022_v38 = vpop.f32.mrb[18].mxu1 }
 0x2f9   : > { %v5023_v33 = vpop.f32.mrb[19].mxu1 }
 0x2fa   : > { %v5024_v51 = vadd.f32 %v5023_v33, %v5022_v38  ;;  %v7499_v63 = vadd.f32 %v5021_v0, %v7436_v19 }
 0x2fc   : > { %v7506_v60 = vadd.f32 %v5024_v51, %v7436_v19 }
 0x30f   : > { %v5025_v55 = vpop.f32.mrb[20].mxu1 }
 0x310   : > { %v5026_v15 = vpop.f32.mrb[21].mxu1 }
 0x311   : > { %v5027_v42 = vadd.f32 %v5026_v15, %v5025_v55  ;;  %v5028_v24 = vpop.f32.mrb[22].mxu1 }
 0x312   : > { %v5029_v34 = vpop.f32.mrb[23].mxu1 }
 0x313   : > { %v5030_v1 = vadd.f32 %v5029_v34, %v5028_v24  ;;  %v7514_v37 = vadd.f32 %v5027_v42, %v7436_v19 }
 0x315   : > { %v7522_v56 = vadd.f32 %v5030_v1, %v7436_v19 }
 0x328   : > { %v5031_v26 = vpop.f32.mrb[24].mxu1 }
 0x329   : > { %v5032_v2 = vpop.f32.mrb[25].mxu1 }
 0x32a   : > { %v5033_v48 = vadd.f32 %v5032_v2, %v5031_v26  ;;  %v5034_v36 = vpop.f32.mrb[26].mxu1 }
 0x32b   : > { %v5035_v54 = vpop.f32.mrb[27].mxu1 }
 0x32c   : > { %v5036_v16 = vadd.f32 %v5035_v54, %v5034_v36  ;;  %v7530_v27 = vadd.f32 %v5033_v48, %v7436_v19 }
 0x32e   : > { %v7535_v61 = vadd.f32 %v5036_v16, %v7436_v19 }
 0x33d   : > { %v4324_v38 = vpop.xlane.xlu1 %4323 }
 0x33e   : > { %v5037_v43 = vpop.f32.mrb[28].mxu1  ;;  %v4385_v48 = vsub.f32 %v7439_v18, %v4324_v38 }
 0x33f   : > { %v5038_v35 = vpop.f32.mrb[29].mxu1 }
 0x340   : > { %v5039_v9 = vadd.f32 %v5038_v35, %v5037_v43  ;;  %v5040_v29 = vpop.f32.mrb[30].mxu1 }
 0x341   : > { %v5041_v23 = vpop.f32.mrb[31].mxu1  ;;  %v4326_v33 = vpop.xlane.xlu1 %4325 }
 0x342   : > { %v7487_v22 = vadd.f32 %v5039_v9, %v7436_v19  ;;  %v5042_v25 = vadd.f32 %v5041_v23, %v5040_v29  ;;  %v4386_v9 = vsub.f32 %v7443_v50, %v4326_v33 }
 0x344   : > { %v7490_v45 = vadd.f32 %v5042_v25, %v7436_v19  ;;  %4351 = vmax.xlane.f32.xlu1 %v7487_v22  ;;  %v4421_v18 = vmul.f32 1.442695, %v4386_v9 }
 0x345   : > { %v4328_v24 = vpop.xlane.xlu1 %4327 }
 0x346   : > { %4353 = vmax.xlane.f32.xlu0 %v7490_v45 }
 0x347   : > { %v5043_v39 = vpop.f32.mrb[32].mxu1 }
 0x348   : > { %4337 = vmax.xlane.f32.xlu1 %v7494_v62  ;;  %v5044_v28 = vpop.f32.mrb[33].mxu1 }
 0x349   : > { %v5045_v41 = vadd.f32 %v5044_v28, %v5043_v39  ;;  %v5046_v13 = vpop.f32.mrb[34].mxu1  ;;  %v4330_v29 = vpop.xlane.xlu1 %4329 }
 0x34a   : > { %v5047_v46 = vpop.f32.mrb[35].mxu1 }
 0x34b   : > { %v7503_v14 = vadd.f32 %v5045_v41, %v7436_v19  ;;  %v5048_v30 = vadd.f32 %v5047_v46, %v5046_v13  ;;  %v4388_v41 = vsub.f32 %v7453_v32, %v4330_v29 }
 0x34c   : > { %4339 = vmax.xlane.f32.xlu1 %v7499_v63 }
 0x34d   : > { %4355 = vmax.xlane.f32.xlu0 %v7503_v14  ;;  %v7511_v59 = vadd.f32 %v5048_v30, %v7436_v19  ;;  %v4425_v46 = vmul.f32 1.442695, %v4388_v41 }
 0x34f   : > { %v5049_v57 = vpop.f32.mrb[36].mxu1 }
 0x350   : > { %4341 = vmax.xlane.f32.xlu1 %v7506_v60  ;;  %v5050_v20 = vpop.f32.mrb[37].mxu1 }
 0x351   : > { %4357 = vmax.xlane.f32.xlu0 %v7511_v59  ;;  %v5051_v10 = vadd.f32 %v5050_v20, %v5049_v57  ;;  %v5052_v8 = vpop.f32.mrb[38].mxu1 }
 0x352   : > { %v5053_v11 = vpop.f32.mrb[39].mxu1 }
 0x353   : > { %v7519_v58 = vadd.f32 %v5051_v10, %v7436_v19  ;;  %v5054_v6 = vadd.f32 %v5053_v11, %v5052_v8 }
 0x354   : > { %4343 = vmax.xlane.f32.xlu1 %v7514_v37 }
 0x355   : > { %4359 = vmax.xlane.f32.xlu0 %v7519_v58  ;;  %v7527_v21 = vadd.f32 %v5054_v6, %v7436_v19 }
 0x357   : > { %v4332_v25 = vpop.xlane.xlu1 %4331 }
 0x358   : > { %4345 = vmax.xlane.f32.xlu1 %v7522_v56  ;;  %v4389_v30 = vsub.f32 %v7459_v44, %v4332_v25 }
 0x359   : > { %4361 = vmax.xlane.f32.xlu0 %v7527_v21 }
 0x35a   : > { %v4427_v20 = vmul.f32 1.442695, %v4389_v30 }
 0x35b   : > { %v4334_v13 = vpop.xlane.xlu1 %4333 }
 0x35c   : > { %4347 = vmax.xlane.f32.xlu1 %v7530_v27  ;;  %v4390_v10 = vsub.f32 %v7463_v3, %v4334_v13 }
 0x35e   : > { %v4429_v44 = vmul.f32 1.442695, %v4390_v10 }
 0x360   : > { %4349 = vmax.xlane.f32.xlu1 %v7535_v61 }
 0x366   : > { %v5055_v5 = vpop.f32.mrb[40].mxu1 }
 0x367   : > { %v5056_v4 = vpop.f32.mrb[41].mxu1 }
 0x368   : > { %v5057_v53 = vadd.f32 %v5056_v4, %v5055_v5  ;;  %v5058_v47 = vpop.f32.mrb[42].mxu1 }
 0x369   : > { %v5059_v40 = vpop.f32.mrb[43].mxu1 }
 0x36a   : > { %v7539_v31 = vadd.f32 %v5057_v53, %v7436_v19  ;;  %v5060_v12 = vadd.f32 %v5059_v40, %v5058_v47 }
 0x36c   : > { %4363 = vmax.xlane.f32.xlu0 %v7539_v31  ;;  %v7543_v0 = vadd.f32 %v5060_v12, %v7436_v19 }
 0x370   : > { %4365 = vmax.xlane.f32.xlu0 %v7543_v0 }
 0x37e   : > { %v4320_v51 = vpop.xlane.xlu0 %4319 }
 0x37f   : > { %v4383_v55 = vsub.f32 %v7479_v49, %v4320_v51  ;;  %v4419_v49 = vmul.f32 1.442695, %v4385_v48 }
 0x380   : > { %v5061_v15 = vpop.f32.mrb[44].mxu1 }
 0x381   : > { %v4415_v42 = vmul.f32 1.442695, %v4383_v55  ;;  %v5062_v34 = vpop.f32.mrb[45].mxu1 }
 0x382   : > { %v4322_v1 = vpop.xlane.xlu0 %4321  ;;  %v5063_v26 = vadd.f32 %v5062_v34, %v5061_v15  ;;  %v5064_v2 = vpop.f32.mrb[46].mxu1 }
 0x383   : > { %5174 = vpow2.f32 %v4415_v42  ;;  %v4384_v36 = vsub.f32 %v7483_v52, %v4322_v1  ;;  %v5065_v54 = vpop.f32.mrb[47].mxu1  ;;  %v4387_v52 = vsub.f32 %v7447_v7, %v4328_v24  ;;  %v4336_v7 = vpop.xlane.xlu1 %4335 }
 0x384   : > { %v7550_v16 = vadd.f32 %v5063_v26, %v7436_v19  ;;  %v5066_v43 = vadd.f32 %v5065_v54, %v5064_v2  ;;  %v4391_v6 = vsub.f32 %v7471_v17, %v4336_v7 }
 0x385   : > { %v4417_v35 = vmul.f32 1.442695, %v4384_v36  ;;  %v4423_v28 = vmul.f32 1.442695, %v4387_v52 }
 0x386   : > { %4367 = vmax.xlane.f32.xlu0 %v7550_v16  ;;  %v7555_v23 = vadd.f32 %v5066_v43, %v7436_v19  ;;  %v4431_v3 = vmul.f32 1.442695, %v4391_v6 }
 0x387   : > { %5176 = vpow2.f32 %v4417_v35 }
 0x388   : > { %5178 = vpow2.f32 %v4419_v49 }
 0x389   : > { %5180 = vpow2.f32 %v4421_v18 }
 0x38a   : > { %4369 = vmax.xlane.f32.xlu0 %v7555_v23  ;;  %5182 = vpow2.f32 %v4423_v28 }
 0x38b   : > { %5184 = vpow2.f32 %v4425_v46 }
 0x38c   : > { %5186 = vpow2.f32 %v4427_v20 }
 0x38d   : > { %v7559_v39 = vpop.eup %5174  ;;  %5188 = vpow2.f32 %v4429_v44 }
 0x38e   : > { %4479 = vadd.xlane.f32.xlu1 %v7559_v39  ;;  %5190 = vpow2.f32 %v4431_v3 }
 0x391   : > { %v7563_v50 = vpop.eup %5176 }
 0x392   : > { %4481 = vadd.xlane.f32.xlu1 %v7563_v50  ;;  %v7567_v57 = vpop.eup %5178 }
 0x393   : > { %v7571_v32 = vpop.eup %5180 }
 0x394   : > { %v7578_v12 = vpop.eup %5182 }
 0x395   : > { %v7585_v38 = vpop.eup %5184 }
 0x396   : > { %4483 = vadd.xlane.f32.xlu1 %v7567_v57  ;;  %v7589_v33 = vpop.eup %5186 }
 0x397   : > { %v7592_v51 = vpop.eup %5188 }
 0x398   : > { %v5067_v8 = vpop.f32.mrb[48].mxu1  ;;  %v7595_v55 = vpop.eup %5190 }
 0x399   : > { %v5068_v11 = vpop.f32.mrb[49].mxu1 }
 0x39a   : > { %4485 = vadd.xlane.f32.xlu1 %v7571_v32  ;;  %v5069_v5 = vadd.f32 %v5068_v11, %v5067_v8  ;;  %v5070_v4 = vpop.f32.mrb[50].mxu1 }
 0x39b   : > { %v5071_v53 = vpop.f32.mrb[51].mxu1 }
 0x39c   : > { %v7576_v47 = vadd.f32 %v5069_v5, %v7436_v19  ;;  %v5072_v40 = vadd.f32 %v5071_v53, %v5070_v4 }
 0x39e   : > { %4487 = vadd.xlane.f32.xlu1 %v7578_v12  ;;  %4371 = vmax.xlane.f32.xlu0 %v7576_v47  ;;  %v7583_v17 = vadd.f32 %v5072_v40, %v7436_v19 }
 0x3a2   : > { %4489 = vadd.xlane.f32.xlu1 %v7585_v38  ;;  %4373 = vmax.xlane.f32.xlu0 %v7583_v17 }
 0x3a6   : > { %4491 = vadd.xlane.f32.xlu1 %v7589_v33 }
 0x3aa   : > { %4493 = vadd.xlane.f32.xlu1 %v7592_v51 }
 0x3ae   : > { %4495 = vadd.xlane.f32.xlu1 %v7595_v55 }
 0x3b1   : > { %v5073_v15 = vpop.f32.mrb[52].mxu1 }
 0x3b2   : > { %v5074_v42 = vpop.f32.mrb[53].mxu1 }
 0x3b3   : > { %v5075_v24 = vadd.f32 %v5074_v42, %v5073_v15  ;;  %v5076_v34 = vpop.f32.mrb[54].mxu1 }
 0x3b4   : > { %v5077_v1 = vpop.f32.mrb[55].mxu1 }
 0x3b5   : > { %v7599_v26 = vadd.f32 %v5075_v24, %v7436_v19  ;;  %v5078_v2 = vadd.f32 %v5077_v1, %v5076_v34 }
 0x3b7   : > { %4375 = vmax.xlane.f32.xlu0 %v7599_v26  ;;  %v7603_v48 = vadd.f32 %v5078_v2, %v7436_v19 }
 0x3bb   : > { %4377 = vmax.xlane.f32.xlu0 %v7603_v48 }
 0x3c1   : > { %v5079_v36 = vpop.f32.mrb[56].mxu1 }
 0x3c2   : > { %v5080_v54 = vpop.f32.mrb[57].mxu1 }
 0x3c3   : > { %v5081_v43 = vadd.f32 %v5080_v54, %v5079_v36  ;;  %v5082_v35 = vpop.f32.mrb[58].mxu1 }
 0x3c4   : > { %v5083_v49 = vpop.f32.mrb[59].mxu1 }
 0x3c5   : > { %v7607_v9 = vadd.f32 %v5081_v43, %v7436_v19  ;;  %v5084_v29 = vadd.f32 %v5083_v49, %v5082_v35 }
 0x3c7   : > { %4379 = vmax.xlane.f32.xlu0 %v7607_v9  ;;  %v7611_v18 = vadd.f32 %v5084_v29, %v7436_v19 }
 0x3cb   : > { %4381 = vmax.xlane.f32.xlu0 %v7611_v18 }
 0x3d1   : > { %v4352_v52 = vpop.xlane.xlu1 %4351 }
 0x3d2   : > { %v4399_v25 = vsub.f32 %v7487_v22, %v4352_v52 }
 0x3d3   : > { %v4354_v28 = vpop.xlane.xlu0 %4353 }
 0x3d4   : > { %v4447_v41 = vmul.f32 1.442695, %v4399_v25  ;;  %v4400_v13 = vsub.f32 %v7490_v45, %v4354_v28 }
 0x3d5   : > { %v4338_v46 = vpop.xlane.xlu1 %4337 }
 0x3d6   : > { %5192 = vpow2.f32 %v4447_v41  ;;  %v4449_v30 = vmul.f32 1.442695, %v4400_v13  ;;  %v4392_v7 = vsub.f32 %v7494_v62, %v4338_v46 }
 0x3d8   : > { %v4433_v20 = vmul.f32 1.442695, %v4392_v7  ;;  %5194 = vpow2.f32 %v4449_v30 }
 0x3d9   : > { %v4340_v10 = vpop.xlane.xlu1 %4339 }
 0x3da   : > { %5196 = vpow2.f32 %v4433_v20  ;;  %v4393_v19 = vsub.f32 %v7499_v63, %v4340_v10  ;;  %v4356_v8 = vpop.xlane.xlu0 %4355 }
 0x3db   : > { %v4401_v6 = vsub.f32 %v7503_v14, %v4356_v8 }
 0x3dc   : > { %v4435_v11 = vmul.f32 1.442695, %v4393_v19 }
 0x3dd   : > { %v4342_v22 = vpop.xlane.xlu1 %4341  ;;  %v4451_v45 = vmul.f32 1.442695, %v4401_v6 }
 0x3de   : > { %5198 = vpow2.f32 %v4435_v11  ;;  %v4394_v5 = vsub.f32 %v7506_v60, %v4342_v22  ;;  %v4358_v4 = vpop.xlane.xlu0 %4357 }
 0x3df   : > { %5200 = vpow2.f32 %v4451_v45  ;;  %v4402_v62 = vsub.f32 %v7511_v59, %v4358_v4 }
 0x3e0   : > { %v7620_v44 = vpop.eup %5192  ;;  %v4437_v53 = vmul.f32 1.442695, %v4394_v5 }
 0x3e1   : > { %v4344_v40 = vpop.xlane.xlu1 %4343  ;;  %4511 = vadd.xlane.f32.xlu0 %v7620_v44  ;;  %v4453_v3 = vmul.f32 1.442695, %v4402_v62 }
 0x3e2   : > { %5202 = vpow2.f32 %v4437_v53  ;;  %v4395_v63 = vsub.f32 %v7514_v37, %v4344_v40  ;;  %v7625_v14 = vpop.eup %5194  ;;  %v4360_v15 = vpop.xlane.xlu0 %4359 }
 0x3e3   : > { %5204 = vpow2.f32 %v4453_v3  ;;  %v4403_v24 = vsub.f32 %v7519_v58, %v4360_v15 }
 0x3e4   : > { %v7627_v42 = vpop.eup %5196  ;;  %v4439_v60 = vmul.f32 1.442695, %v4395_v63 }
 0x3e5   : > { %v4346_v34 = vpop.xlane.xlu1 %4345  ;;  %4497 = vadd.xlane.f32.xlu1 %v7627_v42  ;;  %4513 = vadd.xlane.f32.xlu0 %v7625_v14  ;;  %v4455_v1 = vmul.f32 1.442695, %v4403_v24 }
 0x3e6   : > { %5206 = vpow2.f32 %v4439_v60  ;;  %v4396_v59 = vsub.f32 %v7522_v56, %v4346_v34  ;;  %v4362_v37 = vpop.xlane.xlu0 %4361 }
 0x3e7   : > { %5208 = vpow2.f32 %v4455_v1  ;;  %v4404_v54 = vsub.f32 %v7527_v21, %v4362_v37 }
 0x3e8   : > { %v7633_v2 = vpop.eup %5198  ;;  %v4441_v36 = vmul.f32 1.442695, %v4396_v59 }
 0x3e9   : > { %v4348_v43 = vpop.xlane.xlu1 %4347  ;;  %4499 = vadd.xlane.f32.xlu1 %v7633_v2  ;;  %v7637_v58 = vpop.eup %5200  ;;  %v4457_v49 = vmul.f32 1.442695, %v4404_v54 }
 0x3ea   : > { %5210 = vpow2.f32 %v4441_v36  ;;  %v4397_v35 = vsub.f32 %v7530_v27, %v4348_v43  ;;  %4515 = vadd.xlane.f32.xlu0 %v7637_v58 }
 0x3eb   : > { %5212 = vpow2.f32 %v4457_v49 }
 0x3ec   : > { %v7641_v56 = vpop.eup %5202  ;;  %v4443_v29 = vmul.f32 1.442695, %v4397_v35 }
 0x3ed   : > { %v4350_v52 = vpop.xlane.xlu1 %4349  ;;  %4501 = vadd.xlane.f32.xlu1 %v7641_v56  ;;  %v7644_v25 = vpop.eup %5204 }
 0x3ee   : > { %5214 = vpow2.f32 %v4443_v29  ;;  %v4398_v21 = vsub.f32 %v7535_v61, %v4350_v52  ;;  %4517 = vadd.xlane.f32.xlu0 %v7644_v25 }
 0x3f0   : > { %v7648_v28 = vpop.eup %5206  ;;  %v4445_v27 = vmul.f32 1.442695, %v4398_v21 }
 0x3f1   : > { %4503 = vadd.xlane.f32.xlu1 %v7648_v28  ;;  %v7651_v41 = vpop.eup %5208 }
 0x3f2   : > { %5216 = vpow2.f32 %v4445_v27  ;;  %4519 = vadd.xlane.f32.xlu0 %v7651_v41 }
 0x3f4   : > { %v7654_v13 = vpop.eup %5210 }
 0x3f5   : > { %4505 = vadd.xlane.f32.xlu1 %v7654_v13  ;;  %v7657_v46 = vpop.eup %5212 }
 0x3f6   : > { %4521 = vadd.xlane.f32.xlu0 %v7657_v46 }
 0x3f8   : > { %v7660_v61 = vpop.eup %5214 }
 0x3f9   : > { %4507 = vadd.xlane.f32.xlu1 %v7660_v61  ;;  %v4364_v30 = vpop.xlane.xlu0 %4363 }
 0x3fa   : > { %v4405_v7 = vsub.f32 %v7539_v31, %v4364_v30 }
 0x3fc   : > { %v7664_v20 = vpop.eup %5216  ;;  %v4459_v10 = vmul.f32 1.442695, %v4405_v7 }
 0x3fd   : > { %4509 = vadd.xlane.f32.xlu1 %v7664_v20  ;;  %v4366_v19 = vpop.xlane.xlu0 %4365 }
 0x3fe   : > { %5218 = vpow2.f32 %v4459_v10  ;;  %v4406_v8 = vsub.f32 %v7543_v0, %v4366_v19 }
 0x400   : > { %v4461_v11 = vmul.f32 1.442695, %v4406_v8 }
 0x402   : > { %5220 = vpow2.f32 %v4461_v11 }
 0x408   : > { %v7668_v6 = vpop.eup %5218 }
 0x409   : > { %4523 = vadd.xlane.f32.xlu0 %v7668_v6 }
 0x40c   : > { %v7671_v22 = vpop.eup %5220 }
 0x40d   : > { %4525 = vadd.xlane.f32.xlu0 %v7671_v22 }
 0x413   : > { %v4368_v31 = vpop.xlane.xlu0 %4367 }
 0x414   : > { %v4407_v5 = vsub.f32 %v7550_v16, %v4368_v31 }
 0x416   : > { %v4463_v45 = vmul.f32 1.442695, %v4407_v5 }
 0x417   : > { %v4370_v4 = vpop.xlane.xlu0 %4369 }
 0x418   : > { %5222 = vpow2.f32 %v4463_v45  ;;  %v4408_v53 = vsub.f32 %v7555_v23, %v4370_v4 }
 0x41a   : > { %v4465_v62 = vmul.f32 1.442695, %v4408_v53 }
 0x41b   : > { %v4480_v0 = vpop.xlane.xlu1 %4479 }
 0x41c   : > { %5224 = vpow2.f32 %v4465_v62 }
 0x41d   : > { %5226 = vrcp.f32 %v4480_v0 }
 0x41f   : > { %v4482_v40 = vpop.xlane.xlu1 %4481 }
 0x420   : > { %5228 = vrcp.f32 %v4482_v40 }
 0x422   : > { %v7676_v63 = vpop.eup %5222 }
 0x423   : > { %v4484_v3 = vpop.xlane.xlu1 %4483  ;;  %4527 = vadd.xlane.f32.xlu0 %v7676_v63 }
 0x424   : > { %5230 = vrcp.f32 %v4484_v3 }
 0x426   : > { %v7679_v15 = vpop.eup %5224 }
 0x427   : > { %v4486_v60 = vpop.xlane.xlu1 %4485  ;;  %4529 = vadd.xlane.f32.xlu0 %v7679_v15  ;;  %v5227_v23 = vpop.eup %5226 }
 0x428   : > { %5232 = vrcp.f32 %v4486_v60  ;;  %v4575_v36 = vmul.f32 %v5227_v23, %v7559_v39 }
 0x42a   : > { %v5229_v54 = vpop.eup %5228 }
 0x42b   : > { %v4488_v16 = vpop.xlane.xlu1 %4487  ;;  %v4372_v24 = vpop.xlane.xlu0 %4371  ;;  %v4576_v49 = vmul.f32 %v5229_v54, %v7563_v50 }
 0x42c   : > { %v4409_v34 = vsub.f32 %v7576_v47, %v4372_v24 }
 0x42e   : > { %v4467_v59 = vmul.f32 1.442695, %v4409_v34  ;;  %v5231_v29 = vpop.eup %5230 }
 0x42f   : > { %v4490_v1 = vpop.xlane.xlu1 %4489  ;;  %v4374_v37 = vpop.xlane.xlu0 %4373  ;;  %v4577_v47 = vmul.f32 %v5231_v29, %v7567_v57 }
 0x430   : > { %v4410_v43 = vsub.f32 %v7583_v17, %v4374_v37  ;;  %5234 = vpow2.f32 %v4467_v59  ;;  %4607 = vxpose.xlu1.b32.start [1/16] (narrow) %v4575_v36, 8 }
 0x431   : > { %5236 = vrcp.f32 %v4488_v16 }
 0x432   : > { %v4469_v35 = vmul.f32 1.442695, %v4410_v43  ;;  %v5233_v21 = vpop.eup %5232 }
 0x433   : > { %v4492_v52 = vpop.xlane.xlu1 %4491  ;;  %v4578_v17 = vmul.f32 %v5233_v21, %v7571_v32 }
 0x434   : > { %5238 = vpow2.f32 %v4469_v35  ;;  %4608 = vxpose.xlu1.b32.cont [2/16] (narrow) %v4576_v49, 8 }
 0x435   : > { %5240 = vrcp.f32 %v4490_v1 }
 0x436   : > { %5242 = vrcp.f32 %v4492_v52 }
 0x437   : > { %v4494_v27 = vpop.xlane.xlu1 %4493 }
 0x438   : > { %4609 = vxpose.xlu1.b32.cont [3/16] (narrow) %v4577_v47, 8  ;;  %5244 = vrcp.f32 %v4494_v27 }
 0x43a   : > { %v7687_v39 = vpop.eup %5234 }
 0x43b   : > { %v5237_v30 = vpop.eup %5236  ;;  %4531 = vadd.xlane.f32.xlu0 %v7687_v39  ;;  %v4496_v7 = vpop.xlane.xlu1 %4495 }
 0x43c   : > { %4610 = vxpose.xlu1.b32.cont [4/16] (narrow) %v4578_v17, 8  ;;  %v4579_v10 = vmul.f32 %v5237_v30, %v7578_v12  ;;  %5246 = vrcp.f32 %v4496_v7 }
 0x43e   : > { %v7691_v50 = vpop.eup %5238 }
 0x43f   : > { %v5241_v19 = vpop.eup %5240  ;;  %4533 = vadd.xlane.f32.xlu0 %v7691_v50 }
 0x440   : > { %4611 = vxpose.xlu1.b32.cont [5/16] (narrow) %v4579_v10, 8  ;;  %v4580_v57 = vmul.f32 %v5241_v19, %v7585_v38  ;;  %v5243_v8 = vpop.eup %5242 }
 0x441   : > { %v4581_v5 = vmul.f32 %v5243_v8, %v7589_v33 }
 0x442   : > { %v5245_v45 = vpop.eup %5244 }
 0x443   : > { %v4582_v62 = vmul.f32 %v5245_v45, %v7592_v51 }
 0x444   : > { %v4376_v11 = vpop.xlane.xlu0 %4375  ;;  %4612 = vxpose.xlu1.b32.cont [6/16] (narrow) %v4580_v57, 8 }
 0x445   : > { %v4411_v32 = vsub.f32 %v7599_v26, %v4376_v11 }
 0x446   : > { %v5247_v0 = vpop.eup %5246 }
 0x447   : > { %v4471_v31 = vmul.f32 1.442695, %v4411_v32  ;;  %v4583_v38 = vmul.f32 %v5247_v0, %v7595_v55 }
 0x448   : > { %v4378_v4 = vpop.xlane.xlu0 %4377  ;;  %4613 = vxpose.xlu1.b32.cont [7/16] (narrow) %v4581_v5, 8 }
 0x449   : > { %5248 = vpow2.f32 %v4471_v31  ;;  %v4412_v12 = vsub.f32 %v7603_v48, %v4378_v4 }
 0x44b   : > { %v4473_v53 = vmul.f32 1.442695, %v4412_v12 }
 0x44c   : > { %4614 = vxpose.xlu1.b32.cont [8/16] (narrow) %v4582_v62, 8 }
 0x44d   : > { %5250 = vpow2.f32 %v4473_v53 }
 0x450   : > { %4615 = vxpose.xlu1.b32.cont [9/16] (narrow) %v4583_v38, 8 }
 0x453   : > { %v7701_v26 = vpop.eup %5248 }
 0x454   : > { %4535 = vadd.xlane.f32.xlu0 %v7701_v26  ;;  %v4380_v33 = vpop.xlane.xlu0 %4379 }
 0x455   : > { %v4413_v40 = vsub.f32 %v7607_v9, %v4380_v33 }
 0x457   : > { %v7705_v3 = vpop.eup %5250  ;;  %v4475_v48 = vmul.f32 1.442695, %v4413_v40 }
 0x458   : > { %4537 = vadd.xlane.f32.xlu0 %v7705_v3  ;;  %v4382_v60 = vpop.xlane.xlu0 %4381 }
 0x459   : > { %5252 = vpow2.f32 %v4475_v48  ;;  %v4414_v51 = vsub.f32 %v7611_v18, %v4382_v60 }
 0x45b   : > { %v4477_v16 = vmul.f32 1.442695, %v4414_v51 }
 0x45d   : > { %5254 = vpow2.f32 %v4477_v16 }
 0x463   : > { %v7709_v55 = vpop.eup %5252 }
 0x464   : > { %4539 = vadd.xlane.f32.xlu0 %v7709_v55 }
 0x467   : > { %v7712_v24 = vpop.eup %5254 }
 0x468   : > { %4541 = vadd.xlane.f32.xlu0 %v7712_v24 }
 0x46e   : > { %v4512_v34 = vpop.xlane.xlu0 %4511 }
 0x472   : > { %v4498_v9 = vpop.xlane.xlu1 %4497  ;;  %v4514_v37 = vpop.xlane.xlu0 %4513 }
 0x473   : > { %5256 = vrcp.f32 %v4498_v9 }
 0x476   : > { %v4500_v23 = vpop.xlane.xlu1 %4499 }
 0x477   : > { %5258 = vrcp.f32 %v4500_v23  ;;  %v4516_v43 = vpop.xlane.xlu0 %4515 }
 0x47a   : > { %v4502_v59 = vpop.xlane.xlu1 %4501 }
 0x47b   : > { %5260 = vrcp.f32 %v4502_v59  ;;  %v4518_v21 = vpop.xlane.xlu0 %4517 }
 0x47d   : > { %v5257_v1 = vpop.eup %5256 }
 0x47e   : > { %v4504_v18 = vpop.xlane.xlu1 %4503  ;;  %v4584_v36 = vmul.f32 %v5257_v1, %v7627_v42 }
 0x47f   : > { %5262 = vrcp.f32 %v4504_v18  ;;  %v4520_v30 = vpop.xlane.xlu0 %4519 }
 0x480   : > { %4616 = vxpose.xlu1.b32.cont [10/16] (narrow) %v4584_v36, 8 }
 0x481   : > { %v5259_v54 = vpop.eup %5258 }
 0x482   : > { %v4506_v35 = vpop.xlane.xlu1 %4505  ;;  %v4585_v49 = vmul.f32 %v5259_v54, %v7633_v2 }
 0x483   : > { %5264 = vrcp.f32 %v4506_v35  ;;  %v4522_v57 = vpop.xlane.xlu0 %4521 }
 0x484   : > { %4617 = vxpose.xlu1.b32.cont [11/16] (narrow) %v4585_v49, 8  ;;  %5266 = vrcp.f32 %v4512_v34 }
 0x485   : > { %v5261_v29 = vpop.eup %5260 }
 0x486   : > { %v4508_v52 = vpop.xlane.xlu1 %4507  ;;  %v4586_v47 = vmul.f32 %v5261_v29, %v7641_v56 }
 0x487   : > { %5268 = vrcp.f32 %v4508_v52 }
 0x488   : > { %4618 = vxpose.xlu1.b32.cont [12/16] (narrow) %v4586_v47, 8  ;;  %5270 = vrcp.f32 %v4514_v37 }
 0x489   : > { %v5263_v27 = vpop.eup %5262  ;;  %5272 = vrcp.f32 %v4516_v43 }
 0x48a   : > { %v4510_v42 = vpop.xlane.xlu1 %4509  ;;  %v4587_v17 = vmul.f32 %v5263_v27, %v7648_v28 }
 0x48b   : > { %5274 = vrcp.f32 %v4510_v42 }
 0x48c   : > { %4619 = vxpose.xlu1.b32.cont [13/16] (narrow) %v4587_v17, 8  ;;  %5276 = vrcp.f32 %v4518_v21 }
 0x48d   : > { %v5265_v2 = vpop.eup %5264  ;;  %5278 = vrcp.f32 %v4520_v30 }
 0x48e   : > { %v4588_v7 = vmul.f32 %v5265_v2, %v7654_v13  ;;  %v5267_v10 = vpop.eup %5266  ;;  %5280 = vrcp.f32 %v4522_v57 }
 0x48f   : > { %v4591_v56 = vmul.f32 %v5267_v10, %v7620_v44 }
 0x490   : > { %4620 = vxpose.xlu1.b32.cont [14/16] (narrow) %v4588_v7, 8 }
 0x491   : > { %v5269_v19 = vpop.eup %5268 }
 0x492   : > { %v4589_v8 = vmul.f32 %v5269_v19, %v7660_v61  ;;  %v5271_v11 = vpop.eup %5270 }
 0x493   : > { %v5273_v32 = vpop.eup %5272  ;;  %v4592_v31 = vmul.f32 %v5271_v11, %v7625_v14 }
 0x494   : > { %4621 = vxpose.xlu1.b32.cont [15/16] (narrow) %v4589_v8, 8  ;;  %v4593_v45 = vmul.f32 %v5273_v32, %v7637_v58 }
 0x495   : > { %4639 = vxpose.xlu0.b32.start [1/16] (narrow) %v4591_v56, 8  ;;  %v5275_v28 = vpop.eup %5274 }
 0x496   : > { %v4590_v5 = vmul.f32 %v5275_v28, %v7664_v20  ;;  %v4524_v13 = vpop.xlane.xlu0 %4523  ;;  %v5277_v44 = vpop.eup %5276 }
 0x497   : > { %5282 = vrcp.f32 %v4524_v13  ;;  %v4594_v61 = vmul.f32 %v5277_v44, %v7644_v25  ;;  %v5279_v12 = vpop.eup %5278 }
 0x498   : > { %4622 = vxpose.xlu1.b32.end [16/16] (narrow) %v4590_v5, 8  ;;  %v4595_v53 = vmul.f32 %v5279_v12, %v7651_v41  ;;  %v5281_v14 = vpop.eup %5280 }
 0x499   : > { %4640 = vxpose.xlu0.b32.cont [2/16] (narrow) %v4592_v31, 8  ;;  %v4596_v20 = vmul.f32 %v5281_v14, %v7657_v46 }
 0x49a   : > { %v4526_v4 = vpop.xlane.xlu0 %4525 }
 0x49b   : > { %5284 = vrcp.f32 %v4526_v4 }
 0x49d   : > { %4641 = vxpose.xlu0.b32.cont [3/16] (narrow) %v4593_v45, 8 }
 0x4a1   : > { %4642 = vxpose.xlu0.b32.cont [4/16] (narrow) %v4594_v61, 8  ;;  %v5283_v62 = vpop.eup %5282 }
 0x4a2   : > { %v4597_v58 = vmul.f32 %v5283_v62, %v7668_v6 }
 0x4a5   : > { %4643 = vxpose.xlu0.b32.cont [5/16] (narrow) %v4595_v53, 8  ;;  %v5285_v0 = vpop.eup %5284 }
 0x4a6   : > { %v4598_v38 = vmul.f32 %v5285_v0, %v7671_v22 }
 0x4a9   : > { %4644 = vxpose.xlu0.b32.cont [6/16] (narrow) %v4596_v20, 8 }
 0x4ad   : > { %4645 = vxpose.xlu0.b32.cont [7/16] (narrow) %v4597_v58, 8 }
 0x4b0   : > { %v4528_v33 = vpop.xlane.xlu0 %4527 }
 0x4b1   : > { %5286 = vrcp.f32 %v4528_v33  ;;  %4646 = vxpose.xlu0.b32.cont [8/16] (narrow) %v4598_v38, 8 }
 0x4b4   : > { %v4530_v25 = vpop.xlane.xlu0 %4529 }
 0x4b5   : > { %5288 = vrcp.f32 %v4530_v25 }
 0x4bb   : > { %v5287_v40 = vpop.eup %5286 }
 0x4bc   : > { %v4599_v41 = vmul.f32 %v5287_v40, %v7676_v63 }
 0x4be   : > { %4647 = vxpose.xlu0.b32.cont [9/16] (narrow) %v4599_v41, 8 }
 0x4bf   : > { %v5289_v48 = vpop.eup %5288 }
 0x4c0   : > { %v4600_v46 = vmul.f32 %v5289_v48, %v7679_v15 }
 0x4c2   : > { %4648 = vxpose.xlu0.b32.cont [10/16] (narrow) %v4600_v46, 8 }
 0x4c8   : > { %v4532_v60 = vpop.xlane.xlu0 %4531 }
 0x4c9   : > { %5290 = vrcp.f32 %v4532_v60 }
 0x4cc   : > { %v4534_v6 = vpop.xlane.xlu0 %4533 }
 0x4cd   : > { %5292 = vrcp.f32 %v4534_v6 }
 0x4d3   : > { %v5291_v51 = vpop.eup %5290 }
 0x4d4   : > { %v4601_v22 = vmul.f32 %v5291_v51, %v7687_v39 }
 0x4d6   : > { %4649 = vxpose.xlu0.b32.cont [11/16] (narrow) %v4601_v22, 8 }
 0x4d7   : > { %v5293_v16 = vpop.eup %5292 }
 0x4d8   : > { %v4602_v9 = vmul.f32 %v5293_v16, %v7691_v50 }
 0x4da   : > { %4650 = vxpose.xlu0.b32.cont [12/16] (narrow) %v4602_v9, 8 }
 0x4dc   : > { %v4623_v63 = vpop.trf.xlu1 }
 0x4dd   : > { %4671 = vst [vmem:[%s224_s22] sm:$0xff] %v4623_v63 }
 0x4e1   : > { %v4536_v15 = vpop.xlane.xlu0 %4535 }
 0x4e2   : > { %5294 = vrcp.f32 %v4536_v15 }
 0x4e5   : > { %v4538_v23 = vpop.xlane.xlu0 %4537 }
 0x4e6   : > { %5296 = vrcp.f32 %v4538_v23 }
 0x4ec   : > { %v5295_v34 = vpop.eup %5294 }
 0x4ed   : > { %v4603_v59 = vmul.f32 %v5295_v34, %v7701_v26 }
 0x4ef   : > { %4651 = vxpose.xlu0.b32.cont [13/16] (narrow) %v4603_v59, 8 }
 0x4f0   : > { %v5297_v39 = vpop.eup %5296 }
 0x4f1   : > { %v4540_v1 = vpop.xlane.xlu0 %4539  ;;  %v4604_v37 = vmul.f32 %v5297_v39, %v7705_v3 }
 0x4f2   : > { %5298 = vrcp.f32 %v4540_v1 }
 0x4f3   : > { %4652 = vxpose.xlu0.b32.cont [14/16] (narrow) %v4604_v37, 8 }
 0x4f5   : > { %v4542_v50 = vpop.xlane.xlu0 %4541 }
 0x4f6   : > { %5300 = vrcp.f32 %v4542_v50 }
 0x4fc   : > { %v5299_v18 = vpop.eup %5298 }
 0x4fd   : > { %v4605_v36 = vmul.f32 %v5299_v18, %v7709_v55 }
 0x4ff   : > { %4653 = vxpose.xlu0.b32.cont [15/16] (narrow) %v4605_v36, 8 }
 0x500   : > { %v5301_v54 = vpop.eup %5300 }
 0x501   : > { %v4606_v43 = vmul.f32 %v5301_v54, %v7712_v24 }
 0x503   : > { %4654 = vxpose.xlu0.b32.end [16/16] (narrow) %v4606_v43, 8 }
 0x547   : > { %v4655_v35 = vpop.trf.xlu0 }
 0x548   : > { %4672 = vst [vmem:[%s224_s22 + $0x8] sm:$0xff] %v4655_v35 }
 0x549 PF: > { %s15_s18 = sadd.s32 1, %s5336_s18  }
 0x54a   : > { %p12_p4 = scmp.ge.s32.totalorder %s15_s18, 4  }
 0x54c   :  { %14 = sbr.rel (!%p12_p4) target bundleno = 1 (0x1), region = 73 }

</bundles_post_ra>
